<compile_context>
chip_gen: v5e
topology: v5e:2x2
jax: 0.10.0
libtpu: 0.0.40
codegen_flags: <defaults>
</compile_context>

<pallas_src>
import functools

import jax
import jax.numpy as jnp
from jax.experimental import pallas as pl
from jax.experimental.pallas import tpu as pltpu


# ----------------------------------------------------------------------------
# Fused kernel: 5 LSTM layers (PyTorch gate order i, f, g, o) + linear head.
# ----------------------------------------------------------------------------
def _fused_lstm_kernel(x_ref, wih0_ref, whh0_ref, b0_ref,
                       wihr_ref, whhr_ref, br_ref,
                       wout_ref, bout_ref,
                       out_ref,
                       xg_ref, seq_ref,
                       *, num_layers, seq_len, batch_pad, hidden):
    S, Bp, H = seq_len, batch_pad, hidden

    def run_layer(inp_2d, wih, whh, b, write_seq):
        # Hoisted input projection + fused bias for all timesteps at once:
        # (S*Bp, D_in) @ (D_in, 4H) -> VMEM scratch.
        xg_ref[...] = (
            jnp.dot(inp_2d, wih, preferred_element_type=jnp.float32) + b)

        h = jnp.zeros((Bp, H), jnp.float32)
        c = jnp.zeros((Bp, H), jnp.float32)
        for t in range(S):                      # statically unrolled recurrence
            gates = (xg_ref[t * Bp:(t + 1) * Bp, :]
                     + jnp.dot(h, whh, preferred_element_type=jnp.float32))
            sig = jax.nn.sigmoid(gates)         # full-width EUP op
            tnh = jnp.tanh(gates)               # full-width EUP op
            i_g = sig[:, 0 * H:1 * H]
            f_g = sig[:, 1 * H:2 * H]
            g_g = tnh[:, 2 * H:3 * H]
            o_g = sig[:, 3 * H:4 * H]
            c = f_g * c + i_g * g_g
            h = o_g * jnp.tanh(c)
            if write_seq:                       # skip for the last layer
                seq_ref[t * Bp:(t + 1) * Bp, :] = h
        return h

    # Layer 0 reads the (padded, flattened) model input.
    h_last = run_layer(x_ref[...], wih0_ref[...], whh0_ref[...], b0_ref[...],
                       write_seq=(num_layers > 1))
    # Layers 1..L-1 read the previous layer's sequence from VMEM scratch.
    for l in range(1, num_layers):
        h_last = run_layer(seq_ref[...], wihr_ref[l - 1], whhr_ref[l - 1],
                           br_ref[l - 1], write_seq=(l < num_layers - 1))

    # Fused linear head on the last timestep of the last layer.
    out_ref[...] = (
        jnp.dot(h_last, wout_ref[...], preferred_element_type=jnp.float32)
        + bout_ref[...])


# ----------------------------------------------------------------------------
# Wrapper: pads batch to a sublane tile, runs one pallas_call, flattens output.
# ----------------------------------------------------------------------------
@jax.jit
def lstm_model_forward(x, params):
    """x: (seq, batch, input_dim) -> flat (batch * output_dim,)."""
    S, B, D = x.shape
    H = params["whh0_t"].shape[0]
    O = params["w_out_t"].shape[1]
    L = params["wih_rest_t"].shape[0] + 1

    Bp = ((B + 7) // 8) * 8                     # pad batch to 8 sublanes
    if Bp != B:
        x = jnp.pad(x, ((0, 0), (0, Bp - B), (0, 0)))
    x2d = x.reshape(S * Bp, D)

    kernel = functools.partial(_fused_lstm_kernel, num_layers=L, seq_len=S,
                               batch_pad=Bp, hidden=H)
    y = pl.pallas_call(
        kernel,
        out_shape=jax.ShapeDtypeStruct((Bp, O), jnp.float32),
        scratch_shapes=[
            pltpu.VMEM((S * Bp, 4 * H), jnp.float32),   # hoisted x @ W_ih + b
            pltpu.VMEM((S * Bp, H), jnp.float32),       # layer output sequence
        ],
    )(x2d, params["wih0_t"], params["whh0_t"], params["b0"],
      params["wih_rest_t"], params["whh_rest_t"], params["b_rest"],
      params["w_out_t"], params["b_out"])
    return y[:B].reshape(-1)                    # y_pred.view(-1)


# ----------------------------------------------------------------------------
# Pure-JAX reference for verification
# ----------------------------------------------------------------------------
def reference_forward(x, params):
    S, B, _ = x.shape
    H = params["whh0_t"].shape[0]
    L = params["wih_rest_t"].shape[0] + 1
    wihs = [params["wih0_t"]] + [params["wih_rest_t"][l] for l in range(L - 1)]
    whhs = [params["whh0_t"]] + [params["whh_rest_t"][l] for l in range(L - 1)]
    bs = [params["b0"]] + [params["b_rest"][l] for l in range(L - 1)]
    h_seq = x
    for w_ih_t, w_hh_t, b in zip(wihs, whhs, bs):
        h = jnp.zeros((B, H), jnp.float32)
        c = jnp.zeros((B, H), jnp.float32)
        outs = []
        for t in range(S):
            gates = h_seq[t] @ w_ih_t + h @ w_hh_t + b
            i_g = jax.nn.sigmoid(gates[:, 0 * H:1 * H])
            f_g = jax.nn.sigmoid(gates[:, 1 * H:2 * H])
            g_g = jnp.tanh(gates[:, 2 * H:3 * H])
            o_g = jax.nn.sigmoid(gates[:, 3 * H:4 * H])
            c = f_g * c + i_g * g_g
            h = o_g * jnp.tanh(c)
            outs.append(h)
        h_seq = jnp.stack(outs, axis=0)
    y = h_seq[-1] @ params["w_out_t"] + params["b_out"]
    return y.reshape(-1)


# ----------------------------------------------------------------------------
# Deterministic PyTorch-style init (uniform(-1/sqrt(H), 1/sqrt(H)))
# ----------------------------------------------------------------------------
def init_params(key, input_dim, hidden_dim, output_dim, num_layers):
    bound = 1.0 / (hidden_dim ** 0.5)
    layers = []
    for layer in range(num_layers):
        d_in = input_dim if layer == 0 else hidden_dim
        key, k1, k2, k3, k4 = jax.random.split(key, 5)
        w_ih = jax.random.uniform(k1, (4 * hidden_dim, d_in), jnp.float32,
                                  -bound, bound)
        w_hh = jax.random.uniform(k2, (4 * hidden_dim, hidden_dim), jnp.float32,
                                  -bound, bound)
        b_ih = jax.random.uniform(k3, (4 * hidden_dim,), jnp.float32,
                                  -bound, bound)
        b_hh = jax.random.uniform(k4, (4 * hidden_dim,), jnp.float32,
                                  -bound, bound)
        # store transposed weights and fused bias shaped (1, 4H)
        layers.append((w_ih.T, w_hh.T, (b_ih + b_hh).reshape(1, -1)))
    key, k5, k6 = jax.random.split(key, 3)
    w_out = jax.random.uniform(k5, (output_dim, hidden_dim), jnp.float32,
                               -bound, bound)
    b_out = jax.random.uniform(k6, (output_dim,), jnp.float32, -bound, bound)
    return {
        "wih0_t": layers[0][0],
        "whh0_t": layers[0][1],
        "b0": layers[0][2],
        "wih_rest_t": jnp.stack([l[0] for l in layers[1:]], axis=0),
        "whh_rest_t": jnp.stack([l[1] for l in layers[1:]], axis=0),
        "b_rest": jnp.stack([l[2] for l in layers[1:]], axis=0),
        "w_out_t": w_out.T,
        "b_out": b_out.reshape(1, -1),
    }


if __name__ == "__main__":
    SEQ, BATCH, INPUT_DIM, HIDDEN_DIM, OUTPUT_DIM, NUM_LAYERS = 8, 2, 4, 32, 3, 5

    key = jax.random.PRNGKey(0)
    key, xkey = jax.random.split(key)
    x = jax.random.normal(xkey, (SEQ, BATCH, INPUT_DIM), jnp.float32)
    params = init_params(key, INPUT_DIM, HIDDEN_DIM, OUTPUT_DIM, NUM_LAYERS)

    y = lstm_model_forward(x, params)
    y = jax.block_until_ready(y)

    y_ref = reference_forward(x, params)
    assert y.shape == (BATCH * OUTPUT_DIM,)
    assert jnp.allclose(y, y_ref, atol=1e-5, rtol=1e-5), (y, y_ref)

    print("KERNEL_OK")
</pallas_src>

<mosaic_0001>
module attributes {stable_mosaic.version = 11 : i64} {
  func.func @_fused_lstm_kernel(%arg0: memref<64x4xf32, #tpu.memory_space<vmem>>, %arg1: memref<4x128xf32, #tpu.memory_space<vmem>>, %arg2: memref<32x128xf32, #tpu.memory_space<vmem>>, %arg3: memref<1x128xf32, #tpu.memory_space<vmem>>, %arg4: memref<4x32x128xf32, #tpu.memory_space<vmem>>, %arg5: memref<4x32x128xf32, #tpu.memory_space<vmem>>, %arg6: memref<4x1x128xf32, #tpu.memory_space<vmem>>, %arg7: memref<32x3xf32, #tpu.memory_space<vmem>>, %arg8: memref<1x3xf32, #tpu.memory_space<vmem>>, %arg9: memref<8x3xf32, #tpu.memory_space<vmem>>, %arg10: memref<64x128xf32, #tpu.memory_space<vmem>>, %arg11: memref<64x32xf32, #tpu.memory_space<vmem>>) attributes {dimension_semantics = [], scalar_prefetch = 0 : i64, scratch_operands = 2 : i64, tpu.core_type = #tpu.core_type<tc>} {
    %c0 = arith.constant 0 : index
    %c0_0 = arith.constant 0 : index
    %0 = vector.load %arg0[%c0, %c0_0] : memref<64x4xf32, #tpu.memory_space<vmem>>, vector<64x4xf32>
    %c0_1 = arith.constant 0 : index
    %c0_2 = arith.constant 0 : index
    %1 = vector.load %arg1[%c0_1, %c0_2] : memref<4x128xf32, #tpu.memory_space<vmem>>, vector<4x128xf32>
    %c0_3 = arith.constant 0 : index
    %c0_4 = arith.constant 0 : index
    %2 = vector.load %arg2[%c0_3, %c0_4] : memref<32x128xf32, #tpu.memory_space<vmem>>, vector<32x128xf32>
    %c0_5 = arith.constant 0 : index
    %c0_6 = arith.constant 0 : index
    %3 = vector.load %arg3[%c0_5, %c0_6] : memref<1x128xf32, #tpu.memory_space<vmem>>, vector<1x128xf32>
    %cst = arith.constant dense<0.000000e+00> : vector<64x128xf32>
    %4 = tpu.matmul %0, %1, %cst {dimension_numbers = #tpu.dot_dimension_numbers<[1], [0], [0], [1], [0, 0, 1, 1], [], []>} : vector<64x4xf32>, vector<4x128xf32>, vector<64x128xf32> -> vector<64x128xf32>
    %5 = vector.broadcast %3 : vector<1x128xf32> to vector<64x128xf32>
    %6 = arith.addf %4, %5 : vector<64x128xf32>
    %c0_7 = arith.constant 0 : index
    %c0_8 = arith.constant 0 : index
    %7 = vector.load %arg10[%c0_7, %c0_8] : memref<64x128xf32, #tpu.memory_space<vmem>>, vector<64x128xf32>
    tpu.vector_store %arg10[%c0_7, %c0_8], %6 {strides = array<i32>} : memref<64x128xf32, #tpu.memory_space<vmem>>, vector<64x128xf32>,
    %cst_9 = arith.constant 0.000000e+00 : f32
    %8 = vector.broadcast %cst_9 : f32 to vector<8x32xf32>
    %cst_10 = arith.constant 0.000000e+00 : f32
    %9 = vector.broadcast %cst_10 : f32 to vector<8x32xf32>
    %c0_11 = arith.constant 0 : index
    %c0_12 = arith.constant 0 : index
    %10 = vector.load %arg10[%c0_11, %c0_12] : memref<64x128xf32, #tpu.memory_space<vmem>>, vector<8x128xf32>
    %cst_13 = arith.constant dense<0.000000e+00> : vector<8x128xf32>
    %11 = tpu.matmul %8, %2, %cst_13 {dimension_numbers = #tpu.dot_dimension_numbers<[1], [0], [0], [1], [0, 0, 1, 1], [], []>} : vector<8x32xf32>, vector<32x128xf32>, vector<8x128xf32> -> vector<8x128xf32>
    %12 = arith.addf %10, %11 : vector<8x128xf32>
    %13 = arith.negf %12 : vector<8x128xf32>
    %14 = math.exp %13 : vector<8x128xf32>
    %cst_14 = arith.constant 1.000000e+00 : f32
    %15 = vector.broadcast %cst_14 : f32 to vector<8x128xf32>
    %16 = arith.addf %15, %14 : vector<8x128xf32>
    %17 = arith.divf %15, %16 : vector<8x128xf32>
    %18 = math.tanh %12 : vector<8x128xf32>
    %19 = vector.extract_strided_slice %17 {offsets = [0, 0], sizes = [8, 32], strides = [1, 1]} : vector<8x128xf32> to vector<8x32xf32>
    %20 = vector.extract_strided_slice %17 {offsets = [0, 32], sizes = [8, 32], strides = [1, 1]} : vector<8x128xf32> to vector<8x32xf32>
    %21 = vector.extract_strided_slice %18 {offsets = [0, 64], sizes = [8, 32], strides = [1, 1]} : vector<8x128xf32> to vector<8x32xf32>
    %22 = vector.extract_strided_slice %17 {offsets = [0, 96], sizes = [8, 32], strides = [1, 1]} : vector<8x128xf32> to vector<8x32xf32>
    %23 = arith.mulf %20, %9 : vector<8x32xf32>
    %24 = arith.mulf %19, %21 : vector<8x32xf32>
    %25 = arith.addf %23, %24 : vector<8x32xf32>
    %26 = math.tanh %25 : vector<8x32xf32>
    %27 = arith.mulf %22, %26 : vector<8x32xf32>
    %c0_15 = arith.constant 0 : index
    %c0_16 = arith.constant 0 : index
    %28 = vector.load %arg11[%c0_15, %c0_16] : memref<64x32xf32, #tpu.memory_space<vmem>>, vector<8x32xf32>
    tpu.vector_store %arg11[%c0_15, %c0_16], %27 {strides = array<i32>} : memref<64x32xf32, #tpu.memory_space<vmem>>, vector<8x32xf32>,
    %c8 = arith.constant 8 : index
    %c0_17 = arith.constant 0 : index
    %29 = vector.load %arg10[%c8, %c0_17] : memref<64x128xf32, #tpu.memory_space<vmem>>, vector<8x128xf32>
    %cst_18 = arith.constant dense<0.000000e+00> : vector<8x128xf32>
    %30 = tpu.matmul %27, %2, %cst_18 {dimension_numbers = #tpu.dot_dimension_numbers<[1], [0], [0], [1], [0, 0, 1, 1], [], []>} : vector<8x32xf32>, vector<32x128xf32>, vector<8x128xf32> -> vector<8x128xf32>
    %31 = arith.addf %29, %30 : vector<8x128xf32>
    %32 = arith.negf %31 : vector<8x128xf32>
    %33 = math.exp %32 : vector<8x128xf32>
    %cst_19 = arith.constant 1.000000e+00 : f32
    %34 = vector.broadcast %cst_19 : f32 to vector<8x128xf32>
    %35 = arith.addf %34, %33 : vector<8x128xf32>
    %36 = arith.divf %34, %35 : vector<8x128xf32>
    %37 = math.tanh %31 : vector<8x128xf32>
    %38 = vector.extract_strided_slice %36 {offsets = [0, 0], sizes = [8, 32], strides = [1, 1]} : vector<8x128xf32> to vector<8x32xf32>
    %39 = vector.extract_strided_slice %36 {offsets = [0, 32], sizes = [8, 32], strides = [1, 1]} : vector<8x128xf32> to vector<8x32xf32>
    %40 = vector.extract_strided_slice %37 {offsets = [0, 64], sizes = [8, 32], strides = [1, 1]} : vector<8x128xf32> to vector<8x32xf32>
    %41 = vector.extract_strided_slice %36 {offsets = [0, 96], sizes = [8, 32], strides = [1, 1]} : vector<8x128xf32> to vector<8x32xf32>
    %42 = arith.mulf %39, %25 : vector<8x32xf32>
    %43 = arith.mulf %38, %40 : vector<8x32xf32>
    %44 = arith.addf %42, %43 : vector<8x32xf32>
    %45 = math.tanh %44 : vector<8x32xf32>
    %46 = arith.mulf %41, %45 : vector<8x32xf32>
    %c8_20 = arith.constant 8 : index
    %c0_21 = arith.constant 0 : index
    %47 = vector.load %arg11[%c8_20, %c0_21] : memref<64x32xf32, #tpu.memory_space<vmem>>, vector<8x32xf32>
    tpu.vector_store %arg11[%c8_20, %c0_21], %46 {strides = array<i32>} : memref<64x32xf32, #tpu.memory_space<vmem>>, vector<8x32xf32>,
    %c16 = arith.constant 16 : index
    %c0_22 = arith.constant 0 : index
    %48 = vector.load %arg10[%c16, %c0_22] : memref<64x128xf32, #tpu.memory_space<vmem>>, vector<8x128xf32>
    %cst_23 = arith.constant dense<0.000000e+00> : vector<8x128xf32>
    %49 = tpu.matmul %46, %2, %cst_23 {dimension_numbers = #tpu.dot_dimension_numbers<[1], [0], [0], [1], [0, 0, 1, 1], [], []>} : vector<8x32xf32>, vector<32x128xf32>, vector<8x128xf32> -> vector<8x128xf32>
    %50 = arith.addf %48, %49 : vector<8x128xf32>
    %51 = arith.negf %50 : vector<8x128xf32>
    %52 = math.exp %51 : vector<8x128xf32>
    %cst_24 = arith.constant 1.000000e+00 : f32
    %53 = vector.broadcast %cst_24 : f32 to vector<8x128xf32>
    %54 = arith.addf %53, %52 : vector<8x128xf32>
    %55 = arith.divf %53, %54 : vector<8x128xf32>
    %56 = math.tanh %50 : vector<8x128xf32>
    %57 = vector.extract_strided_slice %55 {offsets = [0, 0], sizes = [8, 32], strides = [1, 1]} : vector<8x128xf32> to vector<8x32xf32>
    %58 = vector.extract_strided_slice %55 {offsets = [0, 32], sizes = [8, 32], strides = [1, 1]} : vector<8x128xf32> to vector<8x32xf32>
    %59 = vector.extract_strided_slice %56 {offsets = [0, 64], sizes = [8, 32], strides = [1, 1]} : vector<8x128xf32> to vector<8x32xf32>
    %60 = vector.extract_strided_slice %55 {offsets = [0, 96], sizes = [8, 32], strides = [1, 1]} : vector<8x128xf32> to vector<8x32xf32>
    %61 = arith.mulf %58, %44 : vector<8x32xf32>
    %62 = arith.mulf %57, %59 : vector<8x32xf32>
    %63 = arith.addf %61, %62 : vector<8x32xf32>
    %64 = math.tanh %63 : vector<8x32xf32>
    %65 = arith.mulf %60, %64 : vector<8x32xf32>
    %c16_25 = arith.constant 16 : index
    %c0_26 = arith.constant 0 : index
    %66 = vector.load %arg11[%c16_25, %c0_26] : memref<64x32xf32, #tpu.memory_space<vmem>>, vector<8x32xf32>
    tpu.vector_store %arg11[%c16_25, %c0_26], %65 {strides = array<i32>} : memref<64x32xf32, #tpu.memory_space<vmem>>, vector<8x32xf32>,
    %c24 = arith.constant 24 : index
    %c0_27 = arith.constant 0 : index
    %67 = vector.load %arg10[%c24, %c0_27] : memref<64x128xf32, #tpu.memory_space<vmem>>, vector<8x128xf32>
    %cst_28 = arith.constant dense<0.000000e+00> : vector<8x128xf32>
    %68 = tpu.matmul %65, %2, %cst_28 {dimension_numbers = #tpu.dot_dimension_numbers<[1], [0], [0], [1], [0, 0, 1, 1], [], []>} : vector<8x32xf32>, vector<32x128xf32>, vector<8x128xf32> -> vector<8x128xf32>
    %69 = arith.addf %67, %68 : vector<8x128xf32>
    %70 = arith.negf %69 : vector<8x128xf32>
    %71 = math.exp %70 : vector<8x128xf32>
    %cst_29 = arith.constant 1.000000e+00 : f32
    %72 = vector.broadcast %cst_29 : f32 to vector<8x128xf32>
    %73 = arith.addf %72, %71 : vector<8x128xf32>
    %74 = arith.divf %72, %73 : vector<8x128xf32>
    %75 = math.tanh %69 : vector<8x128xf32>
    %76 = vector.extract_strided_slice %74 {offsets = [0, 0], sizes = [8, 32], strides = [1, 1]} : vector<8x128xf32> to vector<8x32xf32>
    %77 = vector.extract_strided_slice %74 {offsets = [0, 32], sizes = [8, 32], strides = [1, 1]} : vector<8x128xf32> to vector<8x32xf32>
    %78 = vector.extract_strided_slice %75 {offsets = [0, 64], sizes = [8, 32], strides = [1, 1]} : vector<8x128xf32> to vector<8x32xf32>
    %79 = vector.extract_strided_slice %74 {offsets = [0, 96], sizes = [8, 32], strides = [1, 1]} : vector<8x128xf32> to vector<8x32xf32>
    %80 = arith.mulf %77, %63 : vector<8x32xf32>
    %81 = arith.mulf %76, %78 : vector<8x32xf32>
    %82 = arith.addf %80, %81 : vector<8x32xf32>
    %83 = math.tanh %82 : vector<8x32xf32>
    %84 = arith.mulf %79, %83 : vector<8x32xf32>
    %c24_30 = arith.constant 24 : index
    %c0_31 = arith.constant 0 : index
    %85 = vector.load %arg11[%c24_30, %c0_31] : memref<64x32xf32, #tpu.memory_space<vmem>>, vector<8x32xf32>
    tpu.vector_store %arg11[%c24_30, %c0_31], %84 {strides = array<i32>} : memref<64x32xf32, #tpu.memory_space<vmem>>, vector<8x32xf32>,
    %c32 = arith.constant 32 : index
    %c0_32 = arith.constant 0 : index
    %86 = vector.load %arg10[%c32, %c0_32] : memref<64x128xf32, #tpu.memory_space<vmem>>, vector<8x128xf32>
    %cst_33 = arith.constant dense<0.000000e+00> : vector<8x128xf32>
    %87 = tpu.matmul %84, %2, %cst_33 {dimension_numbers = #tpu.dot_dimension_numbers<[1], [0], [0], [1], [0, 0, 1, 1], [], []>} : vector<8x32xf32>, vector<32x128xf32>, vector<8x128xf32> -> vector<8x128xf32>
    %88 = arith.addf %86, %87 : vector<8x128xf32>
    %89 = arith.negf %88 : vector<8x128xf32>
    %90 = math.exp %89 : vector<8x128xf32>
    %cst_34 = arith.constant 1.000000e+00 : f32
    %91 = vector.broadcast %cst_34 : f32 to vector<8x128xf32>
    %92 = arith.addf %91, %90 : vector<8x128xf32>
    %93 = arith.divf %91, %92 : vector<8x128xf32>
    %94 = math.tanh %88 : vector<8x128xf32>
    %95 = vector.extract_strided_slice %93 {offsets = [0, 0], sizes = [8, 32], strides = [1, 1]} : vector<8x128xf32> to vector<8x32xf32>
    %96 = vector.extract_strided_slice %93 {offsets = [0, 32], sizes = [8, 32], strides = [1, 1]} : vector<8x128xf32> to vector<8x32xf32>
    %97 = vector.extract_strided_slice %94 {offsets = [0, 64], sizes = [8, 32], strides = [1, 1]} : vector<8x128xf32> to vector<8x32xf32>
    %98 = vector.extract_strided_slice %93 {offsets = [0, 96], sizes = [8, 32], strides = [1, 1]} : vector<8x128xf32> to vector<8x32xf32>
    %99 = arith.mulf %96, %82 : vector<8x32xf32>
    %100 = arith.mulf %95, %97 : vector<8x32xf32>
    %101 = arith.addf %99, %100 : vector<8x32xf32>
    %102 = math.tanh %101 : vector<8x32xf32>
    %103 = arith.mulf %98, %102 : vector<8x32xf32>
    %c32_35 = arith.constant 32 : index
    %c0_36 = arith.constant 0 : index
    %104 = vector.load %arg11[%c32_35, %c0_36] : memref<64x32xf32, #tpu.memory_space<vmem>>, vector<8x32xf32>
    tpu.vector_store %arg11[%c32_35, %c0_36], %103 {strides = array<i32>} : memref<64x32xf32, #tpu.memory_space<vmem>>, vector<8x32xf32>,
    %c40 = arith.constant 40 : index
    %c0_37 = arith.constant 0 : index
    %105 = vector.load %arg10[%c40, %c0_37] : memref<64x128xf32, #tpu.memory_space<vmem>>, vector<8x128xf32>
    %cst_38 = arith.constant dense<0.000000e+00> : vector<8x128xf32>
    %106 = tpu.matmul %103, %2, %cst_38 {dimension_numbers = #tpu.dot_dimension_numbers<[1], [0], [0], [1], [0, 0, 1, 1], [], []>} : vector<8x32xf32>, vector<32x128xf32>, vector<8x128xf32> -> vector<8x128xf32>
    %107 = arith.addf %105, %106 : vector<8x128xf32>
    %108 = arith.negf %107 : vector<8x128xf32>
    %109 = math.exp %108 : vector<8x128xf32>
    %cst_39 = arith.constant 1.000000e+00 : f32
    %110 = vector.broadcast %cst_39 : f32 to vector<8x128xf32>
    %111 = arith.addf %110, %109 : vector<8x128xf32>
    %112 = arith.divf %110, %111 : vector<8x128xf32>
    %113 = math.tanh %107 : vector<8x128xf32>
    %114 = vector.extract_strided_slice %112 {offsets = [0, 0], sizes = [8, 32], strides = [1, 1]} : vector<8x128xf32> to vector<8x32xf32>
    %115 = vector.extract_strided_slice %112 {offsets = [0, 32], sizes = [8, 32], strides = [1, 1]} : vector<8x128xf32> to vector<8x32xf32>
    %116 = vector.extract_strided_slice %113 {offsets = [0, 64], sizes = [8, 32], strides = [1, 1]} : vector<8x128xf32> to vector<8x32xf32>
    %117 = vector.extract_strided_slice %112 {offsets = [0, 96], sizes = [8, 32], strides = [1, 1]} : vector<8x128xf32> to vector<8x32xf32>
    %118 = arith.mulf %115, %101 : vector<8x32xf32>
    %119 = arith.mulf %114, %116 : vector<8x32xf32>
    %120 = arith.addf %118, %119 : vector<8x32xf32>
    %121 = math.tanh %120 : vector<8x32xf32>
    %122 = arith.mulf %117, %121 : vector<8x32xf32>
    %c40_40 = arith.constant 40 : index
    %c0_41 = arith.constant 0 : index
    %123 = vector.load %arg11[%c40_40, %c0_41] : memref<64x32xf32, #tpu.memory_space<vmem>>, vector<8x32xf32>
    tpu.vector_store %arg11[%c40_40, %c0_41], %122 {strides = array<i32>} : memref<64x32xf32, #tpu.memory_space<vmem>>, vector<8x32xf32>,
    %c48 = arith.constant 48 : index
    %c0_42 = arith.constant 0 : index
    %124 = vector.load %arg10[%c48, %c0_42] : memref<64x128xf32, #tpu.memory_space<vmem>>, vector<8x128xf32>
    %cst_43 = arith.constant dense<0.000000e+00> : vector<8x128xf32>
    %125 = tpu.matmul %122, %2, %cst_43 {dimension_numbers = #tpu.dot_dimension_numbers<[1], [0], [0], [1], [0, 0, 1, 1], [], []>} : vector<8x32xf32>, vector<32x128xf32>, vector<8x128xf32> -> vector<8x128xf32>
    %126 = arith.addf %124, %125 : vector<8x128xf32>
    %127 = arith.negf %126 : vector<8x128xf32>
    %128 = math.exp %127 : vector<8x128xf32>
    %cst_44 = arith.constant 1.000000e+00 : f32
    %129 = vector.broadcast %cst_44 : f32 to vector<8x128xf32>
    %130 = arith.addf %129, %128 : vector<8x128xf32>
    %131 = arith.divf %129, %130 : vector<8x128xf32>
    %132 = math.tanh %126 : vector<8x128xf32>
    %133 = vector.extract_strided_slice %131 {offsets = [0, 0], sizes = [8, 32], strides = [1, 1]} : vector<8x128xf32> to vector<8x32xf32>
    %134 = vector.extract_strided_slice %131 {offsets = [0, 32], sizes = [8, 32], strides = [1, 1]} : vector<8x128xf32> to vector<8x32xf32>
    %135 = vector.extract_strided_slice %132 {offsets = [0, 64], sizes = [8, 32], strides = [1, 1]} : vector<8x128xf32> to vector<8x32xf32>
    %136 = vector.extract_strided_slice %131 {offsets = [0, 96], sizes = [8, 32], strides = [1, 1]} : vector<8x128xf32> to vector<8x32xf32>
    %137 = arith.mulf %134, %120 : vector<8x32xf32>
    %138 = arith.mulf %133, %135 : vector<8x32xf32>
    %139 = arith.addf %137, %138 : vector<8x32xf32>
    %140 = math.tanh %139 : vector<8x32xf32>
    %141 = arith.mulf %136, %140 : vector<8x32xf32>
    %c48_45 = arith.constant 48 : index
    %c0_46 = arith.constant 0 : index
    %142 = vector.load %arg11[%c48_45, %c0_46] : memref<64x32xf32, #tpu.memory_space<vmem>>, vector<8x32xf32>
    tpu.vector_store %arg11[%c48_45, %c0_46], %141 {strides = array<i32>} : memref<64x32xf32, #tpu.memory_space<vmem>>, vector<8x32xf32>,
    %c56 = arith.constant 56 : index
    %c0_47 = arith.constant 0 : index
    %143 = vector.load %arg10[%c56, %c0_47] : memref<64x128xf32, #tpu.memory_space<vmem>>, vector<8x128xf32>
    %cst_48 = arith.constant dense<0.000000e+00> : vector<8x128xf32>
    %144 = tpu.matmul %141, %2, %cst_48 {dimension_numbers = #tpu.dot_dimension_numbers<[1], [0], [0], [1], [0, 0, 1, 1], [], []>} : vector<8x32xf32>, vector<32x128xf32>, vector<8x128xf32> -> vector<8x128xf32>
    %145 = arith.addf %143, %144 : vector<8x128xf32>
    %146 = arith.negf %145 : vector<8x128xf32>
    %147 = math.exp %146 : vector<8x128xf32>
    %cst_49 = arith.constant 1.000000e+00 : f32
    %148 = vector.broadcast %cst_49 : f32 to vector<8x128xf32>
    %149 = arith.addf %148, %147 : vector<8x128xf32>
    %150 = arith.divf %148, %149 : vector<8x128xf32>
    %151 = math.tanh %145 : vector<8x128xf32>
    %152 = vector.extract_strided_slice %150 {offsets = [0, 0], sizes = [8, 32], strides = [1, 1]} : vector<8x128xf32> to vector<8x32xf32>
    %153 = vector.extract_strided_slice %150 {offsets = [0, 32], sizes = [8, 32], strides = [1, 1]} : vector<8x128xf32> to vector<8x32xf32>
    %154 = vector.extract_strided_slice %151 {offsets = [0, 64], sizes = [8, 32], strides = [1, 1]} : vector<8x128xf32> to vector<8x32xf32>
    %155 = vector.extract_strided_slice %150 {offsets = [0, 96], sizes = [8, 32], strides = [1, 1]} : vector<8x128xf32> to vector<8x32xf32>
    %156 = arith.mulf %153, %139 : vector<8x32xf32>
    %157 = arith.mulf %152, %154 : vector<8x32xf32>
    %158 = arith.addf %156, %157 : vector<8x32xf32>
    %159 = math.tanh %158 : vector<8x32xf32>
    %160 = arith.mulf %155, %159 : vector<8x32xf32>
    %c56_50 = arith.constant 56 : index
    %c0_51 = arith.constant 0 : index
    %161 = vector.load %arg11[%c56_50, %c0_51] : memref<64x32xf32, #tpu.memory_space<vmem>>, vector<8x32xf32>
    tpu.vector_store %arg11[%c56_50, %c0_51], %160 {strides = array<i32>} : memref<64x32xf32, #tpu.memory_space<vmem>>, vector<8x32xf32>,
    %c0_52 = arith.constant 0 : index
    %c0_53 = arith.constant 0 : index
    %162 = vector.load %arg11[%c0_52, %c0_53] : memref<64x32xf32, #tpu.memory_space<vmem>>, vector<64x32xf32>
    %c0_54 = arith.constant 0 : index
    %c0_55 = arith.constant 0 : index
    %c0_56 = arith.constant 0 : index
    %163 = vector.load %arg4[%c0_54, %c0_55, %c0_56] : memref<4x32x128xf32, #tpu.memory_space<vmem>>, vector<1x32x128xf32>
    %164 = vector.shape_cast %163 : vector<1x32x128xf32> to vector<32x128xf32>
    %c0_57 = arith.constant 0 : index
    %c0_58 = arith.constant 0 : index
    %c0_59 = arith.constant 0 : index
    %165 = vector.load %arg5[%c0_57, %c0_58, %c0_59] : memref<4x32x128xf32, #tpu.memory_space<vmem>>, vector<1x32x128xf32>
    %166 = vector.shape_cast %165 : vector<1x32x128xf32> to vector<32x128xf32>
    %c0_60 = arith.constant 0 : index
    %c0_61 = arith.constant 0 : index
    %c0_62 = arith.constant 0 : index
    %167 = vector.load %arg6[%c0_60, %c0_61, %c0_62] : memref<4x1x128xf32, #tpu.memory_space<vmem>>, vector<1x1x128xf32>
    %168 = vector.shape_cast %167 : vector<1x1x128xf32> to vector<1x128xf32>
    %cst_63 = arith.constant dense<0.000000e+00> : vector<64x128xf32>
    %169 = tpu.matmul %162, %164, %cst_63 {dimension_numbers = #tpu.dot_dimension_numbers<[1], [0], [0], [1], [0, 0, 1, 1], [], []>} : vector<64x32xf32>, vector<32x128xf32>, vector<64x128xf32> -> vector<64x128xf32>
    %170 = vector.broadcast %168 : vector<1x128xf32> to vector<64x128xf32>
    %171 = arith.addf %169, %170 : vector<64x128xf32>
    %c0_64 = arith.constant 0 : index
    %c0_65 = arith.constant 0 : index
    %172 = vector.load %arg10[%c0_64, %c0_65] : memref<64x128xf32, #tpu.memory_space<vmem>>, vector<64x128xf32>
    tpu.vector_store %arg10[%c0_64, %c0_65], %171 {strides = array<i32>} : memref<64x128xf32, #tpu.memory_space<vmem>>, vector<64x128xf32>,
    %cst_66 = arith.constant 0.000000e+00 : f32
    %173 = vector.broadcast %cst_66 : f32 to vector<8x32xf32>
    %cst_67 = arith.constant 0.000000e+00 : f32
    %174 = vector.broadcast %cst_67 : f32 to vector<8x32xf32>
    %c0_68 = arith.constant 0 : index
    %c0_69 = arith.constant 0 : index
    %175 = vector.load %arg10[%c0_68, %c0_69] : memref<64x128xf32, #tpu.memory_space<vmem>>, vector<8x128xf32>
    %cst_70 = arith.constant dense<0.000000e+00> : vector<8x128xf32>
    %176 = tpu.matmul %173, %166, %cst_70 {dimension_numbers = #tpu.dot_dimension_numbers<[1], [0], [0], [1], [0, 0, 1, 1], [], []>} : vector<8x32xf32>, vector<32x128xf32>, vector<8x128xf32> -> vector<8x128xf32>
    %177 = arith.addf %175, %176 : vector<8x128xf32>
    %178 = arith.negf %177 : vector<8x128xf32>
    %179 = math.exp %178 : vector<8x128xf32>
    %cst_71 = arith.constant 1.000000e+00 : f32
    %180 = vector.broadcast %cst_71 : f32 to vector<8x128xf32>
    %181 = arith.addf %180, %179 : vector<8x128xf32>
    %182 = arith.divf %180, %181 : vector<8x128xf32>
    %183 = math.tanh %177 : vector<8x128xf32>
    %184 = vector.extract_strided_slice %182 {offsets = [0, 0], sizes = [8, 32], strides = [1, 1]} : vector<8x128xf32> to vector<8x32xf32>
    %185 = vector.extract_strided_slice %182 {offsets = [0, 32], sizes = [8, 32], strides = [1, 1]} : vector<8x128xf32> to vector<8x32xf32>
    %186 = vector.extract_strided_slice %183 {offsets = [0, 64], sizes = [8, 32], strides = [1, 1]} : vector<8x128xf32> to vector<8x32xf32>
    %187 = vector.extract_strided_slice %182 {offsets = [0, 96], sizes = [8, 32], strides = [1, 1]} : vector<8x128xf32> to vector<8x32xf32>
    %188 = arith.mulf %185, %174 : vector<8x32xf32>
    %189 = arith.mulf %184, %186 : vector<8x32xf32>
    %190 = arith.addf %188, %189 : vector<8x32xf32>
    %191 = math.tanh %190 : vector<8x32xf32>
    %192 = arith.mulf %187, %191 : vector<8x32xf32>
    %c0_72 = arith.constant 0 : index
    %c0_73 = arith.constant 0 : index
    %193 = vector.load %arg11[%c0_72, %c0_73] : memref<64x32xf32, #tpu.memory_space<vmem>>, vector<8x32xf32>
    tpu.vector_store %arg11[%c0_72, %c0_73], %192 {strides = array<i32>} : memref<64x32xf32, #tpu.memory_space<vmem>>, vector<8x32xf32>,
    %c8_74 = arith.constant 8 : index
    %c0_75 = arith.constant 0 : index
    %194 = vector.load %arg10[%c8_74, %c0_75] : memref<64x128xf32, #tpu.memory_space<vmem>>, vector<8x128xf32>
    %cst_76 = arith.constant dense<0.000000e+00> : vector<8x128xf32>
    %195 = tpu.matmul %192, %166, %cst_76 {dimension_numbers = #tpu.dot_dimension_numbers<[1], [0], [0], [1], [0, 0, 1, 1], [], []>} : vector<8x32xf32>, vector<32x128xf32>, vector<8x128xf32> -> vector<8x128xf32>
    %196 = arith.addf %194, %195 : vector<8x128xf32>
    %197 = arith.negf %196 : vector<8x128xf32>
    %198 = math.exp %197 : vector<8x128xf32>
    %cst_77 = arith.constant 1.000000e+00 : f32
    %199 = vector.broadcast %cst_77 : f32 to vector<8x128xf32>
    %200 = arith.addf %199, %198 : vector<8x128xf32>
    %201 = arith.divf %199, %200 : vector<8x128xf32>
    %202 = math.tanh %196 : vector<8x128xf32>
    %203 = vector.extract_strided_slice %201 {offsets = [0, 0], sizes = [8, 32], strides = [1, 1]} : vector<8x128xf32> to vector<8x32xf32>
    %204 = vector.extract_strided_slice %201 {offsets = [0, 32], sizes = [8, 32], strides = [1, 1]} : vector<8x128xf32> to vector<8x32xf32>
    %205 = vector.extract_strided_slice %202 {offsets = [0, 64], sizes = [8, 32], strides = [1, 1]} : vector<8x128xf32> to vector<8x32xf32>
    %206 = vector.extract_strided_slice %201 {offsets = [0, 96], sizes = [8, 32], strides = [1, 1]} : vector<8x128xf32> to vector<8x32xf32>
    %207 = arith.mulf %204, %190 : vector<8x32xf32>
    %208 = arith.mulf %203, %205 : vector<8x32xf32>
    %209 = arith.addf %207, %208 : vector<8x32xf32>
    %210 = math.tanh %209 : vector<8x32xf32>
    %211 = arith.mulf %206, %210 : vector<8x32xf32>
    %c8_78 = arith.constant 8 : index
    %c0_79 = arith.constant 0 : index
    %212 = vector.load %arg11[%c8_78, %c0_79] : memref<64x32xf32, #tpu.memory_space<vmem>>, vector<8x32xf32>
    tpu.vector_store %arg11[%c8_78, %c0_79], %211 {strides = array<i32>} : memref<64x32xf32, #tpu.memory_space<vmem>>, vector<8x32xf32>,
    %c16_80 = arith.constant 16 : index
    %c0_81 = arith.constant 0 : index
    %213 = vector.load %arg10[%c16_80, %c0_81] : memref<64x128xf32, #tpu.memory_space<vmem>>, vector<8x128xf32>
    %cst_82 = arith.constant dense<0.000000e+00> : vector<8x128xf32>
    %214 = tpu.matmul %211, %166, %cst_82 {dimension_numbers = #tpu.dot_dimension_numbers<[1], [0], [0], [1], [0, 0, 1, 1], [], []>} : vector<8x32xf32>, vector<32x128xf32>, vector<8x128xf32> -> vector<8x128xf32>
    %215 = arith.addf %213, %214 : vector<8x128xf32>
    %216 = arith.negf %215 : vector<8x128xf32>
    %217 = math.exp %216 : vector<8x128xf32>
    %cst_83 = arith.constant 1.000000e+00 : f32
    %218 = vector.broadcast %cst_83 : f32 to vector<8x128xf32>
    %219 = arith.addf %218, %217 : vector<8x128xf32>
    %220 = arith.divf %218, %219 : vector<8x128xf32>
    %221 = math.tanh %215 : vector<8x128xf32>
    %222 = vector.extract_strided_slice %220 {offsets = [0, 0], sizes = [8, 32], strides = [1, 1]} : vector<8x128xf32> to vector<8x32xf32>
    %223 = vector.extract_strided_slice %220 {offsets = [0, 32], sizes = [8, 32], strides = [1, 1]} : vector<8x128xf32> to vector<8x32xf32>
    %224 = vector.extract_strided_slice %221 {offsets = [0, 64], sizes = [8, 32], strides = [1, 1]} : vector<8x128xf32> to vector<8x32xf32>
    %225 = vector.extract_strided_slice %220 {offsets = [0, 96], sizes = [8, 32], strides = [1, 1]} : vector<8x128xf32> to vector<8x32xf32>
    %226 = arith.mulf %223, %209 : vector<8x32xf32>
    %227 = arith.mulf %222, %224 : vector<8x32xf32>
    %228 = arith.addf %226, %227 : vector<8x32xf32>
    %229 = math.tanh %228 : vector<8x32xf32>
    %230 = arith.mulf %225, %229 : vector<8x32xf32>
    %c16_84 = arith.constant 16 : index
    %c0_85 = arith.constant 0 : index
    %231 = vector.load %arg11[%c16_84, %c0_85] : memref<64x32xf32, #tpu.memory_space<vmem>>, vector<8x32xf32>
    tpu.vector_store %arg11[%c16_84, %c0_85], %230 {strides = array<i32>} : memref<64x32xf32, #tpu.memory_space<vmem>>, vector<8x32xf32>,
    %c24_86 = arith.constant 24 : index
    %c0_87 = arith.constant 0 : index
    %232 = vector.load %arg10[%c24_86, %c0_87] : memref<64x128xf32, #tpu.memory_space<vmem>>, vector<8x128xf32>
    %cst_88 = arith.constant dense<0.000000e+00> : vector<8x128xf32>
    %233 = tpu.matmul %230, %166, %cst_88 {dimension_numbers = #tpu.dot_dimension_numbers<[1], [0], [0], [1], [0, 0, 1, 1], [], []>} : vector<8x32xf32>, vector<32x128xf32>, vector<8x128xf32> -> vector<8x128xf32>
    %234 = arith.addf %232, %233 : vector<8x128xf32>
    %235 = arith.negf %234 : vector<8x128xf32>
    %236 = math.exp %235 : vector<8x128xf32>
    %cst_89 = arith.constant 1.000000e+00 : f32
    %237 = vector.broadcast %cst_89 : f32 to vector<8x128xf32>
    %238 = arith.addf %237, %236 : vector<8x128xf32>
    %239 = arith.divf %237, %238 : vector<8x128xf32>
    %240 = math.tanh %234 : vector<8x128xf32>
    %241 = vector.extract_strided_slice %239 {offsets = [0, 0], sizes = [8, 32], strides = [1, 1]} : vector<8x128xf32> to vector<8x32xf32>
    %242 = vector.extract_strided_slice %239 {offsets = [0, 32], sizes = [8, 32], strides = [1, 1]} : vector<8x128xf32> to vector<8x32xf32>
    %243 = vector.extract_strided_slice %240 {offsets = [0, 64], sizes = [8, 32], strides = [1, 1]} : vector<8x128xf32> to vector<8x32xf32>
    %244 = vector.extract_strided_slice %239 {offsets = [0, 96], sizes = [8, 32], strides = [1, 1]} : vector<8x128xf32> to vector<8x32xf32>
    %245 = arith.mulf %242, %228 : vector<8x32xf32>
    %246 = arith.mulf %241, %243 : vector<8x32xf32>
    %247 = arith.addf %245, %246 : vector<8x32xf32>
    %248 = math.tanh %247 : vector<8x32xf32>
    %249 = arith.mulf %244, %248 : vector<8x32xf32>
    %c24_90 = arith.constant 24 : index
    %c0_91 = arith.constant 0 : index
    %250 = vector.load %arg11[%c24_90, %c0_91] : memref<64x32xf32, #tpu.memory_space<vmem>>, vector<8x32xf32>
    tpu.vector_store %arg11[%c24_90, %c0_91], %249 {strides = array<i32>} : memref<64x32xf32, #tpu.memory_space<vmem>>, vector<8x32xf32>,
    %c32_92 = arith.constant 32 : index
    %c0_93 = arith.constant 0 : index
    %251 = vector.load %arg10[%c32_92, %c0_93] : memref<64x128xf32, #tpu.memory_space<vmem>>, vector<8x128xf32>
    %cst_94 = arith.constant dense<0.000000e+00> : vector<8x128xf32>
    %252 = tpu.matmul %249, %166, %cst_94 {dimension_numbers = #tpu.dot_dimension_numbers<[1], [0], [0], [1], [0, 0, 1, 1], [], []>} : vector<8x32xf32>, vector<32x128xf32>, vector<8x128xf32> -> vector<8x128xf32>
    %253 = arith.addf %251, %252 : vector<8x128xf32>
    %254 = arith.negf %253 : vector<8x128xf32>
    %255 = math.exp %254 : vector<8x128xf32>
    %cst_95 = arith.constant 1.000000e+00 : f32
    %256 = vector.broadcast %cst_95 : f32 to vector<8x128xf32>
    %257 = arith.addf %256, %255 : vector<8x128xf32>
    %258 = arith.divf %256, %257 : vector<8x128xf32>
    %259 = math.tanh %253 : vector<8x128xf32>
    %260 = vector.extract_strided_slice %258 {offsets = [0, 0], sizes = [8, 32], strides = [1, 1]} : vector<8x128xf32> to vector<8x32xf32>
    %261 = vector.extract_strided_slice %258 {offsets = [0, 32], sizes = [8, 32], strides = [1, 1]} : vector<8x128xf32> to vector<8x32xf32>
    %262 = vector.extract_strided_slice %259 {offsets = [0, 64], sizes = [8, 32], strides = [1, 1]} : vector<8x128xf32> to vector<8x32xf32>
    %263 = vector.extract_strided_slice %258 {offsets = [0, 96], sizes = [8, 32], strides = [1, 1]} : vector<8x128xf32> to vector<8x32xf32>
    %264 = arith.mulf %261, %247 : vector<8x32xf32>
    %265 = arith.mulf %260, %262 : vector<8x32xf32>
    %266 = arith.addf %264, %265 : vector<8x32xf32>
    %267 = math.tanh %266 : vector<8x32xf32>
    %268 = arith.mulf %263, %267 : vector<8x32xf32>
    %c32_96 = arith.constant 32 : index
    %c0_97 = arith.constant 0 : index
    %269 = vector.load %arg11[%c32_96, %c0_97] : memref<64x32xf32, #tpu.memory_space<vmem>>, vector<8x32xf32>
    tpu.vector_store %arg11[%c32_96, %c0_97], %268 {strides = array<i32>} : memref<64x32xf32, #tpu.memory_space<vmem>>, vector<8x32xf32>,
    %c40_98 = arith.constant 40 : index
    %c0_99 = arith.constant 0 : index
    %270 = vector.load %arg10[%c40_98, %c0_99] : memref<64x128xf32, #tpu.memory_space<vmem>>, vector<8x128xf32>
    %cst_100 = arith.constant dense<0.000000e+00> : vector<8x128xf32>
    %271 = tpu.matmul %268, %166, %cst_100 {dimension_numbers = #tpu.dot_dimension_numbers<[1], [0], [0], [1], [0, 0, 1, 1], [], []>} : vector<8x32xf32>, vector<32x128xf32>, vector<8x128xf32> -> vector<8x128xf32>
    %272 = arith.addf %270, %271 : vector<8x128xf32>
    %273 = arith.negf %272 : vector<8x128xf32>
    %274 = math.exp %273 : vector<8x128xf32>
    %cst_101 = arith.constant 1.000000e+00 : f32
    %275 = vector.broadcast %cst_101 : f32 to vector<8x128xf32>
    %276 = arith.addf %275, %274 : vector<8x128xf32>
    %277 = arith.divf %275, %276 : vector<8x128xf32>
    %278 = math.tanh %272 : vector<8x128xf32>
    %279 = vector.extract_strided_slice %277 {offsets = [0, 0], sizes = [8, 32], strides = [1, 1]} : vector<8x128xf32> to vector<8x32xf32>
    %280 = vector.extract_strided_slice %277 {offsets = [0, 32], sizes = [8, 32], strides = [1, 1]} : vector<8x128xf32> to vector<8x32xf32>
    %281 = vector.extract_strided_slice %278 {offsets = [0, 64], sizes = [8, 32], strides = [1, 1]} : vector<8x128xf32> to vector<8x32xf32>
    %282 = vector.extract_strided_slice %277 {offsets = [0, 96], sizes = [8, 32], strides = [1, 1]} : vector<8x128xf32> to vector<8x32xf32>
    %283 = arith.mulf %280, %266 : vector<8x32xf32>
    %284 = arith.mulf %279, %281 : vector<8x32xf32>
    %285 = arith.addf %283, %284 : vector<8x32xf32>
    %286 = math.tanh %285 : vector<8x32xf32>
    %287 = arith.mulf %282, %286 : vector<8x32xf32>
    %c40_102 = arith.constant 40 : index
    %c0_103 = arith.constant 0 : index
    %288 = vector.load %arg11[%c40_102, %c0_103] : memref<64x32xf32, #tpu.memory_space<vmem>>, vector<8x32xf32>
    tpu.vector_store %arg11[%c40_102, %c0_103], %287 {strides = array<i32>} : memref<64x32xf32, #tpu.memory_space<vmem>>, vector<8x32xf32>,
    %c48_104 = arith.constant 48 : index
    %c0_105 = arith.constant 0 : index
    %289 = vector.load %arg10[%c48_104, %c0_105] : memref<64x128xf32, #tpu.memory_space<vmem>>, vector<8x128xf32>
    %cst_106 = arith.constant dense<0.000000e+00> : vector<8x128xf32>
    %290 = tpu.matmul %287, %166, %cst_106 {dimension_numbers = #tpu.dot_dimension_numbers<[1], [0], [0], [1], [0, 0, 1, 1], [], []>} : vector<8x32xf32>, vector<32x128xf32>, vector<8x128xf32> -> vector<8x128xf32>
    %291 = arith.addf %289, %290 : vector<8x128xf32>
    %292 = arith.negf %291 : vector<8x128xf32>
    %293 = math.exp %292 : vector<8x128xf32>
    %cst_107 = arith.constant 1.000000e+00 : f32
    %294 = vector.broadcast %cst_107 : f32 to vector<8x128xf32>
    %295 = arith.addf %294, %293 : vector<8x128xf32>
    %296 = arith.divf %294, %295 : vector<8x128xf32>
    %297 = math.tanh %291 : vector<8x128xf32>
    %298 = vector.extract_strided_slice %296 {offsets = [0, 0], sizes = [8, 32], strides = [1, 1]} : vector<8x128xf32> to vector<8x32xf32>
    %299 = vector.extract_strided_slice %296 {offsets = [0, 32], sizes = [8, 32], strides = [1, 1]} : vector<8x128xf32> to vector<8x32xf32>
    %300 = vector.extract_strided_slice %297 {offsets = [0, 64], sizes = [8, 32], strides = [1, 1]} : vector<8x128xf32> to vector<8x32xf32>
    %301 = vector.extract_strided_slice %296 {offsets = [0, 96], sizes = [8, 32], strides = [1, 1]} : vector<8x128xf32> to vector<8x32xf32>
    %302 = arith.mulf %299, %285 : vector<8x32xf32>
    %303 = arith.mulf %298, %300 : vector<8x32xf32>
    %304 = arith.addf %302, %303 : vector<8x32xf32>
    %305 = math.tanh %304 : vector<8x32xf32>
    %306 = arith.mulf %301, %305 : vector<8x32xf32>
    %c48_108 = arith.constant 48 : index
    %c0_109 = arith.constant 0 : index
    %307 = vector.load %arg11[%c48_108, %c0_109] : memref<64x32xf32, #tpu.memory_space<vmem>>, vector<8x32xf32>
    tpu.vector_store %arg11[%c48_108, %c0_109], %306 {strides = array<i32>} : memref<64x32xf32, #tpu.memory_space<vmem>>, vector<8x32xf32>,
    %c56_110 = arith.constant 56 : index
    %c0_111 = arith.constant 0 : index
    %308 = vector.load %arg10[%c56_110, %c0_111] : memref<64x128xf32, #tpu.memory_space<vmem>>, vector<8x128xf32>
    %cst_112 = arith.constant dense<0.000000e+00> : vector<8x128xf32>
    %309 = tpu.matmul %306, %166, %cst_112 {dimension_numbers = #tpu.dot_dimension_numbers<[1], [0], [0], [1], [0, 0, 1, 1], [], []>} : vector<8x32xf32>, vector<32x128xf32>, vector<8x128xf32> -> vector<8x128xf32>
    %310 = arith.addf %308, %309 : vector<8x128xf32>
    %311 = arith.negf %310 : vector<8x128xf32>
    %312 = math.exp %311 : vector<8x128xf32>
    %cst_113 = arith.constant 1.000000e+00 : f32
    %313 = vector.broadcast %cst_113 : f32 to vector<8x128xf32>
    %314 = arith.addf %313, %312 : vector<8x128xf32>
    %315 = arith.divf %313, %314 : vector<8x128xf32>
    %316 = math.tanh %310 : vector<8x128xf32>
    %317 = vector.extract_strided_slice %315 {offsets = [0, 0], sizes = [8, 32], strides = [1, 1]} : vector<8x128xf32> to vector<8x32xf32>
    %318 = vector.extract_strided_slice %315 {offsets = [0, 32], sizes = [8, 32], strides = [1, 1]} : vector<8x128xf32> to vector<8x32xf32>
    %319 = vector.extract_strided_slice %316 {offsets = [0, 64], sizes = [8, 32], strides = [1, 1]} : vector<8x128xf32> to vector<8x32xf32>
    %320 = vector.extract_strided_slice %315 {offsets = [0, 96], sizes = [8, 32], strides = [1, 1]} : vector<8x128xf32> to vector<8x32xf32>
    %321 = arith.mulf %318, %304 : vector<8x32xf32>
    %322 = arith.mulf %317, %319 : vector<8x32xf32>
    %323 = arith.addf %321, %322 : vector<8x32xf32>
    %324 = math.tanh %323 : vector<8x32xf32>
    %325 = arith.mulf %320, %324 : vector<8x32xf32>
    %c56_114 = arith.constant 56 : index
    %c0_115 = arith.constant 0 : index
    %326 = vector.load %arg11[%c56_114, %c0_115] : memref<64x32xf32, #tpu.memory_space<vmem>>, vector<8x32xf32>
    tpu.vector_store %arg11[%c56_114, %c0_115], %325 {strides = array<i32>} : memref<64x32xf32, #tpu.memory_space<vmem>>, vector<8x32xf32>,
    %c0_116 = arith.constant 0 : index
    %c0_117 = arith.constant 0 : index
    %327 = vector.load %arg11[%c0_116, %c0_117] : memref<64x32xf32, #tpu.memory_space<vmem>>, vector<64x32xf32>
    %c1 = arith.constant 1 : index
    %c0_118 = arith.constant 0 : index
    %c0_119 = arith.constant 0 : index
    %328 = vector.load %arg4[%c1, %c0_118, %c0_119] : memref<4x32x128xf32, #tpu.memory_space<vmem>>, vector<1x32x128xf32>
    %329 = vector.shape_cast %328 : vector<1x32x128xf32> to vector<32x128xf32>
    %c1_120 = arith.constant 1 : index
    %c0_121 = arith.constant 0 : index
    %c0_122 = arith.constant 0 : index
    %330 = vector.load %arg5[%c1_120, %c0_121, %c0_122] : memref<4x32x128xf32, #tpu.memory_space<vmem>>, vector<1x32x128xf32>
    %331 = vector.shape_cast %330 : vector<1x32x128xf32> to vector<32x128xf32>
    %c1_123 = arith.constant 1 : index
    %c0_124 = arith.constant 0 : index
    %c0_125 = arith.constant 0 : index
    %332 = vector.load %arg6[%c1_123, %c0_124, %c0_125] : memref<4x1x128xf32, #tpu.memory_space<vmem>>, vector<1x1x128xf32>
    %333 = vector.shape_cast %332 : vector<1x1x128xf32> to vector<1x128xf32>
    %cst_126 = arith.constant dense<0.000000e+00> : vector<64x128xf32>
    %334 = tpu.matmul %327, %329, %cst_126 {dimension_numbers = #tpu.dot_dimension_numbers<[1], [0], [0], [1], [0, 0, 1, 1], [], []>} : vector<64x32xf32>, vector<32x128xf32>, vector<64x128xf32> -> vector<64x128xf32>
    %335 = vector.broadcast %333 : vector<1x128xf32> to vector<64x128xf32>
    %336 = arith.addf %334, %335 : vector<64x128xf32>
    %c0_127 = arith.constant 0 : index
    %c0_128 = arith.constant 0 : index
    %337 = vector.load %arg10[%c0_127, %c0_128] : memref<64x128xf32, #tpu.memory_space<vmem>>, vector<64x128xf32>
    tpu.vector_store %arg10[%c0_127, %c0_128], %336 {strides = array<i32>} : memref<64x128xf32, #tpu.memory_space<vmem>>, vector<64x128xf32>,
    %cst_129 = arith.constant 0.000000e+00 : f32
    %338 = vector.broadcast %cst_129 : f32 to vector<8x32xf32>
    %cst_130 = arith.constant 0.000000e+00 : f32
    %339 = vector.broadcast %cst_130 : f32 to vector<8x32xf32>
    %c0_131 = arith.constant 0 : index
    %c0_132 = arith.constant 0 : index
    %340 = vector.load %arg10[%c0_131, %c0_132] : memref<64x128xf32, #tpu.memory_space<vmem>>, vector<8x128xf32>
    %cst_133 = arith.constant dense<0.000000e+00> : vector<8x128xf32>
    %341 = tpu.matmul %338, %331, %cst_133 {dimension_numbers = #tpu.dot_dimension_numbers<[1], [0], [0], [1], [0, 0, 1, 1], [], []>} : vector<8x32xf32>, vector<32x128xf32>, vector<8x128xf32> -> vector<8x128xf32>
    %342 = arith.addf %340, %341 : vector<8x128xf32>
    %343 = arith.negf %342 : vector<8x128xf32>
    %344 = math.exp %343 : vector<8x128xf32>
    %cst_134 = arith.constant 1.000000e+00 : f32
    %345 = vector.broadcast %cst_134 : f32 to vector<8x128xf32>
    %346 = arith.addf %345, %344 : vector<8x128xf32>
    %347 = arith.divf %345, %346 : vector<8x128xf32>
    %348 = math.tanh %342 : vector<8x128xf32>
    %349 = vector.extract_strided_slice %347 {offsets = [0, 0], sizes = [8, 32], strides = [1, 1]} : vector<8x128xf32> to vector<8x32xf32>
    %350 = vector.extract_strided_slice %347 {offsets = [0, 32], sizes = [8, 32], strides = [1, 1]} : vector<8x128xf32> to vector<8x32xf32>
    %351 = vector.extract_strided_slice %348 {offsets = [0, 64], sizes = [8, 32], strides = [1, 1]} : vector<8x128xf32> to vector<8x32xf32>
    %352 = vector.extract_strided_slice %347 {offsets = [0, 96], sizes = [8, 32], strides = [1, 1]} : vector<8x128xf32> to vector<8x32xf32>
    %353 = arith.mulf %350, %339 : vector<8x32xf32>
    %354 = arith.mulf %349, %351 : vector<8x32xf32>
    %355 = arith.addf %353, %354 : vector<8x32xf32>
    %356 = math.tanh %355 : vector<8x32xf32>
    %357 = arith.mulf %352, %356 : vector<8x32xf32>
    %c0_135 = arith.constant 0 : index
    %c0_136 = arith.constant 0 : index
    %358 = vector.load %arg11[%c0_135, %c0_136] : memref<64x32xf32, #tpu.memory_space<vmem>>, vector<8x32xf32>
    tpu.vector_store %arg11[%c0_135, %c0_136], %357 {strides = array<i32>} : memref<64x32xf32, #tpu.memory_space<vmem>>, vector<8x32xf32>,
    %c8_137 = arith.constant 8 : index
    %c0_138 = arith.constant 0 : index
    %359 = vector.load %arg10[%c8_137, %c0_138] : memref<64x128xf32, #tpu.memory_space<vmem>>, vector<8x128xf32>
    %cst_139 = arith.constant dense<0.000000e+00> : vector<8x128xf32>
    %360 = tpu.matmul %357, %331, %cst_139 {dimension_numbers = #tpu.dot_dimension_numbers<[1], [0], [0], [1], [0, 0, 1, 1], [], []>} : vector<8x32xf32>, vector<32x128xf32>, vector<8x128xf32> -> vector<8x128xf32>
    %361 = arith.addf %359, %360 : vector<8x128xf32>
    %362 = arith.negf %361 : vector<8x128xf32>
    %363 = math.exp %362 : vector<8x128xf32>
    %cst_140 = arith.constant 1.000000e+00 : f32
    %364 = vector.broadcast %cst_140 : f32 to vector<8x128xf32>
    %365 = arith.addf %364, %363 : vector<8x128xf32>
    %366 = arith.divf %364, %365 : vector<8x128xf32>
    %367 = math.tanh %361 : vector<8x128xf32>
    %368 = vector.extract_strided_slice %366 {offsets = [0, 0], sizes = [8, 32], strides = [1, 1]} : vector<8x128xf32> to vector<8x32xf32>
    %369 = vector.extract_strided_slice %366 {offsets = [0, 32], sizes = [8, 32], strides = [1, 1]} : vector<8x128xf32> to vector<8x32xf32>
    %370 = vector.extract_strided_slice %367 {offsets = [0, 64], sizes = [8, 32], strides = [1, 1]} : vector<8x128xf32> to vector<8x32xf32>
    %371 = vector.extract_strided_slice %366 {offsets = [0, 96], sizes = [8, 32], strides = [1, 1]} : vector<8x128xf32> to vector<8x32xf32>
    %372 = arith.mulf %369, %355 : vector<8x32xf32>
    %373 = arith.mulf %368, %370 : vector<8x32xf32>
    %374 = arith.addf %372, %373 : vector<8x32xf32>
    %375 = math.tanh %374 : vector<8x32xf32>
    %376 = arith.mulf %371, %375 : vector<8x32xf32>
    %c8_141 = arith.constant 8 : index
    %c0_142 = arith.constant 0 : index
    %377 = vector.load %arg11[%c8_141, %c0_142] : memref<64x32xf32, #tpu.memory_space<vmem>>, vector<8x32xf32>
    tpu.vector_store %arg11[%c8_141, %c0_142], %376 {strides = array<i32>} : memref<64x32xf32, #tpu.memory_space<vmem>>, vector<8x32xf32>,
    %c16_143 = arith.constant 16 : index
    %c0_144 = arith.constant 0 : index
    %378 = vector.load %arg10[%c16_143, %c0_144] : memref<64x128xf32, #tpu.memory_space<vmem>>, vector<8x128xf32>
    %cst_145 = arith.constant dense<0.000000e+00> : vector<8x128xf32>
    %379 = tpu.matmul %376, %331, %cst_145 {dimension_numbers = #tpu.dot_dimension_numbers<[1], [0], [0], [1], [0, 0, 1, 1], [], []>} : vector<8x32xf32>, vector<32x128xf32>, vector<8x128xf32> -> vector<8x128xf32>
    %380 = arith.addf %378, %379 : vector<8x128xf32>
    %381 = arith.negf %380 : vector<8x128xf32>
    %382 = math.exp %381 : vector<8x128xf32>
    %cst_146 = arith.constant 1.000000e+00 : f32
    %383 = vector.broadcast %cst_146 : f32 to vector<8x128xf32>
    %384 = arith.addf %383, %382 : vector<8x128xf32>
    %385 = arith.divf %383, %384 : vector<8x128xf32>
    %386 = math.tanh %380 : vector<8x128xf32>
    %387 = vector.extract_strided_slice %385 {offsets = [0, 0], sizes = [8, 32], strides = [1, 1]} : vector<8x128xf32> to vector<8x32xf32>
    %388 = vector.extract_strided_slice %385 {offsets = [0, 32], sizes = [8, 32], strides = [1, 1]} : vector<8x128xf32> to vector<8x32xf32>
    %389 = vector.extract_strided_slice %386 {offsets = [0, 64], sizes = [8, 32], strides = [1, 1]} : vector<8x128xf32> to vector<8x32xf32>
    %390 = vector.extract_strided_slice %385 {offsets = [0, 96], sizes = [8, 32], strides = [1, 1]} : vector<8x128xf32> to vector<8x32xf32>
    %391 = arith.mulf %388, %374 : vector<8x32xf32>
    %392 = arith.mulf %387, %389 : vector<8x32xf32>
    %393 = arith.addf %391, %392 : vector<8x32xf32>
    %394 = math.tanh %393 : vector<8x32xf32>
    %395 = arith.mulf %390, %394 : vector<8x32xf32>
    %c16_147 = arith.constant 16 : index
    %c0_148 = arith.constant 0 : index
    %396 = vector.load %arg11[%c16_147, %c0_148] : memref<64x32xf32, #tpu.memory_space<vmem>>, vector<8x32xf32>
    tpu.vector_store %arg11[%c16_147, %c0_148], %395 {strides = array<i32>} : memref<64x32xf32, #tpu.memory_space<vmem>>, vector<8x32xf32>,
    %c24_149 = arith.constant 24 : index
    %c0_150 = arith.constant 0 : index
    %397 = vector.load %arg10[%c24_149, %c0_150] : memref<64x128xf32, #tpu.memory_space<vmem>>, vector<8x128xf32>
    %cst_151 = arith.constant dense<0.000000e+00> : vector<8x128xf32>
    %398 = tpu.matmul %395, %331, %cst_151 {dimension_numbers = #tpu.dot_dimension_numbers<[1], [0], [0], [1], [0, 0, 1, 1], [], []>} : vector<8x32xf32>, vector<32x128xf32>, vector<8x128xf32> -> vector<8x128xf32>
    %399 = arith.addf %397, %398 : vector<8x128xf32>
    %400 = arith.negf %399 : vector<8x128xf32>
    %401 = math.exp %400 : vector<8x128xf32>
    %cst_152 = arith.constant 1.000000e+00 : f32
    %402 = vector.broadcast %cst_152 : f32 to vector<8x128xf32>
    %403 = arith.addf %402, %401 : vector<8x128xf32>
    %404 = arith.divf %402, %403 : vector<8x128xf32>
    %405 = math.tanh %399 : vector<8x128xf32>
    %406 = vector.extract_strided_slice %404 {offsets = [0, 0], sizes = [8, 32], strides = [1, 1]} : vector<8x128xf32> to vector<8x32xf32>
    %407 = vector.extract_strided_slice %404 {offsets = [0, 32], sizes = [8, 32], strides = [1, 1]} : vector<8x128xf32> to vector<8x32xf32>
    %408 = vector.extract_strided_slice %405 {offsets = [0, 64], sizes = [8, 32], strides = [1, 1]} : vector<8x128xf32> to vector<8x32xf32>
    %409 = vector.extract_strided_slice %404 {offsets = [0, 96], sizes = [8, 32], strides = [1, 1]} : vector<8x128xf32> to vector<8x32xf32>
    %410 = arith.mulf %407, %393 : vector<8x32xf32>
    %411 = arith.mulf %406, %408 : vector<8x32xf32>
    %412 = arith.addf %410, %411 : vector<8x32xf32>
    %413 = math.tanh %412 : vector<8x32xf32>
    %414 = arith.mulf %409, %413 : vector<8x32xf32>
    %c24_153 = arith.constant 24 : index
    %c0_154 = arith.constant 0 : index
    %415 = vector.load %arg11[%c24_153, %c0_154] : memref<64x32xf32, #tpu.memory_space<vmem>>, vector<8x32xf32>
    tpu.vector_store %arg11[%c24_153, %c0_154], %414 {strides = array<i32>} : memref<64x32xf32, #tpu.memory_space<vmem>>, vector<8x32xf32>,
    %c32_155 = arith.constant 32 : index
    %c0_156 = arith.constant 0 : index
    %416 = vector.load %arg10[%c32_155, %c0_156] : memref<64x128xf32, #tpu.memory_space<vmem>>, vector<8x128xf32>
    %cst_157 = arith.constant dense<0.000000e+00> : vector<8x128xf32>
    %417 = tpu.matmul %414, %331, %cst_157 {dimension_numbers = #tpu.dot_dimension_numbers<[1], [0], [0], [1], [0, 0, 1, 1], [], []>} : vector<8x32xf32>, vector<32x128xf32>, vector<8x128xf32> -> vector<8x128xf32>
    %418 = arith.addf %416, %417 : vector<8x128xf32>
    %419 = arith.negf %418 : vector<8x128xf32>
    %420 = math.exp %419 : vector<8x128xf32>
    %cst_158 = arith.constant 1.000000e+00 : f32
    %421 = vector.broadcast %cst_158 : f32 to vector<8x128xf32>
    %422 = arith.addf %421, %420 : vector<8x128xf32>
    %423 = arith.divf %421, %422 : vector<8x128xf32>
    %424 = math.tanh %418 : vector<8x128xf32>
    %425 = vector.extract_strided_slice %423 {offsets = [0, 0], sizes = [8, 32], strides = [1, 1]} : vector<8x128xf32> to vector<8x32xf32>
    %426 = vector.extract_strided_slice %423 {offsets = [0, 32], sizes = [8, 32], strides = [1, 1]} : vector<8x128xf32> to vector<8x32xf32>
    %427 = vector.extract_strided_slice %424 {offsets = [0, 64], sizes = [8, 32], strides = [1, 1]} : vector<8x128xf32> to vector<8x32xf32>
    %428 = vector.extract_strided_slice %423 {offsets = [0, 96], sizes = [8, 32], strides = [1, 1]} : vector<8x128xf32> to vector<8x32xf32>
    %429 = arith.mulf %426, %412 : vector<8x32xf32>
    %430 = arith.mulf %425, %427 : vector<8x32xf32>
    %431 = arith.addf %429, %430 : vector<8x32xf32>
    %432 = math.tanh %431 : vector<8x32xf32>
    %433 = arith.mulf %428, %432 : vector<8x32xf32>
    %c32_159 = arith.constant 32 : index
    %c0_160 = arith.constant 0 : index
    %434 = vector.load %arg11[%c32_159, %c0_160] : memref<64x32xf32, #tpu.memory_space<vmem>>, vector<8x32xf32>
    tpu.vector_store %arg11[%c32_159, %c0_160], %433 {strides = array<i32>} : memref<64x32xf32, #tpu.memory_space<vmem>>, vector<8x32xf32>,
    %c40_161 = arith.constant 40 : index
    %c0_162 = arith.constant 0 : index
    %435 = vector.load %arg10[%c40_161, %c0_162] : memref<64x128xf32, #tpu.memory_space<vmem>>, vector<8x128xf32>
    %cst_163 = arith.constant dense<0.000000e+00> : vector<8x128xf32>
    %436 = tpu.matmul %433, %331, %cst_163 {dimension_numbers = #tpu.dot_dimension_numbers<[1], [0], [0], [1], [0, 0, 1, 1], [], []>} : vector<8x32xf32>, vector<32x128xf32>, vector<8x128xf32> -> vector<8x128xf32>
    %437 = arith.addf %435, %436 : vector<8x128xf32>
    %438 = arith.negf %437 : vector<8x128xf32>
    %439 = math.exp %438 : vector<8x128xf32>
    %cst_164 = arith.constant 1.000000e+00 : f32
    %440 = vector.broadcast %cst_164 : f32 to vector<8x128xf32>
    %441 = arith.addf %440, %439 : vector<8x128xf32>
    %442 = arith.divf %440, %441 : vector<8x128xf32>
    %443 = math.tanh %437 : vector<8x128xf32>
    %444 = vector.extract_strided_slice %442 {offsets = [0, 0], sizes = [8, 32], strides = [1, 1]} : vector<8x128xf32> to vector<8x32xf32>
    %445 = vector.extract_strided_slice %442 {offsets = [0, 32], sizes = [8, 32], strides = [1, 1]} : vector<8x128xf32> to vector<8x32xf32>
    %446 = vector.extract_strided_slice %443 {offsets = [0, 64], sizes = [8, 32], strides = [1, 1]} : vector<8x128xf32> to vector<8x32xf32>
    %447 = vector.extract_strided_slice %442 {offsets = [0, 96], sizes = [8, 32], strides = [1, 1]} : vector<8x128xf32> to vector<8x32xf32>
    %448 = arith.mulf %445, %431 : vector<8x32xf32>
    %449 = arith.mulf %444, %446 : vector<8x32xf32>
    %450 = arith.addf %448, %449 : vector<8x32xf32>
    %451 = math.tanh %450 : vector<8x32xf32>
    %452 = arith.mulf %447, %451 : vector<8x32xf32>
    %c40_165 = arith.constant 40 : index
    %c0_166 = arith.constant 0 : index
    %453 = vector.load %arg11[%c40_165, %c0_166] : memref<64x32xf32, #tpu.memory_space<vmem>>, vector<8x32xf32>
    tpu.vector_store %arg11[%c40_165, %c0_166], %452 {strides = array<i32>} : memref<64x32xf32, #tpu.memory_space<vmem>>, vector<8x32xf32>,
    %c48_167 = arith.constant 48 : index
    %c0_168 = arith.constant 0 : index
    %454 = vector.load %arg10[%c48_167, %c0_168] : memref<64x128xf32, #tpu.memory_space<vmem>>, vector<8x128xf32>
    %cst_169 = arith.constant dense<0.000000e+00> : vector<8x128xf32>
    %455 = tpu.matmul %452, %331, %cst_169 {dimension_numbers = #tpu.dot_dimension_numbers<[1], [0], [0], [1], [0, 0, 1, 1], [], []>} : vector<8x32xf32>, vector<32x128xf32>, vector<8x128xf32> -> vector<8x128xf32>
    %456 = arith.addf %454, %455 : vector<8x128xf32>
    %457 = arith.negf %456 : vector<8x128xf32>
    %458 = math.exp %457 : vector<8x128xf32>
    %cst_170 = arith.constant 1.000000e+00 : f32
    %459 = vector.broadcast %cst_170 : f32 to vector<8x128xf32>
    %460 = arith.addf %459, %458 : vector<8x128xf32>
    %461 = arith.divf %459, %460 : vector<8x128xf32>
    %462 = math.tanh %456 : vector<8x128xf32>
    %463 = vector.extract_strided_slice %461 {offsets = [0, 0], sizes = [8, 32], strides = [1, 1]} : vector<8x128xf32> to vector<8x32xf32>
    %464 = vector.extract_strided_slice %461 {offsets = [0, 32], sizes = [8, 32], strides = [1, 1]} : vector<8x128xf32> to vector<8x32xf32>
    %465 = vector.extract_strided_slice %462 {offsets = [0, 64], sizes = [8, 32], strides = [1, 1]} : vector<8x128xf32> to vector<8x32xf32>
    %466 = vector.extract_strided_slice %461 {offsets = [0, 96], sizes = [8, 32], strides = [1, 1]} : vector<8x128xf32> to vector<8x32xf32>
    %467 = arith.mulf %464, %450 : vector<8x32xf32>
    %468 = arith.mulf %463, %465 : vector<8x32xf32>
    %469 = arith.addf %467, %468 : vector<8x32xf32>
    %470 = math.tanh %469 : vector<8x32xf32>
    %471 = arith.mulf %466, %470 : vector<8x32xf32>
    %c48_171 = arith.constant 48 : index
    %c0_172 = arith.constant 0 : index
    %472 = vector.load %arg11[%c48_171, %c0_172] : memref<64x32xf32, #tpu.memory_space<vmem>>, vector<8x32xf32>
    tpu.vector_store %arg11[%c48_171, %c0_172], %471 {strides = array<i32>} : memref<64x32xf32, #tpu.memory_space<vmem>>, vector<8x32xf32>,
    %c56_173 = arith.constant 56 : index
    %c0_174 = arith.constant 0 : index
    %473 = vector.load %arg10[%c56_173, %c0_174] : memref<64x128xf32, #tpu.memory_space<vmem>>, vector<8x128xf32>
    %cst_175 = arith.constant dense<0.000000e+00> : vector<8x128xf32>
    %474 = tpu.matmul %471, %331, %cst_175 {dimension_numbers = #tpu.dot_dimension_numbers<[1], [0], [0], [1], [0, 0, 1, 1], [], []>} : vector<8x32xf32>, vector<32x128xf32>, vector<8x128xf32> -> vector<8x128xf32>
    %475 = arith.addf %473, %474 : vector<8x128xf32>
    %476 = arith.negf %475 : vector<8x128xf32>
    %477 = math.exp %476 : vector<8x128xf32>
    %cst_176 = arith.constant 1.000000e+00 : f32
    %478 = vector.broadcast %cst_176 : f32 to vector<8x128xf32>
    %479 = arith.addf %478, %477 : vector<8x128xf32>
    %480 = arith.divf %478, %479 : vector<8x128xf32>
    %481 = math.tanh %475 : vector<8x128xf32>
    %482 = vector.extract_strided_slice %480 {offsets = [0, 0], sizes = [8, 32], strides = [1, 1]} : vector<8x128xf32> to vector<8x32xf32>
    %483 = vector.extract_strided_slice %480 {offsets = [0, 32], sizes = [8, 32], strides = [1, 1]} : vector<8x128xf32> to vector<8x32xf32>
    %484 = vector.extract_strided_slice %481 {offsets = [0, 64], sizes = [8, 32], strides = [1, 1]} : vector<8x128xf32> to vector<8x32xf32>
    %485 = vector.extract_strided_slice %480 {offsets = [0, 96], sizes = [8, 32], strides = [1, 1]} : vector<8x128xf32> to vector<8x32xf32>
    %486 = arith.mulf %483, %469 : vector<8x32xf32>
    %487 = arith.mulf %482, %484 : vector<8x32xf32>
    %488 = arith.addf %486, %487 : vector<8x32xf32>
    %489 = math.tanh %488 : vector<8x32xf32>
    %490 = arith.mulf %485, %489 : vector<8x32xf32>
    %c56_177 = arith.constant 56 : index
    %c0_178 = arith.constant 0 : index
    %491 = vector.load %arg11[%c56_177, %c0_178] : memref<64x32xf32, #tpu.memory_space<vmem>>, vector<8x32xf32>
    tpu.vector_store %arg11[%c56_177, %c0_178], %490 {strides = array<i32>} : memref<64x32xf32, #tpu.memory_space<vmem>>, vector<8x32xf32>,
    %c0_179 = arith.constant 0 : index
    %c0_180 = arith.constant 0 : index
    %492 = vector.load %arg11[%c0_179, %c0_180] : memref<64x32xf32, #tpu.memory_space<vmem>>, vector<64x32xf32>
    %c2 = arith.constant 2 : index
    %c0_181 = arith.constant 0 : index
    %c0_182 = arith.constant 0 : index
    %493 = vector.load %arg4[%c2, %c0_181, %c0_182] : memref<4x32x128xf32, #tpu.memory_space<vmem>>, vector<1x32x128xf32>
    %494 = vector.shape_cast %493 : vector<1x32x128xf32> to vector<32x128xf32>
    %c2_183 = arith.constant 2 : index
    %c0_184 = arith.constant 0 : index
    %c0_185 = arith.constant 0 : index
    %495 = vector.load %arg5[%c2_183, %c0_184, %c0_185] : memref<4x32x128xf32, #tpu.memory_space<vmem>>, vector<1x32x128xf32>
    %496 = vector.shape_cast %495 : vector<1x32x128xf32> to vector<32x128xf32>
    %c2_186 = arith.constant 2 : index
    %c0_187 = arith.constant 0 : index
    %c0_188 = arith.constant 0 : index
    %497 = vector.load %arg6[%c2_186, %c0_187, %c0_188] : memref<4x1x128xf32, #tpu.memory_space<vmem>>, vector<1x1x128xf32>
    %498 = vector.shape_cast %497 : vector<1x1x128xf32> to vector<1x128xf32>
    %cst_189 = arith.constant dense<0.000000e+00> : vector<64x128xf32>
    %499 = tpu.matmul %492, %494, %cst_189 {dimension_numbers = #tpu.dot_dimension_numbers<[1], [0], [0], [1], [0, 0, 1, 1], [], []>} : vector<64x32xf32>, vector<32x128xf32>, vector<64x128xf32> -> vector<64x128xf32>
    %500 = vector.broadcast %498 : vector<1x128xf32> to vector<64x128xf32>
    %501 = arith.addf %499, %500 : vector<64x128xf32>
    %c0_190 = arith.constant 0 : index
    %c0_191 = arith.constant 0 : index
    %502 = vector.load %arg10[%c0_190, %c0_191] : memref<64x128xf32, #tpu.memory_space<vmem>>, vector<64x128xf32>
    tpu.vector_store %arg10[%c0_190, %c0_191], %501 {strides = array<i32>} : memref<64x128xf32, #tpu.memory_space<vmem>>, vector<64x128xf32>,
    %cst_192 = arith.constant 0.000000e+00 : f32
    %503 = vector.broadcast %cst_192 : f32 to vector<8x32xf32>
    %cst_193 = arith.constant 0.000000e+00 : f32
    %504 = vector.broadcast %cst_193 : f32 to vector<8x32xf32>
    %c0_194 = arith.constant 0 : index
    %c0_195 = arith.constant 0 : index
    %505 = vector.load %arg10[%c0_194, %c0_195] : memref<64x128xf32, #tpu.memory_space<vmem>>, vector<8x128xf32>
    %cst_196 = arith.constant dense<0.000000e+00> : vector<8x128xf32>
    %506 = tpu.matmul %503, %496, %cst_196 {dimension_numbers = #tpu.dot_dimension_numbers<[1], [0], [0], [1], [0, 0, 1, 1], [], []>} : vector<8x32xf32>, vector<32x128xf32>, vector<8x128xf32> -> vector<8x128xf32>
    %507 = arith.addf %505, %506 : vector<8x128xf32>
    %508 = arith.negf %507 : vector<8x128xf32>
    %509 = math.exp %508 : vector<8x128xf32>
    %cst_197 = arith.constant 1.000000e+00 : f32
    %510 = vector.broadcast %cst_197 : f32 to vector<8x128xf32>
    %511 = arith.addf %510, %509 : vector<8x128xf32>
    %512 = arith.divf %510, %511 : vector<8x128xf32>
    %513 = math.tanh %507 : vector<8x128xf32>
    %514 = vector.extract_strided_slice %512 {offsets = [0, 0], sizes = [8, 32], strides = [1, 1]} : vector<8x128xf32> to vector<8x32xf32>
    %515 = vector.extract_strided_slice %512 {offsets = [0, 32], sizes = [8, 32], strides = [1, 1]} : vector<8x128xf32> to vector<8x32xf32>
    %516 = vector.extract_strided_slice %513 {offsets = [0, 64], sizes = [8, 32], strides = [1, 1]} : vector<8x128xf32> to vector<8x32xf32>
    %517 = vector.extract_strided_slice %512 {offsets = [0, 96], sizes = [8, 32], strides = [1, 1]} : vector<8x128xf32> to vector<8x32xf32>
    %518 = arith.mulf %515, %504 : vector<8x32xf32>
    %519 = arith.mulf %514, %516 : vector<8x32xf32>
    %520 = arith.addf %518, %519 : vector<8x32xf32>
    %521 = math.tanh %520 : vector<8x32xf32>
    %522 = arith.mulf %517, %521 : vector<8x32xf32>
    %c0_198 = arith.constant 0 : index
    %c0_199 = arith.constant 0 : index
    %523 = vector.load %arg11[%c0_198, %c0_199] : memref<64x32xf32, #tpu.memory_space<vmem>>, vector<8x32xf32>
    tpu.vector_store %arg11[%c0_198, %c0_199], %522 {strides = array<i32>} : memref<64x32xf32, #tpu.memory_space<vmem>>, vector<8x32xf32>,
    %c8_200 = arith.constant 8 : index
    %c0_201 = arith.constant 0 : index
    %524 = vector.load %arg10[%c8_200, %c0_201] : memref<64x128xf32, #tpu.memory_space<vmem>>, vector<8x128xf32>
    %cst_202 = arith.constant dense<0.000000e+00> : vector<8x128xf32>
    %525 = tpu.matmul %522, %496, %cst_202 {dimension_numbers = #tpu.dot_dimension_numbers<[1], [0], [0], [1], [0, 0, 1, 1], [], []>} : vector<8x32xf32>, vector<32x128xf32>, vector<8x128xf32> -> vector<8x128xf32>
    %526 = arith.addf %524, %525 : vector<8x128xf32>
    %527 = arith.negf %526 : vector<8x128xf32>
    %528 = math.exp %527 : vector<8x128xf32>
    %cst_203 = arith.constant 1.000000e+00 : f32
    %529 = vector.broadcast %cst_203 : f32 to vector<8x128xf32>
    %530 = arith.addf %529, %528 : vector<8x128xf32>
    %531 = arith.divf %529, %530 : vector<8x128xf32>
    %532 = math.tanh %526 : vector<8x128xf32>
    %533 = vector.extract_strided_slice %531 {offsets = [0, 0], sizes = [8, 32], strides = [1, 1]} : vector<8x128xf32> to vector<8x32xf32>
    %534 = vector.extract_strided_slice %531 {offsets = [0, 32], sizes = [8, 32], strides = [1, 1]} : vector<8x128xf32> to vector<8x32xf32>
    %535 = vector.extract_strided_slice %532 {offsets = [0, 64], sizes = [8, 32], strides = [1, 1]} : vector<8x128xf32> to vector<8x32xf32>
    %536 = vector.extract_strided_slice %531 {offsets = [0, 96], sizes = [8, 32], strides = [1, 1]} : vector<8x128xf32> to vector<8x32xf32>
    %537 = arith.mulf %534, %520 : vector<8x32xf32>
    %538 = arith.mulf %533, %535 : vector<8x32xf32>
    %539 = arith.addf %537, %538 : vector<8x32xf32>
    %540 = math.tanh %539 : vector<8x32xf32>
    %541 = arith.mulf %536, %540 : vector<8x32xf32>
    %c8_204 = arith.constant 8 : index
    %c0_205 = arith.constant 0 : index
    %542 = vector.load %arg11[%c8_204, %c0_205] : memref<64x32xf32, #tpu.memory_space<vmem>>, vector<8x32xf32>
    tpu.vector_store %arg11[%c8_204, %c0_205], %541 {strides = array<i32>} : memref<64x32xf32, #tpu.memory_space<vmem>>, vector<8x32xf32>,
    %c16_206 = arith.constant 16 : index
    %c0_207 = arith.constant 0 : index
    %543 = vector.load %arg10[%c16_206, %c0_207] : memref<64x128xf32, #tpu.memory_space<vmem>>, vector<8x128xf32>
    %cst_208 = arith.constant dense<0.000000e+00> : vector<8x128xf32>
    %544 = tpu.matmul %541, %496, %cst_208 {dimension_numbers = #tpu.dot_dimension_numbers<[1], [0], [0], [1], [0, 0, 1, 1], [], []>} : vector<8x32xf32>, vector<32x128xf32>, vector<8x128xf32> -> vector<8x128xf32>
    %545 = arith.addf %543, %544 : vector<8x128xf32>
    %546 = arith.negf %545 : vector<8x128xf32>
    %547 = math.exp %546 : vector<8x128xf32>
    %cst_209 = arith.constant 1.000000e+00 : f32
    %548 = vector.broadcast %cst_209 : f32 to vector<8x128xf32>
    %549 = arith.addf %548, %547 : vector<8x128xf32>
    %550 = arith.divf %548, %549 : vector<8x128xf32>
    %551 = math.tanh %545 : vector<8x128xf32>
    %552 = vector.extract_strided_slice %550 {offsets = [0, 0], sizes = [8, 32], strides = [1, 1]} : vector<8x128xf32> to vector<8x32xf32>
    %553 = vector.extract_strided_slice %550 {offsets = [0, 32], sizes = [8, 32], strides = [1, 1]} : vector<8x128xf32> to vector<8x32xf32>
    %554 = vector.extract_strided_slice %551 {offsets = [0, 64], sizes = [8, 32], strides = [1, 1]} : vector<8x128xf32> to vector<8x32xf32>
    %555 = vector.extract_strided_slice %550 {offsets = [0, 96], sizes = [8, 32], strides = [1, 1]} : vector<8x128xf32> to vector<8x32xf32>
    %556 = arith.mulf %553, %539 : vector<8x32xf32>
    %557 = arith.mulf %552, %554 : vector<8x32xf32>
    %558 = arith.addf %556, %557 : vector<8x32xf32>
    %559 = math.tanh %558 : vector<8x32xf32>
    %560 = arith.mulf %555, %559 : vector<8x32xf32>
    %c16_210 = arith.constant 16 : index
    %c0_211 = arith.constant 0 : index
    %561 = vector.load %arg11[%c16_210, %c0_211] : memref<64x32xf32, #tpu.memory_space<vmem>>, vector<8x32xf32>
    tpu.vector_store %arg11[%c16_210, %c0_211], %560 {strides = array<i32>} : memref<64x32xf32, #tpu.memory_space<vmem>>, vector<8x32xf32>,
    %c24_212 = arith.constant 24 : index
    %c0_213 = arith.constant 0 : index
    %562 = vector.load %arg10[%c24_212, %c0_213] : memref<64x128xf32, #tpu.memory_space<vmem>>, vector<8x128xf32>
    %cst_214 = arith.constant dense<0.000000e+00> : vector<8x128xf32>
    %563 = tpu.matmul %560, %496, %cst_214 {dimension_numbers = #tpu.dot_dimension_numbers<[1], [0], [0], [1], [0, 0, 1, 1], [], []>} : vector<8x32xf32>, vector<32x128xf32>, vector<8x128xf32> -> vector<8x128xf32>
    %564 = arith.addf %562, %563 : vector<8x128xf32>
    %565 = arith.negf %564 : vector<8x128xf32>
    %566 = math.exp %565 : vector<8x128xf32>
    %cst_215 = arith.constant 1.000000e+00 : f32
    %567 = vector.broadcast %cst_215 : f32 to vector<8x128xf32>
    %568 = arith.addf %567, %566 : vector<8x128xf32>
    %569 = arith.divf %567, %568 : vector<8x128xf32>
    %570 = math.tanh %564 : vector<8x128xf32>
    %571 = vector.extract_strided_slice %569 {offsets = [0, 0], sizes = [8, 32], strides = [1, 1]} : vector<8x128xf32> to vector<8x32xf32>
    %572 = vector.extract_strided_slice %569 {offsets = [0, 32], sizes = [8, 32], strides = [1, 1]} : vector<8x128xf32> to vector<8x32xf32>
    %573 = vector.extract_strided_slice %570 {offsets = [0, 64], sizes = [8, 32], strides = [1, 1]} : vector<8x128xf32> to vector<8x32xf32>
    %574 = vector.extract_strided_slice %569 {offsets = [0, 96], sizes = [8, 32], strides = [1, 1]} : vector<8x128xf32> to vector<8x32xf32>
    %575 = arith.mulf %572, %558 : vector<8x32xf32>
    %576 = arith.mulf %571, %573 : vector<8x32xf32>
    %577 = arith.addf %575, %576 : vector<8x32xf32>
    %578 = math.tanh %577 : vector<8x32xf32>
    %579 = arith.mulf %574, %578 : vector<8x32xf32>
    %c24_216 = arith.constant 24 : index
    %c0_217 = arith.constant 0 : index
    %580 = vector.load %arg11[%c24_216, %c0_217] : memref<64x32xf32, #tpu.memory_space<vmem>>, vector<8x32xf32>
    tpu.vector_store %arg11[%c24_216, %c0_217], %579 {strides = array<i32>} : memref<64x32xf32, #tpu.memory_space<vmem>>, vector<8x32xf32>,
    %c32_218 = arith.constant 32 : index
    %c0_219 = arith.constant 0 : index
    %581 = vector.load %arg10[%c32_218, %c0_219] : memref<64x128xf32, #tpu.memory_space<vmem>>, vector<8x128xf32>
    %cst_220 = arith.constant dense<0.000000e+00> : vector<8x128xf32>
    %582 = tpu.matmul %579, %496, %cst_220 {dimension_numbers = #tpu.dot_dimension_numbers<[1], [0], [0], [1], [0, 0, 1, 1], [], []>} : vector<8x32xf32>, vector<32x128xf32>, vector<8x128xf32> -> vector<8x128xf32>
    %583 = arith.addf %581, %582 : vector<8x128xf32>
    %584 = arith.negf %583 : vector<8x128xf32>
    %585 = math.exp %584 : vector<8x128xf32>
    %cst_221 = arith.constant 1.000000e+00 : f32
    %586 = vector.broadcast %cst_221 : f32 to vector<8x128xf32>
    %587 = arith.addf %586, %585 : vector<8x128xf32>
    %588 = arith.divf %586, %587 : vector<8x128xf32>
    %589 = math.tanh %583 : vector<8x128xf32>
    %590 = vector.extract_strided_slice %588 {offsets = [0, 0], sizes = [8, 32], strides = [1, 1]} : vector<8x128xf32> to vector<8x32xf32>
    %591 = vector.extract_strided_slice %588 {offsets = [0, 32], sizes = [8, 32], strides = [1, 1]} : vector<8x128xf32> to vector<8x32xf32>
    %592 = vector.extract_strided_slice %589 {offsets = [0, 64], sizes = [8, 32], strides = [1, 1]} : vector<8x128xf32> to vector<8x32xf32>
    %593 = vector.extract_strided_slice %588 {offsets = [0, 96], sizes = [8, 32], strides = [1, 1]} : vector<8x128xf32> to vector<8x32xf32>
    %594 = arith.mulf %591, %577 : vector<8x32xf32>
    %595 = arith.mulf %590, %592 : vector<8x32xf32>
    %596 = arith.addf %594, %595 : vector<8x32xf32>
    %597 = math.tanh %596 : vector<8x32xf32>
    %598 = arith.mulf %593, %597 : vector<8x32xf32>
    %c32_222 = arith.constant 32 : index
    %c0_223 = arith.constant 0 : index
    %599 = vector.load %arg11[%c32_222, %c0_223] : memref<64x32xf32, #tpu.memory_space<vmem>>, vector<8x32xf32>
    tpu.vector_store %arg11[%c32_222, %c0_223], %598 {strides = array<i32>} : memref<64x32xf32, #tpu.memory_space<vmem>>, vector<8x32xf32>,
    %c40_224 = arith.constant 40 : index
    %c0_225 = arith.constant 0 : index
    %600 = vector.load %arg10[%c40_224, %c0_225] : memref<64x128xf32, #tpu.memory_space<vmem>>, vector<8x128xf32>
    %cst_226 = arith.constant dense<0.000000e+00> : vector<8x128xf32>
    %601 = tpu.matmul %598, %496, %cst_226 {dimension_numbers = #tpu.dot_dimension_numbers<[1], [0], [0], [1], [0, 0, 1, 1], [], []>} : vector<8x32xf32>, vector<32x128xf32>, vector<8x128xf32> -> vector<8x128xf32>
    %602 = arith.addf %600, %601 : vector<8x128xf32>
    %603 = arith.negf %602 : vector<8x128xf32>
    %604 = math.exp %603 : vector<8x128xf32>
    %cst_227 = arith.constant 1.000000e+00 : f32
    %605 = vector.broadcast %cst_227 : f32 to vector<8x128xf32>
    %606 = arith.addf %605, %604 : vector<8x128xf32>
    %607 = arith.divf %605, %606 : vector<8x128xf32>
    %608 = math.tanh %602 : vector<8x128xf32>
    %609 = vector.extract_strided_slice %607 {offsets = [0, 0], sizes = [8, 32], strides = [1, 1]} : vector<8x128xf32> to vector<8x32xf32>
    %610 = vector.extract_strided_slice %607 {offsets = [0, 32], sizes = [8, 32], strides = [1, 1]} : vector<8x128xf32> to vector<8x32xf32>
    %611 = vector.extract_strided_slice %608 {offsets = [0, 64], sizes = [8, 32], strides = [1, 1]} : vector<8x128xf32> to vector<8x32xf32>
    %612 = vector.extract_strided_slice %607 {offsets = [0, 96], sizes = [8, 32], strides = [1, 1]} : vector<8x128xf32> to vector<8x32xf32>
    %613 = arith.mulf %610, %596 : vector<8x32xf32>
    %614 = arith.mulf %609, %611 : vector<8x32xf32>
    %615 = arith.addf %613, %614 : vector<8x32xf32>
    %616 = math.tanh %615 : vector<8x32xf32>
    %617 = arith.mulf %612, %616 : vector<8x32xf32>
    %c40_228 = arith.constant 40 : index
    %c0_229 = arith.constant 0 : index
    %618 = vector.load %arg11[%c40_228, %c0_229] : memref<64x32xf32, #tpu.memory_space<vmem>>, vector<8x32xf32>
    tpu.vector_store %arg11[%c40_228, %c0_229], %617 {strides = array<i32>} : memref<64x32xf32, #tpu.memory_space<vmem>>, vector<8x32xf32>,
    %c48_230 = arith.constant 48 : index
    %c0_231 = arith.constant 0 : index
    %619 = vector.load %arg10[%c48_230, %c0_231] : memref<64x128xf32, #tpu.memory_space<vmem>>, vector<8x128xf32>
    %cst_232 = arith.constant dense<0.000000e+00> : vector<8x128xf32>
    %620 = tpu.matmul %617, %496, %cst_232 {dimension_numbers = #tpu.dot_dimension_numbers<[1], [0], [0], [1], [0, 0, 1, 1], [], []>} : vector<8x32xf32>, vector<32x128xf32>, vector<8x128xf32> -> vector<8x128xf32>
    %621 = arith.addf %619, %620 : vector<8x128xf32>
    %622 = arith.negf %621 : vector<8x128xf32>
    %623 = math.exp %622 : vector<8x128xf32>
    %cst_233 = arith.constant 1.000000e+00 : f32
    %624 = vector.broadcast %cst_233 : f32 to vector<8x128xf32>
    %625 = arith.addf %624, %623 : vector<8x128xf32>
    %626 = arith.divf %624, %625 : vector<8x128xf32>
    %627 = math.tanh %621 : vector<8x128xf32>
    %628 = vector.extract_strided_slice %626 {offsets = [0, 0], sizes = [8, 32], strides = [1, 1]} : vector<8x128xf32> to vector<8x32xf32>
    %629 = vector.extract_strided_slice %626 {offsets = [0, 32], sizes = [8, 32], strides = [1, 1]} : vector<8x128xf32> to vector<8x32xf32>
    %630 = vector.extract_strided_slice %627 {offsets = [0, 64], sizes = [8, 32], strides = [1, 1]} : vector<8x128xf32> to vector<8x32xf32>
    %631 = vector.extract_strided_slice %626 {offsets = [0, 96], sizes = [8, 32], strides = [1, 1]} : vector<8x128xf32> to vector<8x32xf32>
    %632 = arith.mulf %629, %615 : vector<8x32xf32>
    %633 = arith.mulf %628, %630 : vector<8x32xf32>
    %634 = arith.addf %632, %633 : vector<8x32xf32>
    %635 = math.tanh %634 : vector<8x32xf32>
    %636 = arith.mulf %631, %635 : vector<8x32xf32>
    %c48_234 = arith.constant 48 : index
    %c0_235 = arith.constant 0 : index
    %637 = vector.load %arg11[%c48_234, %c0_235] : memref<64x32xf32, #tpu.memory_space<vmem>>, vector<8x32xf32>
    tpu.vector_store %arg11[%c48_234, %c0_235], %636 {strides = array<i32>} : memref<64x32xf32, #tpu.memory_space<vmem>>, vector<8x32xf32>,
    %c56_236 = arith.constant 56 : index
    %c0_237 = arith.constant 0 : index
    %638 = vector.load %arg10[%c56_236, %c0_237] : memref<64x128xf32, #tpu.memory_space<vmem>>, vector<8x128xf32>
    %cst_238 = arith.constant dense<0.000000e+00> : vector<8x128xf32>
    %639 = tpu.matmul %636, %496, %cst_238 {dimension_numbers = #tpu.dot_dimension_numbers<[1], [0], [0], [1], [0, 0, 1, 1], [], []>} : vector<8x32xf32>, vector<32x128xf32>, vector<8x128xf32> -> vector<8x128xf32>
    %640 = arith.addf %638, %639 : vector<8x128xf32>
    %641 = arith.negf %640 : vector<8x128xf32>
    %642 = math.exp %641 : vector<8x128xf32>
    %cst_239 = arith.constant 1.000000e+00 : f32
    %643 = vector.broadcast %cst_239 : f32 to vector<8x128xf32>
    %644 = arith.addf %643, %642 : vector<8x128xf32>
    %645 = arith.divf %643, %644 : vector<8x128xf32>
    %646 = math.tanh %640 : vector<8x128xf32>
    %647 = vector.extract_strided_slice %645 {offsets = [0, 0], sizes = [8, 32], strides = [1, 1]} : vector<8x128xf32> to vector<8x32xf32>
    %648 = vector.extract_strided_slice %645 {offsets = [0, 32], sizes = [8, 32], strides = [1, 1]} : vector<8x128xf32> to vector<8x32xf32>
    %649 = vector.extract_strided_slice %646 {offsets = [0, 64], sizes = [8, 32], strides = [1, 1]} : vector<8x128xf32> to vector<8x32xf32>
    %650 = vector.extract_strided_slice %645 {offsets = [0, 96], sizes = [8, 32], strides = [1, 1]} : vector<8x128xf32> to vector<8x32xf32>
    %651 = arith.mulf %648, %634 : vector<8x32xf32>
    %652 = arith.mulf %647, %649 : vector<8x32xf32>
    %653 = arith.addf %651, %652 : vector<8x32xf32>
    %654 = math.tanh %653 : vector<8x32xf32>
    %655 = arith.mulf %650, %654 : vector<8x32xf32>
    %c56_240 = arith.constant 56 : index
    %c0_241 = arith.constant 0 : index
    %656 = vector.load %arg11[%c56_240, %c0_241] : memref<64x32xf32, #tpu.memory_space<vmem>>, vector<8x32xf32>
    tpu.vector_store %arg11[%c56_240, %c0_241], %655 {strides = array<i32>} : memref<64x32xf32, #tpu.memory_space<vmem>>, vector<8x32xf32>,
    %c0_242 = arith.constant 0 : index
    %c0_243 = arith.constant 0 : index
    %657 = vector.load %arg11[%c0_242, %c0_243] : memref<64x32xf32, #tpu.memory_space<vmem>>, vector<64x32xf32>
    %c3 = arith.constant 3 : index
    %c0_244 = arith.constant 0 : index
    %c0_245 = arith.constant 0 : index
    %658 = vector.load %arg4[%c3, %c0_244, %c0_245] : memref<4x32x128xf32, #tpu.memory_space<vmem>>, vector<1x32x128xf32>
    %659 = vector.shape_cast %658 : vector<1x32x128xf32> to vector<32x128xf32>
    %c3_246 = arith.constant 3 : index
    %c0_247 = arith.constant 0 : index
    %c0_248 = arith.constant 0 : index
    %660 = vector.load %arg5[%c3_246, %c0_247, %c0_248] : memref<4x32x128xf32, #tpu.memory_space<vmem>>, vector<1x32x128xf32>
    %661 = vector.shape_cast %660 : vector<1x32x128xf32> to vector<32x128xf32>
    %c3_249 = arith.constant 3 : index
    %c0_250 = arith.constant 0 : index
    %c0_251 = arith.constant 0 : index
    %662 = vector.load %arg6[%c3_249, %c0_250, %c0_251] : memref<4x1x128xf32, #tpu.memory_space<vmem>>, vector<1x1x128xf32>
    %663 = vector.shape_cast %662 : vector<1x1x128xf32> to vector<1x128xf32>
    %cst_252 = arith.constant dense<0.000000e+00> : vector<64x128xf32>
    %664 = tpu.matmul %657, %659, %cst_252 {dimension_numbers = #tpu.dot_dimension_numbers<[1], [0], [0], [1], [0, 0, 1, 1], [], []>} : vector<64x32xf32>, vector<32x128xf32>, vector<64x128xf32> -> vector<64x128xf32>
    %665 = vector.broadcast %663 : vector<1x128xf32> to vector<64x128xf32>
    %666 = arith.addf %664, %665 : vector<64x128xf32>
    %c0_253 = arith.constant 0 : index
    %c0_254 = arith.constant 0 : index
    %667 = vector.load %arg10[%c0_253, %c0_254] : memref<64x128xf32, #tpu.memory_space<vmem>>, vector<64x128xf32>
    tpu.vector_store %arg10[%c0_253, %c0_254], %666 {strides = array<i32>} : memref<64x128xf32, #tpu.memory_space<vmem>>, vector<64x128xf32>,
    %cst_255 = arith.constant 0.000000e+00 : f32
    %668 = vector.broadcast %cst_255 : f32 to vector<8x32xf32>
    %cst_256 = arith.constant 0.000000e+00 : f32
    %669 = vector.broadcast %cst_256 : f32 to vector<8x32xf32>
    %c0_257 = arith.constant 0 : index
    %c0_258 = arith.constant 0 : index
    %670 = vector.load %arg10[%c0_257, %c0_258] : memref<64x128xf32, #tpu.memory_space<vmem>>, vector<8x128xf32>
    %cst_259 = arith.constant dense<0.000000e+00> : vector<8x128xf32>
    %671 = tpu.matmul %668, %661, %cst_259 {dimension_numbers = #tpu.dot_dimension_numbers<[1], [0], [0], [1], [0, 0, 1, 1], [], []>} : vector<8x32xf32>, vector<32x128xf32>, vector<8x128xf32> -> vector<8x128xf32>
    %672 = arith.addf %670, %671 : vector<8x128xf32>
    %673 = arith.negf %672 : vector<8x128xf32>
    %674 = math.exp %673 : vector<8x128xf32>
    %cst_260 = arith.constant 1.000000e+00 : f32
    %675 = vector.broadcast %cst_260 : f32 to vector<8x128xf32>
    %676 = arith.addf %675, %674 : vector<8x128xf32>
    %677 = arith.divf %675, %676 : vector<8x128xf32>
    %678 = math.tanh %672 : vector<8x128xf32>
    %679 = vector.extract_strided_slice %677 {offsets = [0, 0], sizes = [8, 32], strides = [1, 1]} : vector<8x128xf32> to vector<8x32xf32>
    %680 = vector.extract_strided_slice %677 {offsets = [0, 32], sizes = [8, 32], strides = [1, 1]} : vector<8x128xf32> to vector<8x32xf32>
    %681 = vector.extract_strided_slice %678 {offsets = [0, 64], sizes = [8, 32], strides = [1, 1]} : vector<8x128xf32> to vector<8x32xf32>
    %682 = vector.extract_strided_slice %677 {offsets = [0, 96], sizes = [8, 32], strides = [1, 1]} : vector<8x128xf32> to vector<8x32xf32>
    %683 = arith.mulf %680, %669 : vector<8x32xf32>
    %684 = arith.mulf %679, %681 : vector<8x32xf32>
    %685 = arith.addf %683, %684 : vector<8x32xf32>
    %686 = math.tanh %685 : vector<8x32xf32>
    %687 = arith.mulf %682, %686 : vector<8x32xf32>
    %c8_261 = arith.constant 8 : index
    %c0_262 = arith.constant 0 : index
    %688 = vector.load %arg10[%c8_261, %c0_262] : memref<64x128xf32, #tpu.memory_space<vmem>>, vector<8x128xf32>
    %cst_263 = arith.constant dense<0.000000e+00> : vector<8x128xf32>
    %689 = tpu.matmul %687, %661, %cst_263 {dimension_numbers = #tpu.dot_dimension_numbers<[1], [0], [0], [1], [0, 0, 1, 1], [], []>} : vector<8x32xf32>, vector<32x128xf32>, vector<8x128xf32> -> vector<8x128xf32>
    %690 = arith.addf %688, %689 : vector<8x128xf32>
    %691 = arith.negf %690 : vector<8x128xf32>
    %692 = math.exp %691 : vector<8x128xf32>
    %cst_264 = arith.constant 1.000000e+00 : f32
    %693 = vector.broadcast %cst_264 : f32 to vector<8x128xf32>
    %694 = arith.addf %693, %692 : vector<8x128xf32>
    %695 = arith.divf %693, %694 : vector<8x128xf32>
    %696 = math.tanh %690 : vector<8x128xf32>
    %697 = vector.extract_strided_slice %695 {offsets = [0, 0], sizes = [8, 32], strides = [1, 1]} : vector<8x128xf32> to vector<8x32xf32>
    %698 = vector.extract_strided_slice %695 {offsets = [0, 32], sizes = [8, 32], strides = [1, 1]} : vector<8x128xf32> to vector<8x32xf32>
    %699 = vector.extract_strided_slice %696 {offsets = [0, 64], sizes = [8, 32], strides = [1, 1]} : vector<8x128xf32> to vector<8x32xf32>
    %700 = vector.extract_strided_slice %695 {offsets = [0, 96], sizes = [8, 32], strides = [1, 1]} : vector<8x128xf32> to vector<8x32xf32>
    %701 = arith.mulf %698, %685 : vector<8x32xf32>
    %702 = arith.mulf %697, %699 : vector<8x32xf32>
    %703 = arith.addf %701, %702 : vector<8x32xf32>
    %704 = math.tanh %703 : vector<8x32xf32>
    %705 = arith.mulf %700, %704 : vector<8x32xf32>
    %c16_265 = arith.constant 16 : index
    %c0_266 = arith.constant 0 : index
    %706 = vector.load %arg10[%c16_265, %c0_266] : memref<64x128xf32, #tpu.memory_space<vmem>>, vector<8x128xf32>
    %cst_267 = arith.constant dense<0.000000e+00> : vector<8x128xf32>
    %707 = tpu.matmul %705, %661, %cst_267 {dimension_numbers = #tpu.dot_dimension_numbers<[1], [0], [0], [1], [0, 0, 1, 1], [], []>} : vector<8x32xf32>, vector<32x128xf32>, vector<8x128xf32> -> vector<8x128xf32>
    %708 = arith.addf %706, %707 : vector<8x128xf32>
    %709 = arith.negf %708 : vector<8x128xf32>
    %710 = math.exp %709 : vector<8x128xf32>
    %cst_268 = arith.constant 1.000000e+00 : f32
    %711 = vector.broadcast %cst_268 : f32 to vector<8x128xf32>
    %712 = arith.addf %711, %710 : vector<8x128xf32>
    %713 = arith.divf %711, %712 : vector<8x128xf32>
    %714 = math.tanh %708 : vector<8x128xf32>
    %715 = vector.extract_strided_slice %713 {offsets = [0, 0], sizes = [8, 32], strides = [1, 1]} : vector<8x128xf32> to vector<8x32xf32>
    %716 = vector.extract_strided_slice %713 {offsets = [0, 32], sizes = [8, 32], strides = [1, 1]} : vector<8x128xf32> to vector<8x32xf32>
    %717 = vector.extract_strided_slice %714 {offsets = [0, 64], sizes = [8, 32], strides = [1, 1]} : vector<8x128xf32> to vector<8x32xf32>
    %718 = vector.extract_strided_slice %713 {offsets = [0, 96], sizes = [8, 32], strides = [1, 1]} : vector<8x128xf32> to vector<8x32xf32>
    %719 = arith.mulf %716, %703 : vector<8x32xf32>
    %720 = arith.mulf %715, %717 : vector<8x32xf32>
    %721 = arith.addf %719, %720 : vector<8x32xf32>
    %722 = math.tanh %721 : vector<8x32xf32>
    %723 = arith.mulf %718, %722 : vector<8x32xf32>
    %c24_269 = arith.constant 24 : index
    %c0_270 = arith.constant 0 : index
    %724 = vector.load %arg10[%c24_269, %c0_270] : memref<64x128xf32, #tpu.memory_space<vmem>>, vector<8x128xf32>
    %cst_271 = arith.constant dense<0.000000e+00> : vector<8x128xf32>
    %725 = tpu.matmul %723, %661, %cst_271 {dimension_numbers = #tpu.dot_dimension_numbers<[1], [0], [0], [1], [0, 0, 1, 1], [], []>} : vector<8x32xf32>, vector<32x128xf32>, vector<8x128xf32> -> vector<8x128xf32>
    %726 = arith.addf %724, %725 : vector<8x128xf32>
    %727 = arith.negf %726 : vector<8x128xf32>
    %728 = math.exp %727 : vector<8x128xf32>
    %cst_272 = arith.constant 1.000000e+00 : f32
    %729 = vector.broadcast %cst_272 : f32 to vector<8x128xf32>
    %730 = arith.addf %729, %728 : vector<8x128xf32>
    %731 = arith.divf %729, %730 : vector<8x128xf32>
    %732 = math.tanh %726 : vector<8x128xf32>
    %733 = vector.extract_strided_slice %731 {offsets = [0, 0], sizes = [8, 32], strides = [1, 1]} : vector<8x128xf32> to vector<8x32xf32>
    %734 = vector.extract_strided_slice %731 {offsets = [0, 32], sizes = [8, 32], strides = [1, 1]} : vector<8x128xf32> to vector<8x32xf32>
    %735 = vector.extract_strided_slice %732 {offsets = [0, 64], sizes = [8, 32], strides = [1, 1]} : vector<8x128xf32> to vector<8x32xf32>
    %736 = vector.extract_strided_slice %731 {offsets = [0, 96], sizes = [8, 32], strides = [1, 1]} : vector<8x128xf32> to vector<8x32xf32>
    %737 = arith.mulf %734, %721 : vector<8x32xf32>
    %738 = arith.mulf %733, %735 : vector<8x32xf32>
    %739 = arith.addf %737, %738 : vector<8x32xf32>
    %740 = math.tanh %739 : vector<8x32xf32>
    %741 = arith.mulf %736, %740 : vector<8x32xf32>
    %c32_273 = arith.constant 32 : index
    %c0_274 = arith.constant 0 : index
    %742 = vector.load %arg10[%c32_273, %c0_274] : memref<64x128xf32, #tpu.memory_space<vmem>>, vector<8x128xf32>
    %cst_275 = arith.constant dense<0.000000e+00> : vector<8x128xf32>
    %743 = tpu.matmul %741, %661, %cst_275 {dimension_numbers = #tpu.dot_dimension_numbers<[1], [0], [0], [1], [0, 0, 1, 1], [], []>} : vector<8x32xf32>, vector<32x128xf32>, vector<8x128xf32> -> vector<8x128xf32>
    %744 = arith.addf %742, %743 : vector<8x128xf32>
    %745 = arith.negf %744 : vector<8x128xf32>
    %746 = math.exp %745 : vector<8x128xf32>
    %cst_276 = arith.constant 1.000000e+00 : f32
    %747 = vector.broadcast %cst_276 : f32 to vector<8x128xf32>
    %748 = arith.addf %747, %746 : vector<8x128xf32>
    %749 = arith.divf %747, %748 : vector<8x128xf32>
    %750 = math.tanh %744 : vector<8x128xf32>
    %751 = vector.extract_strided_slice %749 {offsets = [0, 0], sizes = [8, 32], strides = [1, 1]} : vector<8x128xf32> to vector<8x32xf32>
    %752 = vector.extract_strided_slice %749 {offsets = [0, 32], sizes = [8, 32], strides = [1, 1]} : vector<8x128xf32> to vector<8x32xf32>
    %753 = vector.extract_strided_slice %750 {offsets = [0, 64], sizes = [8, 32], strides = [1, 1]} : vector<8x128xf32> to vector<8x32xf32>
    %754 = vector.extract_strided_slice %749 {offsets = [0, 96], sizes = [8, 32], strides = [1, 1]} : vector<8x128xf32> to vector<8x32xf32>
    %755 = arith.mulf %752, %739 : vector<8x32xf32>
    %756 = arith.mulf %751, %753 : vector<8x32xf32>
    %757 = arith.addf %755, %756 : vector<8x32xf32>
    %758 = math.tanh %757 : vector<8x32xf32>
    %759 = arith.mulf %754, %758 : vector<8x32xf32>
    %c40_277 = arith.constant 40 : index
    %c0_278 = arith.constant 0 : index
    %760 = vector.load %arg10[%c40_277, %c0_278] : memref<64x128xf32, #tpu.memory_space<vmem>>, vector<8x128xf32>
    %cst_279 = arith.constant dense<0.000000e+00> : vector<8x128xf32>
    %761 = tpu.matmul %759, %661, %cst_279 {dimension_numbers = #tpu.dot_dimension_numbers<[1], [0], [0], [1], [0, 0, 1, 1], [], []>} : vector<8x32xf32>, vector<32x128xf32>, vector<8x128xf32> -> vector<8x128xf32>
    %762 = arith.addf %760, %761 : vector<8x128xf32>
    %763 = arith.negf %762 : vector<8x128xf32>
    %764 = math.exp %763 : vector<8x128xf32>
    %cst_280 = arith.constant 1.000000e+00 : f32
    %765 = vector.broadcast %cst_280 : f32 to vector<8x128xf32>
    %766 = arith.addf %765, %764 : vector<8x128xf32>
    %767 = arith.divf %765, %766 : vector<8x128xf32>
    %768 = math.tanh %762 : vector<8x128xf32>
    %769 = vector.extract_strided_slice %767 {offsets = [0, 0], sizes = [8, 32], strides = [1, 1]} : vector<8x128xf32> to vector<8x32xf32>
    %770 = vector.extract_strided_slice %767 {offsets = [0, 32], sizes = [8, 32], strides = [1, 1]} : vector<8x128xf32> to vector<8x32xf32>
    %771 = vector.extract_strided_slice %768 {offsets = [0, 64], sizes = [8, 32], strides = [1, 1]} : vector<8x128xf32> to vector<8x32xf32>
    %772 = vector.extract_strided_slice %767 {offsets = [0, 96], sizes = [8, 32], strides = [1, 1]} : vector<8x128xf32> to vector<8x32xf32>
    %773 = arith.mulf %770, %757 : vector<8x32xf32>
    %774 = arith.mulf %769, %771 : vector<8x32xf32>
    %775 = arith.addf %773, %774 : vector<8x32xf32>
    %776 = math.tanh %775 : vector<8x32xf32>
    %777 = arith.mulf %772, %776 : vector<8x32xf32>
    %c48_281 = arith.constant 48 : index
    %c0_282 = arith.constant 0 : index
    %778 = vector.load %arg10[%c48_281, %c0_282] : memref<64x128xf32, #tpu.memory_space<vmem>>, vector<8x128xf32>
    %cst_283 = arith.constant dense<0.000000e+00> : vector<8x128xf32>
    %779 = tpu.matmul %777, %661, %cst_283 {dimension_numbers = #tpu.dot_dimension_numbers<[1], [0], [0], [1], [0, 0, 1, 1], [], []>} : vector<8x32xf32>, vector<32x128xf32>, vector<8x128xf32> -> vector<8x128xf32>
    %780 = arith.addf %778, %779 : vector<8x128xf32>
    %781 = arith.negf %780 : vector<8x128xf32>
    %782 = math.exp %781 : vector<8x128xf32>
    %cst_284 = arith.constant 1.000000e+00 : f32
    %783 = vector.broadcast %cst_284 : f32 to vector<8x128xf32>
    %784 = arith.addf %783, %782 : vector<8x128xf32>
    %785 = arith.divf %783, %784 : vector<8x128xf32>
    %786 = math.tanh %780 : vector<8x128xf32>
    %787 = vector.extract_strided_slice %785 {offsets = [0, 0], sizes = [8, 32], strides = [1, 1]} : vector<8x128xf32> to vector<8x32xf32>
    %788 = vector.extract_strided_slice %785 {offsets = [0, 32], sizes = [8, 32], strides = [1, 1]} : vector<8x128xf32> to vector<8x32xf32>
    %789 = vector.extract_strided_slice %786 {offsets = [0, 64], sizes = [8, 32], strides = [1, 1]} : vector<8x128xf32> to vector<8x32xf32>
    %790 = vector.extract_strided_slice %785 {offsets = [0, 96], sizes = [8, 32], strides = [1, 1]} : vector<8x128xf32> to vector<8x32xf32>
    %791 = arith.mulf %788, %775 : vector<8x32xf32>
    %792 = arith.mulf %787, %789 : vector<8x32xf32>
    %793 = arith.addf %791, %792 : vector<8x32xf32>
    %794 = math.tanh %793 : vector<8x32xf32>
    %795 = arith.mulf %790, %794 : vector<8x32xf32>
    %c56_285 = arith.constant 56 : index
    %c0_286 = arith.constant 0 : index
    %796 = vector.load %arg10[%c56_285, %c0_286] : memref<64x128xf32, #tpu.memory_space<vmem>>, vector<8x128xf32>
    %cst_287 = arith.constant dense<0.000000e+00> : vector<8x128xf32>
    %797 = tpu.matmul %795, %661, %cst_287 {dimension_numbers = #tpu.dot_dimension_numbers<[1], [0], [0], [1], [0, 0, 1, 1], [], []>} : vector<8x32xf32>, vector<32x128xf32>, vector<8x128xf32> -> vector<8x128xf32>
    %798 = arith.addf %796, %797 : vector<8x128xf32>
    %799 = arith.negf %798 : vector<8x128xf32>
    %800 = math.exp %799 : vector<8x128xf32>
    %cst_288 = arith.constant 1.000000e+00 : f32
    %801 = vector.broadcast %cst_288 : f32 to vector<8x128xf32>
    %802 = arith.addf %801, %800 : vector<8x128xf32>
    %803 = arith.divf %801, %802 : vector<8x128xf32>
    %804 = math.tanh %798 : vector<8x128xf32>
    %805 = vector.extract_strided_slice %803 {offsets = [0, 0], sizes = [8, 32], strides = [1, 1]} : vector<8x128xf32> to vector<8x32xf32>
    %806 = vector.extract_strided_slice %803 {offsets = [0, 32], sizes = [8, 32], strides = [1, 1]} : vector<8x128xf32> to vector<8x32xf32>
    %807 = vector.extract_strided_slice %804 {offsets = [0, 64], sizes = [8, 32], strides = [1, 1]} : vector<8x128xf32> to vector<8x32xf32>
    %808 = vector.extract_strided_slice %803 {offsets = [0, 96], sizes = [8, 32], strides = [1, 1]} : vector<8x128xf32> to vector<8x32xf32>
    %809 = arith.mulf %806, %793 : vector<8x32xf32>
    %810 = arith.mulf %805, %807 : vector<8x32xf32>
    %811 = arith.addf %809, %810 : vector<8x32xf32>
    %812 = math.tanh %811 : vector<8x32xf32>
    %813 = arith.mulf %808, %812 : vector<8x32xf32>
    %c0_289 = arith.constant 0 : index
    %c0_290 = arith.constant 0 : index
    %814 = vector.load %arg7[%c0_289, %c0_290] : memref<32x3xf32, #tpu.memory_space<vmem>>, vector<32x3xf32>
    %cst_291 = arith.constant dense<0.000000e+00> : vector<8x3xf32>
    %815 = tpu.matmul %813, %814, %cst_291 {dimension_numbers = #tpu.dot_dimension_numbers<[1], [0], [0], [1], [0, 0, 1, 1], [], []>} : vector<8x32xf32>, vector<32x3xf32>, vector<8x3xf32> -> vector<8x3xf32>
    %c0_292 = arith.constant 0 : index
    %c0_293 = arith.constant 0 : index
    %816 = vector.load %arg8[%c0_292, %c0_293] : memref<1x3xf32, #tpu.memory_space<vmem>>, vector<1x3xf32>
    %817 = vector.broadcast %816 : vector<1x3xf32> to vector<8x3xf32>
    %818 = arith.addf %815, %817 : vector<8x3xf32>
    %c0_294 = arith.constant 0 : index
    %c0_295 = arith.constant 0 : index
    %819 = vector.load %arg9[%c0_294, %c0_295] : memref<8x3xf32, #tpu.memory_space<vmem>>, vector<8x3xf32>
    tpu.vector_store %arg9[%c0_294, %c0_295], %818 {strides = array<i32>} : memref<8x3xf32, #tpu.memory_space<vmem>>, vector<8x3xf32>,
    return
  }
}

</mosaic_0001>

<bundles_post_ra>
// kernel: lstm_model_forward.1
= control target key start
LH: loop header
LB: loop body
LE: loop exit
PB: predicated region body
PF: predicated region fallthrough
CT: control target
= control target key end

     0   :  { %14 = vsyncpa [#allocation5], 0  ;;  %s4440_s0 = inlined_call_operand.vmem [shape: f32[64,4], index: 0, kind: input, shape index: {}]   ;;  %s4441_s1 = inlined_call_operand.vmem [shape: f32[4,128], index: 1, kind: input, shape index: {}]   ;;  %s4442_s2 = inlined_call_operand.vmem [shape: f32[32,128], index: 2, kind: input, shape index: {}]   ;;  %s4443_s3 = inlined_call_operand.vmem [shape: f32[1,128], index: 3, kind: input, shape index: {}]   ;;  %s4444_s4 = inlined_call_operand.hbm [shape: f32[4,32,128], index: 4, kind: input, shape index: {}]   ;;  %s4445_s5 = inlined_call_operand.hbm [shape: f32[4,32,128], index: 5, kind: input, shape index: {}]   ;;  %s4446_s6 = inlined_call_operand.vmem [shape: f32[4,1,128], index: 6, kind: input, shape index: {}]   ;;  %s4447_s7 = inlined_call_operand.vmem [shape: f32[32,3], index: 7, kind: input, shape index: {}]   ;;  %s4448_s8 = inlined_call_operand.vmem [shape: f32[1,3], index: 8, kind: input, shape index: {}]   ;;  %s4449_s9 = inlined_call_operand.vmem [shape: f32[8,3], index: 9, kind: output, shape index: {}]  }
   0x1   :  { %s28_s11 = sshll.u32 %s4444_s4, 4  ;;  %s29_s11 = int_to_ptr.hbm [resolvable:$true] %s28_s11 }
   0x2   :  { %15 = vsyncpa [#allocation7], 0  ;;  %s3705_s12 = smov [#allocation4]   ;;  %s41_s16 = sshll.u32 %s4445_s5, 4  ;;  %s42_s16 = int_to_ptr.hbm [resolvable:$true] %s41_s16 }
   0x3   :  { %s30_s13 = sshll.u32 %s3705_s12, 4  ;;  %s3706_s17 = smov 128   ;;  %s31_s13 = int_to_ptr.vmem [resolvable:$true] %s30_s13 }
   0x4   :  { %s3707_s18 = smov 8   ;;  %s3708_s19 = smov [#allocation6]  }
   0x5   :  { %36 = dma.hbm_to_vmem [thread:$0]  %s29_s11, 2048, %s31_s13, [#allocation5], %s3706_s17, %s3706_s17, %s3707_s18  }
   0x6   :  { %s43_s20 = sshll.u32 %s3708_s19, 4  ;;  %s44_s20 = int_to_ptr.vmem [resolvable:$true] %s43_s20 }
   0x7   :  { %49 = dma.hbm_to_vmem [thread:$0]  %s42_s16, 2048, %s44_s20, [#allocation7], %s3706_s17, %s3706_s17, %s3707_s18  }
   0x8   :  { %3701 = dma.done.wait [#allocation5], 2048  }
   0x9   :  { %3702 = vsyncadd [#allocation5], 4294965248 }
   0xa   :  { %3703 = dma.done.wait [#allocation7], 2048  }
   0xb   :  { %3704 = vsyncadd [#allocation7], 4294965248  ;;  %vm106_vm0 = vcmask 1043456   ;;  %v3771_v0 = vld [vmem:[%s4442_s2 + $0x18] sm:$0xff]  ;;  %v3776_v1 = vld [vmem:[%s4442_s2 + $0x10] sm:$0xff]  ;;  %vm81_vm1 = vcmask 31744  }
   0xc   :  { %176 = vmatpush.msra.mxu2 %v3771_v0  ;;  %v72_v2 = vld [vmem:[%s4441_s1] sm:$0xf]  ;;  %308 = vmatpush.msra.mxu3 %v3771_v0  ;;  %v3789_v4 = vld [vmem:[%s4442_s2 + $0x8] sm:$0xff]  ;;  %v3709_v6 = vmov 0.0   ;;  %s3710_s10 = smov 64   ;;  %s3711_s11 = smov 32  }
   0xd   :  { %v64_v3 = vld [vmem:[%s4440_s0] sm:$0xff]  ;;  %3196 = vmatpush.msk.msra.mxu0 %vm106_vm0, %v72_v2  ;;  %v65_v34 = vld [vmem:[%s4440_s0 + $0x8] sm:$0xff]  ;;  %vm160_vm6 = vcmask 261120   ;;  %v66_v62 = vld [vmem:[%s4440_s0 + $0x10] sm:$0xff] }
   0xe   :  { %177 = vmatpush.msra.mxu2 %v3776_v1  ;;  %3197 = vmatmul.msk.f32.vlgmr.msra.gmra.mxu0 %vm81_vm1, %v64_v3  ;;  %v3796_v5 = vld [vmem:[%s4442_s2] sm:$0xff] }
   0xf   :  { %309 = vmatpush.msra.mxu3 %v3776_v1  ;;  %572 = vmatpush.msrb.mxu0 %v3771_v0  ;;  %v3823_v7 = vld [vmem:[%s4443_s3] ss:$0 sm:$0xff] }
  0x10   :  { %178 = vmatpush.msra.mxu2 %v3789_v4 }
  0x11   :  { %310 = vmatpush.msra.mxu3 %v3789_v4  ;;  %573 = vmatpush.msrb.mxu0 %v3776_v1 }
  0x12   :  { %179 = vmatpush.msra.mxu2 %v3796_v5 }
  0x13   :  { %180 = vmatmul.f32.vlgmr.msra.gmra.mxu2 %v3709_v6  ;;  %311 = vmatpush.msra.mxu3 %v3796_v5 }
  0x14   :  { %242 = vmatpush.msrb.mxu2 %v3771_v0  ;;  %574 = vmatpush.msrb.mxu0 %v3789_v4 }
  0x15   :  { %374 = vmatpush.msrb.mxu3 %v3771_v0 }
  0x16   :  { %243 = vmatpush.msrb.mxu2 %v3776_v1  ;;  %575 = vmatpush.msrb.mxu0 %v3796_v5 }
  0x17   :  { %375 = vmatpush.msrb.mxu3 %v3776_v1  ;;  %3198 = vmatmul.msk.f32.gmra.mxu0 %vm81_vm1, %v65_v34 }
  0x18   :  { %244 = vmatpush.msrb.mxu2 %v3789_v4 }
  0x19   :  { %376 = vmatpush.msrb.mxu3 %v3789_v4 }
  0x1a   :  { %245 = vmatpush.msrb.mxu2 %v3796_v5 }
  0x1b   :  { %377 = vmatpush.msrb.mxu3 %v3796_v5 }
  0x1c   :  { %440 = vmatpush.msra.mxu2 %v3771_v0 }
  0x1e   :  { %441 = vmatpush.msra.mxu2 %v3776_v1 }
  0x1f   :  { %3199 = vmatmul.msk.f32.gmra.mxu0 %vm81_vm1, %v66_v62 }
  0x20   :  { %442 = vmatpush.msra.mxu2 %v3789_v4 }
  0x22   :  { %443 = vmatpush.msra.mxu2 %v3796_v5 }
  0x8b   :  { %v127_v8 = vpop.f32.mrf.mxu0 }
  0x8c   :  { %v128_v9 = vadd.f32 %v3823_v7, %v127_v8 }
  0x94   :  { %v130_v36 = vpop.f32.mrf.mxu0 }
  0x95   :  { %v131_v37 = vadd.f32 %v3823_v7, %v130_v36 }
  0x96   :  { %v181_v10 = vpop.f32.mrf.mxu2 }
  0x97   :  { %v184_v11 = vadd.f32 %v181_v10, %v128_v9 }
  0x99   :  { %3329 = vtanh.f32 %v184_v11  ;;  %v3205_v13 = vmul.f32 -1.442695, %v184_v11 }
  0x9b   :  { %3331 = vpow2.f32 %v3205_v13 }
  0x9c   :  { %v133_v2 = vpop.f32.mrf.mxu0 }
  0x9d   :  { %v134_v3 = vadd.f32 %v3823_v7, %v133_v2 }
  0x9f   :  { %v3330_v12 = vpop.eup %3329 }
  0xa0   :  { %207 = vrot.lane.b32.xlu0 %v3330_v12, %s3710_s10 }
  0xa1   :  { %v3332_v14 = vpop.eup %3331 }
  0xa2   :  { %v188_v15 = vadd.f32 1.0, %v3332_v14 }
  0xa4   :  { %3333 = vrcp.f32 %v188_v15  ;;  %v200_v21 = vand.u32 2147483648, %v188_v15  ;;  %vm194_vm3 = vweird.f32 %v188_v15  ;;  %v198_v22 = vand.u32 2147483647, %v188_v15 }
  0xa6   :  { %v201_v24 = vor.u32 1.1754944e-38, %v200_v21  ;;  %vm199_vm5 = vcmp.eq.f32.partialorder %v198_v22, 8.507059e+37 }
  0xaa   :  { %v3334_v16 = vpop.eup %3333 }
  0xab   :  { %v190_v17 = vmul.f32 %v3334_v16, %v188_v15  ;;  %vm195_vm2 = vweird.f32 %v3334_v16 }
  0xac   :  { %vm196_vm4 = vmor %vm194_vm3, %vm195_vm2 }
  0xad   :  { %v191_v18 = vsub.f32 1.0, %v190_v17 }
  0xaf   :  { %v192_v19 = vmul.f32 %v3334_v16, %v191_v18 }
  0xb1   :  { %v193_v20 = vadd.f32 %v3334_v16, %v192_v19 }
  0xb3   :  { %v197_v23 = vsel %vm196_vm4, %v3334_v16, %v193_v20 }
  0xb4   :  { %v202_v26 = vsel %vm199_vm5, %v201_v24, %v197_v23 }
  0xb5   :  { %v205_v28 = vmul.f32 0.0, %v202_v26 }
 0x112   :  { %v208_v25 = vpop.permute.xlu0 %207 }
 0x113   :  { %v210_v27 = vmul.f32 %v208_v25, %v202_v26 }
 0x115   :  { %212 = vrot.lane.b32.xlu0 %v210_v27, %s3711_s11 }
 0x187   :  { %v213_v29 = vpop.permute.xlu0 %212 }
 0x188   :  { %v215_v30 = vadd.f32 %v213_v29, %v205_v28  ;;  %v67_v28 = vld [vmem:[%s4440_s0 + $0x18] sm:$0xff] }
 0x189   :  { %3200 = vmatmul.msk.f32.gmra.mxu0 %vm81_vm1, %v67_v28  ;;  %v3891_v28 = vld [vmem:[#allocation6 + $0x10] sm:$0xff] }
 0x18a   :  { %3335 = vtanh.f32 %v215_v30 }
 0x190   :  { %v3336_v31 = vpop.eup %3335 }
 0x191   :  { %218 = vrot.lane.b32.xlu1 %v3336_v31, %s3710_s10 }
 0x203   :  { %v219_v32 = vpop.permute.xlu1 %218 }
 0x204   :  { %v221_v33 = vmul.f32 %v219_v32, %v202_v26 }
 0x206   :  { %223 = vrot.lane.b32.xlu1 %v221_v33, %s3711_s11 }
 0x278   :  { %v224_v35 = vpop.permute.xlu1 %223 }
 0x279   :  { %226 = vst.msk [vmem:[#allocation3] sm:$0xff] %vm160_vm6, %v224_v35  ;;  %3206 = vmatmul.msk.f32.vlgmr.msrb.gmra.mxu2 %vm160_vm6, %v224_v35 }
 0x27a   :  { %638 = vmatpush.msrb.mxu2 %v3771_v0 }
 0x27c   :  { %639 = vmatpush.msrb.mxu2 %v3776_v1 }
 0x27e   :  { %640 = vmatpush.msrb.mxu2 %v3789_v4 }
 0x280   :  { %641 = vmatpush.msrb.mxu2 %v3796_v5 }
 0x2fc   :  { %v247_v38 = vpop.f32.mrf.mxu2 }
 0x2fd   :  { %v250_v39 = vadd.f32 %v247_v38, %v131_v37 }
 0x2ff   :  { %3337 = vtanh.f32 %v250_v39  ;;  %v3207_v41 = vmul.f32 -1.442695, %v250_v39 }
 0x301   :  { %3339 = vpow2.f32 %v3207_v41 }
 0x305   :  { %v3338_v40 = vpop.eup %3337 }
 0x306   :  { %273 = vrot.lane.b32.xlu2 %v3338_v40, %s3710_s10 }
 0x307   :  { %v3340_v42 = vpop.eup %3339 }
 0x308   :  { %v254_v43 = vadd.f32 1.0, %v3340_v42 }
 0x30a   :  { %3341 = vrcp.f32 %v254_v43  ;;  %v266_v49 = vand.u32 2147483648, %v254_v43  ;;  %vm260_vm8 = vweird.f32 %v254_v43  ;;  %v264_v50 = vand.u32 2147483647, %v254_v43 }
 0x30c   :  { %v267_v52 = vor.u32 1.1754944e-38, %v266_v49  ;;  %vm265_vm10 = vcmp.eq.f32.partialorder %v264_v50, 8.507059e+37 }
 0x310   :  { %v3342_v44 = vpop.eup %3341 }
 0x311   :  { %v256_v45 = vmul.f32 %v3342_v44, %v254_v43  ;;  %vm261_vm7 = vweird.f32 %v3342_v44 }
 0x312   :  { %vm262_vm9 = vmor %vm260_vm8, %vm261_vm7 }
 0x313   :  { %v257_v46 = vsub.f32 1.0, %v256_v45 }
 0x315   :  { %v258_v47 = vmul.f32 %v3342_v44, %v257_v46 }
 0x317   :  { %v259_v48 = vadd.f32 %v3342_v44, %v258_v47 }
 0x319   :  { %v263_v51 = vsel %vm262_vm9, %v3342_v44, %v259_v48 }
 0x31a   :  { %v268_v54 = vsel %vm265_vm10, %v267_v52, %v263_v51 }
 0x31b   :  { %v271_v56 = vmul.f32 %v268_v54, %v215_v30  ;;  %v136_v30 = vpop.f32.mrf.mxu0 }
 0x31c   :  { %v137_v31 = vadd.f32 %v3823_v7, %v136_v30  ;;  %v3899_v30 = vld [vmem:[#allocation6] sm:$0xff] }
 0x360   :  { %v274_v53 = vpop.permute.xlu2 %273 }
 0x361   :  { %v276_v55 = vmul.f32 %v274_v53, %v268_v54 }
 0x363   :  { %278 = vrot.lane.b32.xlu2 %v276_v55, %s3711_s11 }
 0x3bd   :  { %v279_v57 = vpop.permute.xlu2 %278 }
 0x3be   :  { %v281_v58 = vadd.f32 %v279_v57, %v271_v56  ;;  %v68_v56 = vld [vmem:[%s4440_s0 + $0x20] sm:$0xff] }
 0x3bf   :  { %3201 = vmatmul.msk.f32.gmra.mxu0 %vm81_vm1, %v68_v56 }
 0x3c0   :  { %3343 = vtanh.f32 %v281_v58 }
 0x3c6   :  { %v3344_v59 = vpop.eup %3343 }
 0x3c7   :  { %284 = vrot.lane.b32.xlu0 %v3344_v59, %s3710_s10 }
 0x439   :  { %v285_v60 = vpop.permute.xlu0 %284 }
 0x43a   :  { %v287_v61 = vmul.f32 %v285_v60, %v268_v54 }
 0x43c   :  { %289 = vrot.lane.b32.xlu1 %v287_v61, %s3711_s11 }
 0x4ae   :  { %v290_v63 = vpop.permute.xlu1 %289 }
 0x4af   :  { %292 = vst.msk [vmem:[#allocation3 + $0x8] sm:$0xff] %vm160_vm6, %v290_v63  ;;  %3208 = vmatmul.msk.f32.vlgmr.msra.gmra.mxu3 %vm160_vm6, %v290_v63 }
 0x4b0   :  { %506 = vmatpush.msra.mxu3 %v3771_v0 }
 0x4b2   :  { %507 = vmatpush.msra.mxu3 %v3776_v1 }
 0x4b4   :  { %508 = vmatpush.msra.mxu3 %v3789_v4 }
 0x4b6   :  { %509 = vmatpush.msra.mxu3 %v3796_v5 }
 0x532   :  { %v313_v8 = vpop.f32.mrf.mxu3 }
 0x533   :  { %v316_v9 = vadd.f32 %v313_v8, %v134_v3 }
 0x535   :  { %3345 = vtanh.f32 %v316_v9  ;;  %v3209_v11 = vmul.f32 -1.442695, %v316_v9 }
 0x537   :  { %3347 = vpow2.f32 %v3209_v11 }
 0x53b   :  { %v3346_v10 = vpop.eup %3345 }
 0x53c   :  { %339 = vrot.lane.b32.xlu2 %v3346_v10, %s3710_s10 }
 0x53d   :  { %v3348_v12 = vpop.eup %3347 }
 0x53e   :  { %v320_v13 = vadd.f32 1.0, %v3348_v12 }
 0x540   :  { %3349 = vrcp.f32 %v320_v13  ;;  %v332_v5 = vand.u32 2147483648, %v320_v13  ;;  %vm326_vm12 = vweird.f32 %v320_v13  ;;  %v330_v16 = vand.u32 2147483647, %v320_v13 }
 0x542   :  { %v333_v18 = vor.u32 1.1754944e-38, %v332_v5  ;;  %vm331_vm14 = vcmp.eq.f32.partialorder %v330_v16, 8.507059e+37 }
 0x546   :  { %v3350_v0 = vpop.eup %3349 }
 0x547   :  { %v322_v1 = vmul.f32 %v3350_v0, %v320_v13  ;;  %vm327_vm11 = vweird.f32 %v3350_v0 }
 0x548   :  { %vm328_vm13 = vmor %vm326_vm12, %vm327_vm11 }
 0x549   :  { %v323_v14 = vsub.f32 1.0, %v322_v1 }
 0x54b   :  { %v324_v4 = vmul.f32 %v3350_v0, %v323_v14 }
 0x54d   :  { %v325_v15 = vadd.f32 %v3350_v0, %v324_v4 }
 0x54f   :  { %v329_v17 = vsel %vm328_vm13, %v3350_v0, %v325_v15 }
 0x550   :  { %v334_v20 = vsel %vm331_vm14, %v333_v18, %v329_v17 }
 0x551   :  { %v337_v22 = vmul.f32 %v334_v20, %v281_v58  ;;  %v139_v58 = vpop.f32.mrf.mxu0 }
 0x552   :  { %v140_v59 = vadd.f32 %v3823_v7, %v139_v58 }
 0x596   :  { %v340_v19 = vpop.permute.xlu2 %339 }
 0x597   :  { %v342_v21 = vmul.f32 %v340_v19, %v334_v20 }
 0x599   :  { %344 = vrot.lane.b32.xlu0 %v342_v21, %s3711_s11 }
 0x60b   :  { %v345_v23 = vpop.permute.xlu0 %344 }
 0x60c   :  { %v347_v24 = vadd.f32 %v345_v23, %v337_v22  ;;  %v700_v22 = vld [vmem:[#allocation4 + $0x18] sm:$0xff]  ;;  %v699_v23 = vld [vmem:[#allocation4 + $0x10] sm:$0xff] }
 0x60e   :  { %3351 = vtanh.f32 %v347_v24 }
 0x614   :  { %v3352_v25 = vpop.eup %3351 }
 0x615   :  { %350 = vrot.lane.b32.xlu1 %v3352_v25, %s3710_s10  ;;  %v698_v25 = vld [vmem:[#allocation4 + $0x8] sm:$0xff] }
 0x687   :  { %v351_v26 = vpop.permute.xlu1 %350 }
 0x688   :  { %v353_v27 = vmul.f32 %v351_v26, %v334_v20  ;;  %v697_v26 = vld [vmem:[#allocation4] sm:$0xff] }
 0x68a   :  { %355 = vrot.lane.b32.xlu2 %v353_v27, %s3711_s11  ;;  %v3889_v27 = vld [vmem:[#allocation6 + $0x18] sm:$0xff] }
 0x68b   :  { %795 = vmatpush.msra.mxu1 %v3889_v27 }
 0x68d   :  { %796 = vmatpush.msra.mxu1 %v3891_v28 }
 0x6e4   :  { %v356_v29 = vpop.permute.xlu2 %355 }
 0x6e5   :  { %358 = vst.msk [vmem:[#allocation3 + $0x10] sm:$0xff] %vm160_vm6, %v356_v29  ;;  %3210 = vmatmul.msk.f32.vlgmr.msrb.gmra.mxu3 %vm160_vm6, %v356_v29  ;;  %v3895_v29 = vld [vmem:[#allocation6 + $0x8] sm:$0xff] }
 0x6e6   :  { %745 = vmatpush.msrb.mxu3 %v700_v22  ;;  %797 = vmatpush.msra.mxu1 %v3895_v29 }
 0x6e8   :  { %746 = vmatpush.msrb.mxu3 %v699_v23  ;;  %798 = vmatpush.msra.mxu1 %v3899_v30 }
 0x6e9   :  { %799 = vmatmul.f32.vlgmr.msra.gmra.mxu1 %v3709_v6 }
 0x6ea   :  { %747 = vmatpush.msrb.mxu3 %v698_v25  ;;  %927 = vmatpush.msrb.mxu1 %v3889_v27 }
 0x6ec   :  { %748 = vmatpush.msrb.mxu3 %v697_v26  ;;  %928 = vmatpush.msrb.mxu1 %v3891_v28 }
 0x6ee   :  { %929 = vmatpush.msrb.mxu1 %v3895_v29 }
 0x6f0   :  { %930 = vmatpush.msrb.mxu1 %v3899_v30 }
 0x6f2   :  { %1059 = vmatpush.msra.mxu1 %v3889_v27 }
 0x6f4   :  { %1060 = vmatpush.msra.mxu1 %v3891_v28 }
 0x6f6   :  { %1061 = vmatpush.msra.mxu1 %v3895_v29 }
 0x6f8   :  { %1062 = vmatpush.msra.mxu1 %v3899_v30 }
 0x768   :  { %v379_v32 = vpop.f32.mrf.mxu3 }
 0x769   :  { %v382_v33 = vadd.f32 %v379_v32, %v137_v31  ;;  %v689_v32 = vld [vmem:[#allocation3] sm:$0xff] }
 0x76b   :  { %3353 = vtanh.f32 %v382_v33  ;;  %v3211_v35 = vmul.f32 -1.442695, %v382_v33  ;;  %v690_v33 = vld [vmem:[#allocation3 + $0x8] sm:$0xff] }
 0x76d   :  { %3355 = vpow2.f32 %v3211_v35 }
 0x771   :  { %v3354_v34 = vpop.eup %3353 }
 0x772   :  { %405 = vrot.lane.b32.xlu0 %v3354_v34, %s3710_s10  ;;  %v691_v34 = vld [vmem:[#allocation3 + $0x10] sm:$0xff] }
 0x773   :  { %v3356_v36 = vpop.eup %3355 }
 0x774   :  { %v386_v37 = vadd.f32 1.0, %v3356_v36 }
 0x776   :  { %3357 = vrcp.f32 %v386_v37  ;;  %v398_v43 = vand.u32 2147483648, %v386_v37  ;;  %vm392_vm0 = vweird.f32 %v386_v37  ;;  %v396_v44 = vand.u32 2147483647, %v386_v37 }
 0x778   :  { %v399_v46 = vor.u32 1.1754944e-38, %v398_v43  ;;  %vm397_vm3 = vcmp.eq.f32.partialorder %v396_v44, 8.507059e+37 }
 0x77c   :  { %v3358_v38 = vpop.eup %3357 }
 0x77d   :  { %v388_v39 = vmul.f32 %v3358_v38, %v386_v37  ;;  %vm393_vm15 = vweird.f32 %v3358_v38 }
 0x77e   :  { %vm394_vm2 = vmor %vm392_vm0, %vm393_vm15 }
 0x77f   :  { %v389_v40 = vsub.f32 1.0, %v388_v39 }
 0x781   :  { %v390_v41 = vmul.f32 %v3358_v38, %v389_v40 }
 0x783   :  { %v391_v42 = vadd.f32 %v3358_v38, %v390_v41 }
 0x785   :  { %v395_v45 = vsel %vm394_vm2, %v3358_v38, %v391_v42 }
 0x786   :  { %v400_v48 = vsel %vm397_vm3, %v399_v46, %v395_v45 }
 0x787   :  { %v403_v50 = vmul.f32 %v400_v48, %v347_v24  ;;  %v69_v24 = vld [vmem:[%s4440_s0 + $0x28] sm:$0xff] }
 0x788   :  { %3202 = vmatmul.msk.f32.gmra.mxu0 %vm81_vm1, %v69_v24 }
 0x7e4   :  { %v406_v47 = vpop.permute.xlu0 %405 }
 0x7e5   :  { %v408_v49 = vmul.f32 %v406_v47, %v400_v48 }
 0x7e7   :  { %410 = vrot.lane.b32.xlu1 %v408_v49, %s3711_s11 }
 0x805   :  { %v142_v37 = vpop.f32.mrf.mxu0 }
 0x806   :  { %v143_v38 = vadd.f32 %v3823_v7, %v142_v37 }
 0x859   :  { %v411_v51 = vpop.permute.xlu1 %410 }
 0x85a   :  { %v413_v52 = vadd.f32 %v411_v51, %v403_v50 }
 0x85c   :  { %3359 = vtanh.f32 %v413_v52 }
 0x862   :  { %v3360_v53 = vpop.eup %3359 }
 0x863   :  { %416 = vrot.lane.b32.xlu2 %v3360_v53, %s3710_s10 }
 0x8bd   :  { %v417_v54 = vpop.permute.xlu2 %416 }
 0x8be   :  { %v419_v55 = vmul.f32 %v417_v54, %v400_v48 }
 0x8c0   :  { %421 = vrot.lane.b32.xlu0 %v419_v55, %s3711_s11 }
 0x932   :  { %v422_v57 = vpop.permute.xlu0 %421 }
 0x933   :  { %424 = vst.msk [vmem:[#allocation3 + $0x18] sm:$0xff] %vm160_vm6, %v422_v57  ;;  %3212 = vmatmul.msk.f32.vlgmr.msra.gmra.mxu2 %vm160_vm6, %v422_v57  ;;  %v3927_v57 = vld [vmem:[%s4446_s6] ss:$0 sm:$0xff] }
 0x934   :  { %861 = vmatpush.msra.mxu2 %v3889_v27 }
 0x936   :  { %862 = vmatpush.msra.mxu2 %v3891_v28 }
 0x938   :  { %863 = vmatpush.msra.mxu2 %v3895_v29 }
 0x93a   :  { %864 = vmatpush.msra.mxu2 %v3899_v30  ;;  %v692_v35 = vld [vmem:[#allocation3 + $0x18] sm:$0xff] }
 0x9b6   :  { %v445_v60 = vpop.f32.mrf.mxu2 }
 0x9b7   :  { %v448_v61 = vadd.f32 %v445_v60, %v140_v59 }
 0x9b9   :  { %3361 = vtanh.f32 %v448_v61  ;;  %v3213_v63 = vmul.f32 -1.442695, %v448_v61 }
 0x9bb   :  { %3363 = vpow2.f32 %v3213_v63  ;;  %v800_v63 = vpop.f32.mrf.mxu1 }
 0x9bf   :  { %v3362_v62 = vpop.eup %3361 }
 0x9c0   :  { %471 = vrot.lane.b32.xlu1 %v3362_v62, %s3710_s10 }
 0x9c1   :  { %v3364_v2 = vpop.eup %3363 }
 0x9c2   :  { %v452_v3 = vadd.f32 1.0, %v3364_v2 }
 0x9c4   :  { %3365 = vrcp.f32 %v452_v3  ;;  %v464_v13 = vand.u32 2147483648, %v452_v3  ;;  %vm458_vm5 = vweird.f32 %v452_v3  ;;  %v462_v0 = vand.u32 2147483647, %v452_v3 }
 0x9c6   :  { %v465_v14 = vor.u32 1.1754944e-38, %v464_v13  ;;  %vm463_vm8 = vcmp.eq.f32.partialorder %v462_v0, 8.507059e+37 }
 0x9ca   :  { %v3366_v8 = vpop.eup %3365 }
 0x9cb   :  { %v454_v9 = vmul.f32 %v3366_v8, %v452_v3  ;;  %vm459_vm4 = vweird.f32 %v3366_v8 }
 0x9cc   :  { %vm460_vm7 = vmor %vm458_vm5, %vm459_vm4 }
 0x9cd   :  { %v455_v10 = vsub.f32 1.0, %v454_v9  ;;  %v70_v9 = vld [vmem:[%s4440_s0 + $0x30] sm:$0xff] }
 0x9ce   :  { %3203 = vmatmul.msk.f32.gmra.mxu0 %vm81_vm1, %v70_v9 }
 0x9cf   :  { %v456_v11 = vmul.f32 %v3366_v8, %v455_v10  ;;  %v71_v10 = vld [vmem:[%s4440_s0 + $0x38] sm:$0xff] }
 0x9d1   :  { %v457_v12 = vadd.f32 %v3366_v8, %v456_v11 }
 0x9d3   :  { %v461_v1 = vsel %vm460_vm7, %v3366_v8, %v457_v12 }
 0x9d4   :  { %v466_v15 = vsel %vm463_vm8, %v465_v14, %v461_v1 }
 0x9d5   :  { %v469_v16 = vmul.f32 %v466_v15, %v413_v52 }
 0x9d6   :  { %3204 = vmatmul.msk.f32.gmra.mxu0 %vm81_vm1, %v71_v10 }
 0xa32   :  { %v472_v4 = vpop.permute.xlu1 %471 }
 0xa33   :  { %v474_v5 = vmul.f32 %v472_v4, %v466_v15 }
 0xa35   :  { %476 = vrot.lane.b32.xlu2 %v474_v5, %s3711_s11 }
 0xa4b   :  { %v145_v4 = vpop.f32.mrf.mxu0 }
 0xa53   :  { %v3948_v5 = vpop.f32.mrf.mxu0 }
 0xa8f   :  { %v477_v17 = vpop.permute.xlu2 %476 }
 0xa90   :  { %v3880_v18 = vadd.f32 %v477_v17, %v469_v16 }
 0xa92   :  { %3367 = vtanh.f32 %v3880_v18 }
 0xa98   :  { %v3368_v19 = vpop.eup %3367 }
 0xa99   :  { %482 = vrot.lane.b32.xlu0 %v3368_v19, %s3710_s10 }
 0xb0b   :  { %v483_v20 = vpop.permute.xlu0 %482 }
 0xb0c   :  { %v485_v21 = vmul.f32 %v483_v20, %v466_v15 }
 0xb0e   :  { %487 = vrot.lane.b32.xlu1 %v485_v21, %s3711_s11 }
 0xb80   :  { %v488_v31 = vpop.permute.xlu1 %487 }
 0xb81   :  { %490 = vst.msk [vmem:[#allocation3 + $0x20] sm:$0xff] %vm160_vm6, %v488_v31  ;;  %3214 = vmatmul.msk.f32.vlgmr.msra.gmra.mxu3 %vm160_vm6, %v488_v31 }
 0xb88   :  { %v693_v36 = vld [vmem:[#allocation3 + $0x20] sm:$0xff] }
 0xb89   :  { %3220 = vmatmul.msk.f32.vlgmr.msrb.gmra.mxu3 %vm160_vm6, %v689_v32 }
 0xb91   :  { %3221 = vmatmul.msk.f32.gmra.mxu3 %vm160_vm6, %v690_v33 }
 0xb99   :  { %3222 = vmatmul.msk.f32.gmra.mxu3 %vm160_vm6, %v691_v34 }
 0xba1   :  { %3223 = vmatmul.msk.f32.gmra.mxu3 %vm160_vm6, %v692_v35 }
 0xba9   :  { %3224 = vmatmul.msk.f32.gmra.mxu3 %vm160_vm6, %v693_v36 }
 0xc04   :  { %v511_v39 = vpop.f32.mrf.mxu3 }
 0xc05   :  { %v514_v40 = vadd.f32 %v511_v39, %v143_v38 }
 0xc07   :  { %3369 = vtanh.f32 %v514_v40  ;;  %v3215_v42 = vmul.f32 -1.442695, %v514_v40 }
 0xc09   :  { %3371 = vpow2.f32 %v3215_v42 }
 0xc0c   :  { %v750_v59 = vpop.f32.mrf.mxu3 }
 0xc0d   :  { %v3370_v41 = vpop.eup %3369  ;;  %v751_v62 = vadd.f32 %v3927_v57, %v750_v59 }
 0xc0e   :  { %537 = vrot.lane.b32.xlu2 %v3370_v41, %s3710_s10 }
 0xc0f   :  { %v3372_v43 = vpop.eup %3371  ;;  %v803_v2 = vadd.f32 %v800_v63, %v751_v62 }
 0xc10   :  { %v518_v44 = vadd.f32 1.0, %v3372_v43 }
 0xc11   :  { %v3228_v1 = vmul.f32 -1.442695, %v803_v2 }
 0xc12   :  { %3373 = vrcp.f32 %v518_v44  ;;  %v530_v50 = vand.u32 2147483648, %v518_v44  ;;  %vm524_vm10 = vweird.f32 %v518_v44  ;;  %v528_v51 = vand.u32 2147483647, %v518_v44 }
 0xc14   :  { %v531_v53 = vor.u32 1.1754944e-38, %v530_v50  ;;  %vm529_vm12 = vcmp.eq.f32.partialorder %v528_v51, 8.507059e+37  ;;  %v753_v9 = vpop.f32.mrf.mxu3 }
 0xc15   :  { %v754_v10 = vadd.f32 %v3927_v57, %v753_v9 }
 0xc18   :  { %v3374_v45 = vpop.eup %3373 }
 0xc19   :  { %v520_v46 = vmul.f32 %v3374_v45, %v518_v44  ;;  %vm525_vm9 = vweird.f32 %v3374_v45 }
 0xc1a   :  { %vm526_vm11 = vmor %vm524_vm10, %vm525_vm9 }
 0xc1b   :  { %v521_v47 = vsub.f32 1.0, %v520_v46 }
 0xc1d   :  { %v522_v48 = vmul.f32 %v3374_v45, %v521_v47 }
 0xc1f   :  { %v523_v49 = vadd.f32 %v3374_v45, %v522_v48 }
 0xc21   :  { %v527_v52 = vsel %vm526_vm11, %v3374_v45, %v523_v49 }
 0xc22   :  { %v532_v55 = vsel %vm529_vm12, %v531_v53, %v527_v52 }
 0xc23   :  { %v535_v58 = vmul.f32 %v532_v55, %v3880_v18  ;;  %v146_v18 = vadd.f32 %v3823_v7, %v145_v4 }
 0xc68   :  { %v538_v54 = vpop.permute.xlu2 %537 }
 0xc69   :  { %v540_v56 = vmul.f32 %v538_v54, %v532_v55 }
 0xc6b   :  { %542 = vrot.lane.b32.xlu0 %v540_v56, %s3711_s11 }
 0xcdd   :  { %v543_v60 = vpop.permute.xlu0 %542 }
 0xcde   :  { %v3930_v61 = vadd.f32 %v543_v60, %v535_v58 }
 0xce0   :  { %3375 = vtanh.f32 %v3930_v61 }
 0xce1   :  { %3377 = vtanh.f32 %v803_v2 }
 0xce2   :  { %3379 = vpow2.f32 %v3228_v1 }
 0xce6   :  { %v3376_v3 = vpop.eup %3375 }
 0xce7   :  { %548 = vrot.lane.b32.xlu1 %v3376_v3, %s3710_s10  ;;  %v3378_v8 = vpop.eup %3377 }
 0xce8   :  { %v3380_v14 = vpop.eup %3379 }
 0xce9   :  { %v807_v15 = vadd.f32 1.0, %v3380_v14 }
 0xceb   :  { %3381 = vrcp.f32 %v807_v15  ;;  %v819_v25 = vand.u32 2147483648, %v807_v15  ;;  %vm813_vm13 = vweird.f32 %v807_v15  ;;  %v817_v26 = vand.u32 2147483647, %v807_v15 }
 0xced   :  { %v820_v33 = vor.u32 1.1754944e-38, %v819_v25  ;;  %vm818_vm15 = vcmp.eq.f32.partialorder %v817_v26, 8.507059e+37 }
 0xcef   :  { %826 = vrot.lane.b32.xlu1 %v3378_v8, %s3710_s10 }
 0xcf1   :  { %v3382_v16 = vpop.eup %3381 }
 0xcf2   :  { %v809_v17 = vmul.f32 %v3382_v16, %v807_v15  ;;  %vm814_vm1 = vweird.f32 %v3382_v16 }
 0xcf3   :  { %vm815_vm14 = vmor %vm813_vm13, %vm814_vm1 }
 0xcf4   :  { %v810_v19 = vsub.f32 1.0, %v809_v17 }
 0xcf6   :  { %v811_v22 = vmul.f32 %v3382_v16, %v810_v19 }
 0xcf8   :  { %v812_v23 = vadd.f32 %v3382_v16, %v811_v22 }
 0xcfa   :  { %v816_v31 = vsel %vm815_vm14, %v3382_v16, %v812_v23 }
 0xcfb   :  { %v821_v34 = vsel %vm818_vm15, %v820_v33, %v816_v31 }
 0xcfc   :  { %v824_v50 = vmul.f32 0.0, %v821_v34 }
 0xd59   :  { %v549_v11 = vpop.permute.xlu1 %548 }
 0xd5a   :  { %v551_v12 = vmul.f32 %v549_v11, %v532_v55 }
 0xd5c   :  { %553 = vrot.lane.b32.xlu2 %v551_v12, %s3711_s11 }
 0xd61   :  { %v827_v32 = vpop.permute.xlu1 %826 }
 0xd62   :  { %v829_v7 = vmul.f32 %v827_v32, %v821_v34 }
 0xdb6   :  { %v554_v13 = vpop.permute.xlu2 %553 }
 0xdb7   :  { %556 = vst.msk [vmem:[#allocation3 + $0x28] sm:$0xff] %vm160_vm6, %v554_v13  ;;  %3216 = vmatmul.msk.f32.vlgmr.msrb.gmra.mxu0 %vm160_vm6, %v554_v13 }
 0xdbe   :  { %v694_v0 = vld [vmem:[#allocation3 + $0x28] sm:$0xff] }
 0xdbf   :  { %3225 = vmatmul.msk.f32.gmra.mxu3 %vm160_vm6, %v694_v0 }
 0xe34   :  { %v577_v20 = vpop.f32.mrf.mxu0 }
 0xe35   :  { %v580_v21 = vadd.f32 %v577_v20, %v146_v18 }
 0xe37   :  { %3383 = vtanh.f32 %v580_v21  ;;  %v3217_v35 = vmul.f32 -1.442695, %v580_v21 }
 0xe39   :  { %3385 = vpow2.f32 %v3217_v35 }
 0xe3d   :  { %v3384_v24 = vpop.eup %3383 }
 0xe3e   :  { %603 = vrot.lane.b32.xlu0 %v3384_v24, %s3710_s10 }
 0xe3f   :  { %v3386_v36 = vpop.eup %3385 }
 0xe40   :  { %v584_v37 = vadd.f32 1.0, %v3386_v36  ;;  %v756_v36 = vpop.f32.mrf.mxu3 }
 0xe42   :  { %3387 = vrcp.f32 %v584_v37  ;;  %v596_v43 = vand.u32 2147483648, %v584_v37  ;;  %vm590_vm2 = vweird.f32 %v584_v37  ;;  %v594_v44 = vand.u32 2147483647, %v584_v37 }
 0xe44   :  { %v597_v46 = vor.u32 1.1754944e-38, %v596_v43  ;;  %vm595_vm4 = vcmp.eq.f32.partialorder %v594_v44, 8.507059e+37 }
 0xe46   :  { %831 = vrot.lane.b32.xlu0 %v829_v7, %s3711_s11 }
 0xe48   :  { %v3388_v38 = vpop.eup %3387 }
 0xe49   :  { %v586_v39 = vmul.f32 %v3388_v38, %v584_v37  ;;  %vm591_vm0 = vweird.f32 %v3388_v38  ;;  %v757_v37 = vadd.f32 %v3927_v57, %v756_v36 }
 0xe4a   :  { %vm592_vm3 = vmor %vm590_vm2, %vm591_vm0 }
 0xe4b   :  { %v587_v40 = vsub.f32 1.0, %v586_v39 }
 0xe4d   :  { %v588_v41 = vmul.f32 %v3388_v38, %v587_v40 }
 0xe4f   :  { %v589_v42 = vadd.f32 %v3388_v38, %v588_v41 }
 0xe51   :  { %v593_v45 = vsel %vm592_vm3, %v3388_v38, %v589_v42 }
 0xe52   :  { %v598_v48 = vsel %vm595_vm4, %v597_v46, %v593_v45 }
 0xe53   :  { %v601_v54 = vmul.f32 %v598_v48, %v3930_v61 }
 0xeb0   :  { %v604_v47 = vpop.permute.xlu0 %603 }
 0xeb1   :  { %v606_v49 = vmul.f32 %v604_v47, %v598_v48 }
 0xeb3   :  { %608 = vrot.lane.b32.xlu2 %v606_v49, %s3711_s11 }
 0xeb8   :  { %v832_v51 = vpop.permute.xlu0 %831 }
 0xeb9   :  { %v834_v52 = vadd.f32 %v832_v51, %v824_v50 }
 0xebb   :  { %3389 = vtanh.f32 %v834_v52 }
 0xec1   :  { %v3390_v53 = vpop.eup %3389 }
 0xec2   :  { %837 = vrot.lane.b32.xlu2 %v3390_v53, %s3710_s10 }
 0xf0d   :  { %v609_v55 = vpop.permute.xlu2 %608 }
 0xf0e   :  { %v3956_v56 = vadd.f32 %v609_v55, %v601_v54 }
 0xf10   :  { %3391 = vtanh.f32 %v3956_v56 }
 0xf16   :  { %v3392_v58 = vpop.eup %3391 }
 0xf17   :  { %614 = vrot.lane.b32.xlu1 %v3392_v58, %s3710_s10 }
 0xf1c   :  { %v838_v59 = vpop.permute.xlu2 %837 }
 0xf1d   :  { %v840_v60 = vmul.f32 %v838_v59, %v821_v34 }
 0xf1f   :  { %842 = vrot.lane.b32.xlu1 %v840_v60, %s3711_s11 }
 0xf89   :  { %v615_v62 = vpop.permute.xlu1 %614 }
 0xf8a   :  { %v617_v63 = vmul.f32 %v615_v62, %v598_v48 }
 0xf8c   :  { %619 = vrot.lane.b32.xlu0 %v617_v63, %s3711_s11 }
 0xf91   :  { %v843_v2 = vpop.permute.xlu1 %842 }
 0xf92   :  { %845 = vst.msk [vmem:[#allocation3] sm:$0xff] %vm160_vm6, %v843_v2 }
 0xffe   :  { %v620_v61 = vpop.permute.xlu0 %619 }
 0xfff   :  { %622 = vst.msk [vmem:[#allocation3 + $0x30] sm:$0xff] %vm160_vm6, %v620_v61  ;;  %3218 = vmatmul.msk.f32.vlgmr.msrb.gmra.mxu2 %vm160_vm6, %v620_v61 }
0x1000   :  { %993 = vmatpush.msrb.mxu2 %v3889_v27 }
0x1002   :  { %994 = vmatpush.msrb.mxu2 %v3891_v28 }
0x1004   :  { %995 = vmatpush.msrb.mxu2 %v3895_v29 }
0x1006   :  { %v695_v3 = vld [vmem:[#allocation3 + $0x30] sm:$0xff]  ;;  %996 = vmatpush.msrb.mxu2 %v3899_v30 }
0x1007   :  { %3226 = vmatmul.msk.f32.gmra.mxu3 %vm160_vm6, %v695_v3  ;;  %3229 = vmatmul.msk.f32.vlgmr.msra.gmra.mxu2 %vm160_vm6, %v843_v2  ;;  %v759_v3 = vpop.f32.mrf.mxu3 }
0x1008   :  { %1125 = vmatpush.msra.mxu2 %v3889_v27  ;;  %v760_v9 = vadd.f32 %v3927_v57, %v759_v3 }
0x100a   :  { %1126 = vmatpush.msra.mxu2 %v3891_v28 }
0x100c   :  { %1127 = vmatpush.msra.mxu2 %v3895_v29 }
0x100e   :  { %1128 = vmatpush.msra.mxu2 %v3899_v30 }
0x1082   :  { %v3975_v8 = vpop.f32.mrf.mxu2 }
0x108a   :  { %v866_v11 = vpop.f32.mrf.mxu2 }
0x108b   :  { %v869_v12 = vadd.f32 %v866_v11, %v754_v10 }
0x108d   :  { %3393 = vtanh.f32 %v869_v12  ;;  %v3230_v0 = vmul.f32 -1.442695, %v869_v12 }
0x108f   :  { %3395 = vpow2.f32 %v3230_v0 }
0x1093   :  { %v3394_v13 = vpop.eup %3393 }
0x1094   :  { %892 = vrot.lane.b32.xlu2 %v3394_v13, %s3710_s10 }
0x1095   :  { %v3396_v1 = vpop.eup %3395 }
0x1096   :  { %v873_v14 = vadd.f32 1.0, %v3396_v1 }
0x1098   :  { %3397 = vrcp.f32 %v873_v14  ;;  %v885_v19 = vand.u32 2147483648, %v873_v14  ;;  %vm879_vm7 = vweird.f32 %v873_v14  ;;  %v883_v20 = vand.u32 2147483647, %v873_v14 }
0x109a   :  { %v886_v22 = vor.u32 1.1754944e-38, %v885_v19  ;;  %vm884_vm9 = vcmp.eq.f32.partialorder %v883_v20, 8.507059e+37 }
0x109e   :  { %v3398_v4 = vpop.eup %3397 }
0x109f   :  { %v875_v15 = vmul.f32 %v3398_v4, %v873_v14  ;;  %vm880_vm5 = vweird.f32 %v3398_v4 }
0x10a0   :  { %vm881_vm8 = vmor %vm879_vm7, %vm880_vm5 }
0x10a1   :  { %v876_v16 = vsub.f32 1.0, %v875_v15 }
0x10a3   :  { %v877_v17 = vmul.f32 %v3398_v4, %v876_v16 }
0x10a5   :  { %v878_v18 = vadd.f32 %v3398_v4, %v877_v17 }
0x10a7   :  { %v882_v21 = vsel %vm881_vm8, %v3398_v4, %v878_v18 }
0x10a8   :  { %v887_v24 = vsel %vm884_vm9, %v886_v22, %v882_v21 }
0x10a9   :  { %v890_v26 = vmul.f32 %v887_v24, %v834_v52 }
0x10ee   :  { %v893_v23 = vpop.permute.xlu2 %892 }
0x10ef   :  { %v895_v25 = vmul.f32 %v893_v23, %v887_v24 }
0x10f1   :  { %897 = vrot.lane.b32.xlu0 %v895_v25, %s3711_s11 }
0x1163   :  { %v898_v31 = vpop.permute.xlu0 %897 }
0x1164   :  { %v900_v32 = vadd.f32 %v898_v31, %v890_v26 }
0x1166   :  { %3399 = vtanh.f32 %v900_v32 }
0x116c   :  { %v3400_v33 = vpop.eup %3399 }
0x116d   :  { %903 = vrot.lane.b32.xlu1 %v3400_v33, %s3710_s10 }
0x11df   :  { %v904_v34 = vpop.permute.xlu1 %903 }
0x11e0   :  { %v906_v7 = vmul.f32 %v904_v34, %v887_v24 }
0x11e2   :  { %908 = vrot.lane.b32.xlu2 %v906_v7, %s3711_s11 }
0x123c   :  { %v909_v35 = vpop.permute.xlu2 %908 }
0x123d   :  { %911 = vst.msk [vmem:[#allocation3 + $0x8] sm:$0xff] %vm160_vm6, %v909_v35  ;;  %3231 = vmatmul.msk.f32.vlgmr.msrb.gmra.mxu1 %vm160_vm6, %v909_v35 }
0x123e   :  { %1191 = vmatpush.msrb.mxu1 %v3889_v27 }
0x1240   :  { %1192 = vmatpush.msrb.mxu1 %v3891_v28 }
0x1242   :  { %1193 = vmatpush.msrb.mxu1 %v3895_v29 }
0x1244   :  { %1194 = vmatpush.msrb.mxu1 %v3899_v30 }
0x12ba   :  { %v932_v38 = vpop.f32.mrf.mxu1 }
0x12bb   :  { %v935_v39 = vadd.f32 %v932_v38, %v757_v37 }
0x12bd   :  { %3401 = vtanh.f32 %v935_v39  ;;  %v3232_v41 = vmul.f32 -1.442695, %v935_v39 }
0x12bf   :  { %3403 = vpow2.f32 %v3232_v41 }
0x12c3   :  { %v3402_v40 = vpop.eup %3401 }
0x12c4   :  { %958 = vrot.lane.b32.xlu0 %v3402_v40, %s3710_s10 }
0x12c5   :  { %v3404_v42 = vpop.eup %3403 }
0x12c6   :  { %v939_v43 = vadd.f32 1.0, %v3404_v42 }
0x12c8   :  { %3405 = vrcp.f32 %v939_v43  ;;  %v951_v49 = vand.u32 2147483648, %v939_v43  ;;  %vm945_vm11 = vweird.f32 %v939_v43  ;;  %v949_v50 = vand.u32 2147483647, %v939_v43 }
0x12ca   :  { %v952_v52 = vor.u32 1.1754944e-38, %v951_v49  ;;  %vm950_vm1 = vcmp.eq.f32.partialorder %v949_v50, 8.507059e+37 }
0x12ce   :  { %v3406_v44 = vpop.eup %3405 }
0x12cf   :  { %v941_v45 = vmul.f32 %v3406_v44, %v939_v43  ;;  %vm946_vm10 = vweird.f32 %v3406_v44 }
0x12d0   :  { %vm947_vm12 = vmor %vm945_vm11, %vm946_vm10 }
0x12d1   :  { %v942_v46 = vsub.f32 1.0, %v941_v45 }
0x12d3   :  { %v943_v47 = vmul.f32 %v3406_v44, %v942_v46 }
0x12d5   :  { %v944_v48 = vadd.f32 %v3406_v44, %v943_v47 }
0x12d7   :  { %v948_v51 = vsel %vm947_vm12, %v3406_v44, %v944_v48 }
0x12d8   :  { %v953_v54 = vsel %vm950_vm1, %v952_v52, %v948_v51 }
0x12d9   :  { %v956_v58 = vmul.f32 %v953_v54, %v900_v32  ;;  %v762_v32 = vpop.f32.mrf.mxu3 }
0x12da   :  { %v763_v33 = vadd.f32 %v3927_v57, %v762_v32  ;;  %v1309_v32 = vld [vmem:[#allocation3 + $0x8] sm:$0xff] }
0x1336   :  { %v959_v53 = vpop.permute.xlu0 %958 }
0x1337   :  { %v961_v55 = vmul.f32 %v959_v53, %v953_v54 }
0x1339   :  { %963 = vrot.lane.b32.xlu1 %v961_v55, %s3711_s11 }
0x13ab   :  { %v964_v59 = vpop.permute.xlu1 %963 }
0x13ac   :  { %v966_v60 = vadd.f32 %v964_v59, %v956_v58 }
0x13ae   :  { %3407 = vtanh.f32 %v966_v60 }
0x13b4   :  { %v3408_v62 = vpop.eup %3407 }
0x13b5   :  { %969 = vrot.lane.b32.xlu2 %v3408_v62, %s3710_s10 }
0x140f   :  { %v970_v63 = vpop.permute.xlu2 %969 }
0x1410   :  { %v972_v2 = vmul.f32 %v970_v63, %v953_v54 }
0x1412   :  { %974 = vrot.lane.b32.xlu0 %v972_v2, %s3711_s11 }
0x1484   :  { %v975_v61 = vpop.permute.xlu0 %974 }
0x1485   :  { %977 = vst.msk [vmem:[#allocation3 + $0x10] sm:$0xff] %vm160_vm6, %v975_v61  ;;  %3233 = vmatmul.msk.f32.vlgmr.msrb.gmra.mxu2 %vm160_vm6, %v975_v61 }
0x1486   :  { %1257 = vmatpush.msrb.mxu2 %v3889_v27 }
0x1488   :  { %1258 = vmatpush.msrb.mxu2 %v3891_v28 }
0x148a   :  { %1259 = vmatpush.msrb.mxu2 %v3895_v29 }
0x148c   :  { %1260 = vmatpush.msrb.mxu2 %v3899_v30 }
0x1508   :  { %v998_v10 = vpop.f32.mrf.mxu2 }
0x1509   :  { %v1001_v11 = vadd.f32 %v998_v10, %v760_v9 }
0x150b   :  { %3409 = vtanh.f32 %v1001_v11  ;;  %v3234_v13 = vmul.f32 -1.442695, %v1001_v11 }
0x150d   :  { %3411 = vpow2.f32 %v3234_v13 }
0x1511   :  { %v3410_v12 = vpop.eup %3409 }
0x1512   :  { %1024 = vrot.lane.b32.xlu1 %v3410_v12, %s3710_s10 }
0x1513   :  { %v3412_v0 = vpop.eup %3411 }
0x1514   :  { %v1005_v1 = vadd.f32 1.0, %v3412_v0 }
0x1516   :  { %3413 = vrcp.f32 %v1005_v1  ;;  %v1017_v30 = vand.u32 2147483648, %v1005_v1  ;;  %vm1011_vm14 = vweird.f32 %v1005_v1  ;;  %v1015_v15 = vand.u32 2147483647, %v1005_v1 }
0x1518   :  { %v1018_v17 = vor.u32 1.1754944e-38, %v1017_v30  ;;  %vm1016_vm0 = vcmp.eq.f32.partialorder %v1015_v15, 8.507059e+37 }
0x151c   :  { %v3414_v27 = vpop.eup %3413 }
0x151d   :  { %v1007_v28 = vmul.f32 %v3414_v27, %v1005_v1  ;;  %vm1012_vm13 = vweird.f32 %v3414_v27 }
0x151e   :  { %vm1013_vm15 = vmor %vm1011_vm14, %vm1012_vm13 }
0x151f   :  { %v1008_v14 = vsub.f32 1.0, %v1007_v28 }
0x1521   :  { %v1009_v29 = vmul.f32 %v3414_v27, %v1008_v14 }
0x1523   :  { %v1010_v4 = vadd.f32 %v3414_v27, %v1009_v29 }
0x1525   :  { %v1014_v16 = vsel %vm1013_vm15, %v3414_v27, %v1010_v4 }
0x1526   :  { %v1019_v19 = vsel %vm1016_vm0, %v1018_v17, %v1014_v16 }
0x1527   :  { %v1022_v21 = vmul.f32 %v1019_v19, %v966_v60  ;;  %v765_v60 = vpop.f32.mrf.mxu3 }
0x1528   :  { %v766_v62 = vadd.f32 %v3927_v57, %v765_v60 }
0x1584   :  { %v1025_v18 = vpop.permute.xlu1 %1024 }
0x1585   :  { %v1027_v20 = vmul.f32 %v1025_v18, %v1019_v19 }
0x1587   :  { %1029 = vrot.lane.b32.xlu2 %v1027_v20, %s3711_s11 }
0x15e1   :  { %v1030_v22 = vpop.permute.xlu2 %1029 }
0x15e2   :  { %v1032_v23 = vadd.f32 %v1030_v22, %v1022_v21  ;;  %v1320_v22 = vld [vmem:[#allocation4 + $0x38] sm:$0xff] }
0x15e4   :  { %3415 = vtanh.f32 %v1032_v23 }
0x15ea   :  { %v3416_v24 = vpop.eup %3415 }
0x15eb   :  { %1035 = vrot.lane.b32.xlu0 %v3416_v24, %s3710_s10  ;;  %v1318_v24 = vld [vmem:[#allocation4 + $0x28] sm:$0xff] }
0x165d   :  { %v1036_v25 = vpop.permute.xlu0 %1035 }
0x165e   :  { %v1038_v26 = vmul.f32 %v1036_v25, %v1019_v19  ;;  %v1317_v25 = vld [vmem:[#allocation4 + $0x20] sm:$0xff] }
0x1660   :  { %1040 = vrot.lane.b32.xlu1 %v1038_v26, %s3711_s11 }
0x16d2   :  { %v1041_v31 = vpop.permute.xlu1 %1040 }
0x16d3   :  { %1043 = vst.msk [vmem:[#allocation3 + $0x18] sm:$0xff] %vm160_vm6, %v1041_v31  ;;  %3235 = vmatmul.msk.f32.vlgmr.msra.gmra.mxu1 %vm160_vm6, %v1041_v31  ;;  %v1308_v31 = vld [vmem:[#allocation3] sm:$0xff] }
0x16d4   :  { %1367 = vmatpush.msra.mxu1 %v1320_v22 }
0x1750   :  { %v1064_v34 = vpop.f32.mrf.mxu1 }
0x1751   :  { %v1067_v7 = vadd.f32 %v1064_v34, %v763_v33  ;;  %v1310_v33 = vld [vmem:[#allocation3 + $0x10] sm:$0xff]  ;;  %v1311_v34 = vld [vmem:[#allocation3 + $0x18] sm:$0xff] }
0x1753   :  { %3417 = vtanh.f32 %v1067_v7  ;;  %v3236_v36 = vmul.f32 -1.442695, %v1067_v7 }
0x1755   :  { %3419 = vpow2.f32 %v3236_v36  ;;  %v768_v36 = vpop.f32.mrf.mxu3 }
0x1759   :  { %v3418_v35 = vpop.eup %3417 }
0x175a   :  { %1090 = vrot.lane.b32.xlu2 %v3418_v35, %s3710_s10 }
0x175b   :  { %v3420_v37 = vpop.eup %3419 }
0x175c   :  { %v1071_v38 = vadd.f32 1.0, %v3420_v37  ;;  %v769_v37 = vadd.f32 %v3927_v57, %v768_v36 }
0x175e   :  { %3421 = vrcp.f32 %v1071_v38  ;;  %v1083_v44 = vand.u32 2147483648, %v1071_v38  ;;  %vm1077_vm3 = vweird.f32 %v1071_v38  ;;  %v1081_v45 = vand.u32 2147483647, %v1071_v38 }
0x1760   :  { %v1084_v47 = vor.u32 1.1754944e-38, %v1083_v44  ;;  %vm1082_vm5 = vcmp.eq.f32.partialorder %v1081_v45, 8.507059e+37 }
0x1764   :  { %v3422_v39 = vpop.eup %3421 }
0x1765   :  { %v1073_v40 = vmul.f32 %v3422_v39, %v1071_v38  ;;  %vm1078_vm2 = vweird.f32 %v3422_v39 }
0x1766   :  { %vm1079_vm4 = vmor %vm1077_vm3, %vm1078_vm2 }
0x1767   :  { %v1074_v41 = vsub.f32 1.0, %v1073_v40 }
0x1769   :  { %v1075_v42 = vmul.f32 %v3422_v39, %v1074_v41 }
0x176b   :  { %v1076_v43 = vadd.f32 %v3422_v39, %v1075_v42 }
0x176d   :  { %v1080_v46 = vsel %vm1079_vm4, %v3422_v39, %v1076_v43 }
0x176e   :  { %v1085_v49 = vsel %vm1082_vm5, %v1084_v47, %v1080_v46 }
0x176f   :  { %v1088_v51 = vmul.f32 %v1085_v49, %v1032_v23  ;;  %v1319_v23 = vld [vmem:[#allocation4 + $0x30] sm:$0xff] }
0x1770   :  { %1368 = vmatpush.msra.mxu1 %v1319_v23 }
0x1772   :  { %1369 = vmatpush.msra.mxu1 %v1318_v24 }
0x1774   :  { %1370 = vmatpush.msra.mxu1 %v1317_v25 }
0x17b4   :  { %v1091_v48 = vpop.permute.xlu2 %1090 }
0x17b5   :  { %v1093_v50 = vmul.f32 %v1091_v48, %v1085_v49 }
0x17b7   :  { %1095 = vrot.lane.b32.xlu0 %v1093_v50, %s3711_s11 }
0x1829   :  { %v1096_v52 = vpop.permute.xlu0 %1095 }
0x182a   :  { %v1098_v53 = vadd.f32 %v1096_v52, %v1088_v51 }
0x182c   :  { %3423 = vtanh.f32 %v1098_v53 }
0x1832   :  { %v3424_v54 = vpop.eup %3423 }
0x1833   :  { %1101 = vrot.lane.b32.xlu1 %v3424_v54, %s3710_s10 }
0x18a5   :  { %v1102_v55 = vpop.permute.xlu1 %1101 }
0x18a6   :  { %v1104_v58 = vmul.f32 %v1102_v55, %v1085_v49 }
0x18a8   :  { %1106 = vrot.lane.b32.xlu2 %v1104_v58, %s3711_s11 }
0x1902   :  { %v1107_v59 = vpop.permute.xlu2 %1106 }
0x1903   :  { %1109 = vst.msk [vmem:[#allocation3 + $0x20] sm:$0xff] %vm160_vm6, %v1107_v59  ;;  %3237 = vmatmul.msk.f32.vlgmr.msra.gmra.mxu2 %vm160_vm6, %v1107_v59 }
0x190a   :  { %v1312_v7 = vld [vmem:[#allocation3 + $0x20] sm:$0xff] }
0x1986   :  { %v1130_v63 = vpop.f32.mrf.mxu2 }
0x1987   :  { %v1133_v2 = vadd.f32 %v1130_v63, %v766_v62 }
0x1989   :  { %3425 = vtanh.f32 %v1133_v2  ;;  %v3238_v3 = vmul.f32 -1.442695, %v1133_v2  ;;  %v4034_v2 = vld [vmem:[#allocation6 + $0x38] sm:$0xff] }
0x198a   :  { %1417 = vmatpush.msra.mxu2 %v4034_v2  ;;  %1483 = vmatpush.msra.mxu0 %v4034_v2 }
0x198b   :  { %3427 = vpow2.f32 %v3238_v3  ;;  %v4040_v3 = vld [vmem:[#allocation6 + $0x28] sm:$0xff]  ;;  %1879 = vmatpush.msra.mxu3 %v4034_v2 }
0x198f   :  { %v3426_v61 = vpop.eup %3425 }
0x1990   :  { %1156 = vrot.lane.b32.xlu0 %v3426_v61, %s3710_s10  ;;  %v4036_v61 = vld [vmem:[#allocation6 + $0x30] sm:$0xff] }
0x1991   :  { %v3428_v9 = vpop.eup %3427  ;;  %1418 = vmatpush.msra.mxu2 %v4036_v61  ;;  %1484 = vmatpush.msra.mxu0 %v4036_v61 }
0x1992   :  { %v1137_v10 = vadd.f32 1.0, %v3428_v9  ;;  %v4045_v9 = vld [vmem:[#allocation6 + $0x20] sm:$0xff]  ;;  %1880 = vmatpush.msra.mxu3 %v4036_v61 }
0x1993   :  { %1419 = vmatpush.msra.mxu2 %v4040_v3  ;;  %1485 = vmatpush.msra.mxu0 %v4040_v3 }
0x1994   :  { %3429 = vrcp.f32 %v1137_v10  ;;  %v1149_v27 = vand.u32 2147483648, %v1137_v10  ;;  %vm1143_vm8 = vweird.f32 %v1137_v10  ;;  %v1147_v28 = vand.u32 2147483647, %v1137_v10  ;;  %1881 = vmatpush.msra.mxu3 %v4040_v3 }
0x1995   :  { %1420 = vmatpush.msra.mxu2 %v4045_v9  ;;  %1486 = vmatpush.msra.mxu0 %v4045_v9 }
0x1996   :  { %v1150_v29 = vor.u32 1.1754944e-38, %v1149_v27  ;;  %vm1148_vm10 = vcmp.eq.f32.partialorder %v1147_v28, 8.507059e+37  ;;  %1882 = vmatpush.msra.mxu3 %v4045_v9 }
0x1997   :  { %1615 = vmatpush.msrb.mxu0 %v4034_v2 }
0x1999   :  { %1616 = vmatpush.msrb.mxu0 %v4036_v61 }
0x199a   :  { %v3430_v11 = vpop.eup %3429 }
0x199b   :  { %v1139_v12 = vmul.f32 %v3430_v11, %v1137_v10  ;;  %vm1144_vm7 = vweird.f32 %v3430_v11  ;;  %1617 = vmatpush.msrb.mxu0 %v4040_v3 }
0x199c   :  { %vm1145_vm9 = vmor %vm1143_vm8, %vm1144_vm7 }
0x199d   :  { %v1140_v13 = vsub.f32 1.0, %v1139_v12  ;;  %1618 = vmatpush.msrb.mxu0 %v4045_v9 }
0x199f   :  { %v1141_v0 = vmul.f32 %v3430_v11, %v1140_v13  ;;  %v4075_v13 = vld [vmem:[%s4446_s6 + $0x1] ss:$0 sm:$0xff] }
0x19a1   :  { %v1142_v1 = vadd.f32 %v3430_v11, %v1141_v0 }
0x19a3   :  { %v1146_v14 = vsel %vm1145_vm9, %v3430_v11, %v1142_v1 }
0x19a4   :  { %v1151_v30 = vsel %vm1148_vm10, %v1150_v29, %v1146_v14 }
0x19a5   :  { %v1154_v16 = vmul.f32 %v1151_v30, %v1098_v53 }
0x1a02   :  { %v1157_v4 = vpop.permute.xlu0 %1156 }
0x1a03   :  { %v1159_v15 = vmul.f32 %v1157_v4, %v1151_v30 }
0x1a05   :  { %1161 = vrot.lane.b32.xlu1 %v1159_v15, %s3711_s11 }
0x1a77   :  { %v1162_v17 = vpop.permute.xlu1 %1161 }
0x1a78   :  { %v1164_v18 = vadd.f32 %v1162_v17, %v1154_v16 }
0x1a7a   :  { %3431 = vtanh.f32 %v1164_v18 }
0x1a80   :  { %v3432_v19 = vpop.eup %3431 }
0x1a81   :  { %1167 = vrot.lane.b32.xlu2 %v3432_v19, %s3710_s10 }
0x1adb   :  { %v1168_v20 = vpop.permute.xlu2 %1167 }
0x1adc   :  { %v1170_v21 = vmul.f32 %v1168_v20, %v1151_v30 }
0x1ade   :  { %1172 = vrot.lane.b32.xlu0 %v1170_v21, %s3711_s11 }
0x1b50   :  { %v1173_v26 = vpop.permute.xlu0 %1172 }
0x1b51   :  { %1175 = vst.msk [vmem:[#allocation3 + $0x28] sm:$0xff] %vm160_vm6, %v1173_v26  ;;  %3239 = vmatmul.msk.f32.vlgmr.msrb.gmra.mxu1 %vm160_vm6, %v1173_v26 }
0x1b58   :  { %v1313_v35 = vld [vmem:[#allocation3 + $0x28] sm:$0xff] }
0x1b59   :  { %3244 = vmatmul.msk.f32.vlgmr.msra.gmra.mxu1 %vm160_vm6, %v1308_v31 }
0x1b61   :  { %3245 = vmatmul.msk.f32.gmra.mxu1 %vm160_vm6, %v1309_v32 }
0x1b69   :  { %3246 = vmatmul.msk.f32.gmra.mxu1 %vm160_vm6, %v1310_v33 }
0x1b71   :  { %3247 = vmatmul.msk.f32.gmra.mxu1 %vm160_vm6, %v1311_v34 }
0x1b79   :  { %3248 = vmatmul.msk.f32.gmra.mxu1 %vm160_vm6, %v1312_v7 }
0x1b81   :  { %3249 = vmatmul.msk.f32.gmra.mxu1 %vm160_vm6, %v1313_v35 }
0x1bce   :  { %v1196_v38 = vpop.f32.mrf.mxu1 }
0x1bcf   :  { %v1199_v39 = vadd.f32 %v1196_v38, %v769_v37 }
0x1bd1   :  { %3433 = vtanh.f32 %v1199_v39  ;;  %v3240_v41 = vmul.f32 -1.442695, %v1199_v39 }
0x1bd3   :  { %3435 = vpow2.f32 %v3240_v41 }
0x1bd6   :  { %v1372_v0 = vpop.f32.mrf.mxu1 }
0x1bd7   :  { %v3434_v40 = vpop.eup %3433  ;;  %v1373_v1 = vadd.f32 %v4075_v13, %v1372_v0 }
0x1bd8   :  { %1222 = vrot.lane.b32.xlu1 %v3434_v40, %s3710_s10 }
0x1bd9   :  { %v3436_v42 = vpop.eup %3435 }
0x1bda   :  { %v1203_v43 = vadd.f32 1.0, %v3436_v42 }
0x1bdc   :  { %3437 = vrcp.f32 %v1203_v43  ;;  %v1215_v49 = vand.u32 2147483648, %v1203_v43  ;;  %vm1209_vm12 = vweird.f32 %v1203_v43  ;;  %v1213_v57 = vand.u32 2147483647, %v1203_v43 }
0x1bde   :  { %v1216_v51 = vor.u32 1.1754944e-38, %v1215_v49  ;;  %vm1214_vm13 = vcmp.eq.f32.partialorder %v1213_v57, 8.507059e+37  ;;  %v1375_v37 = vpop.f32.mrf.mxu1 }
0x1bdf   :  { %v1376_v38 = vadd.f32 %v4075_v13, %v1375_v37 }
0x1be2   :  { %v3438_v44 = vpop.eup %3437 }
0x1be3   :  { %v1205_v45 = vmul.f32 %v3438_v44, %v1203_v43  ;;  %vm1210_vm11 = vweird.f32 %v3438_v44 }
0x1be4   :  { %vm1211_vm1 = vmor %vm1209_vm12, %vm1210_vm11 }
0x1be5   :  { %v1206_v46 = vsub.f32 1.0, %v1205_v45 }
0x1be7   :  { %v1207_v47 = vmul.f32 %v3438_v44, %v1206_v46 }
0x1be9   :  { %v1208_v48 = vadd.f32 %v3438_v44, %v1207_v47 }
0x1beb   :  { %v1212_v50 = vsel %vm1211_vm1, %v3438_v44, %v1208_v48 }
0x1bec   :  { %v1217_v53 = vsel %vm1214_vm13, %v1216_v51, %v1212_v50 }
0x1bed   :  { %v1220_v55 = vmul.f32 %v1217_v53, %v1164_v18 }
0x1c4a   :  { %v1223_v52 = vpop.permute.xlu1 %1222 }
0x1c4b   :  { %v1225_v54 = vmul.f32 %v1223_v52, %v1217_v53 }
0x1c4d   :  { %1227 = vrot.lane.b32.xlu2 %v1225_v54, %s3711_s11 }
0x1ca7   :  { %v1228_v58 = vpop.permute.xlu2 %1227 }
0x1ca8   :  { %v4029_v59 = vadd.f32 %v1228_v58, %v1220_v55 }
0x1caa   :  { %3439 = vtanh.f32 %v4029_v59 }
0x1cb0   :  { %v3440_v60 = vpop.eup %3439 }
0x1cb1   :  { %1233 = vrot.lane.b32.xlu0 %v3440_v60, %s3710_s10 }
0x1d23   :  { %v1234_v62 = vpop.permute.xlu0 %1233 }
0x1d24   :  { %v1236_v63 = vmul.f32 %v1234_v62, %v1217_v53 }
0x1d26   :  { %1238 = vrot.lane.b32.xlu1 %v1236_v63, %s3711_s11 }
0x1d98   :  { %v1239_v10 = vpop.permute.xlu1 %1238 }
0x1d99   :  { %1241 = vst.msk [vmem:[#allocation3 + $0x30] sm:$0xff] %vm160_vm6, %v1239_v10  ;;  %3241 = vmatmul.msk.f32.vlgmr.msrb.gmra.mxu2 %vm160_vm6, %v1239_v10 }
0x1d9a   :  { %1549 = vmatpush.msrb.mxu2 %v4034_v2 }
0x1d9c   :  { %1550 = vmatpush.msrb.mxu2 %v4036_v61 }
0x1d9e   :  { %1551 = vmatpush.msrb.mxu2 %v4040_v3 }
0x1da0   :  { %v1314_v11 = vld [vmem:[#allocation3 + $0x30] sm:$0xff]  ;;  %1552 = vmatpush.msrb.mxu2 %v4045_v9 }
0x1da1   :  { %3250 = vmatmul.msk.f32.gmra.mxu1 %vm160_vm6, %v1314_v11  ;;  %1421 = vmatmul.f32.vlgmr.msra.gmra.mxu2 %v3709_v6 }
0x1da2   :  { %1681 = vmatpush.msra.mxu2 %v4034_v2 }
0x1da4   :  { %1682 = vmatpush.msra.mxu2 %v4036_v61 }
0x1da6   :  { %1683 = vmatpush.msra.mxu2 %v4040_v3 }
0x1da8   :  { %1684 = vmatpush.msra.mxu2 %v4045_v9 }
0x1e1c   :  { %v4070_v12 = vpop.f32.mrf.mxu2 }
0x1e24   :  { %v1422_v27 = vpop.f32.mrf.mxu2 }
0x1e25   :  { %v1425_v28 = vadd.f32 %v1422_v27, %v1373_v1  ;;  %v1378_v1 = vpop.f32.mrf.mxu1 }
0x1e26   :  { %v1379_v27 = vadd.f32 %v4075_v13, %v1378_v1 }
0x1e27   :  { %3441 = vtanh.f32 %v1425_v28  ;;  %v3252_v29 = vmul.f32 -1.442695, %v1425_v28 }
0x1e29   :  { %3443 = vpow2.f32 %v3252_v29 }
0x1e2d   :  { %v3442_v14 = vpop.eup %3441 }
0x1e2e   :  { %1448 = vrot.lane.b32.xlu2 %v3442_v14, %s3710_s10 }
0x1e2f   :  { %v3444_v4 = vpop.eup %3443 }
0x1e30   :  { %v1429_v30 = vadd.f32 1.0, %v3444_v4 }
0x1e32   :  { %3445 = vrcp.f32 %v1429_v30  ;;  %v1441_v20 = vand.u32 2147483648, %v1429_v30  ;;  %vm1435_vm15 = vweird.f32 %v1429_v30  ;;  %v1439_v21 = vand.u32 2147483647, %v1429_v30 }
0x1e34   :  { %v1442_v23 = vor.u32 1.1754944e-38, %v1441_v20  ;;  %vm1440_vm2 = vcmp.eq.f32.partialorder %v1439_v21, 8.507059e+37 }
0x1e38   :  { %v3446_v15 = vpop.eup %3445 }
0x1e39   :  { %v1431_v16 = vmul.f32 %v3446_v15, %v1429_v30  ;;  %vm1436_vm14 = vweird.f32 %v3446_v15 }
0x1e3a   :  { %vm1437_vm0 = vmor %vm1435_vm15, %vm1436_vm14 }
0x1e3b   :  { %v1432_v17 = vsub.f32 1.0, %v1431_v16 }
0x1e3d   :  { %v1433_v18 = vmul.f32 %v3446_v15, %v1432_v17 }
0x1e3f   :  { %v1434_v19 = vadd.f32 %v3446_v15, %v1433_v18 }
0x1e41   :  { %v1438_v22 = vsel %vm1437_vm0, %v3446_v15, %v1434_v19 }
0x1e42   :  { %v1443_v25 = vsel %vm1440_vm2, %v1442_v23, %v1438_v22 }
0x1e43   :  { %v1446_v31 = vmul.f32 0.0, %v1443_v25 }
0x1e88   :  { %v1449_v24 = vpop.permute.xlu2 %1448 }
0x1e89   :  { %v1451_v26 = vmul.f32 %v1449_v24, %v1443_v25 }
0x1e8b   :  { %1453 = vrot.lane.b32.xlu0 %v1451_v26, %s3711_s11 }
0x1efd   :  { %v1454_v32 = vpop.permute.xlu0 %1453 }
0x1efe   :  { %v1456_v33 = vadd.f32 %v1454_v32, %v1446_v31 }
0x1f00   :  { %3447 = vtanh.f32 %v1456_v33 }
0x1f06   :  { %v3448_v34 = vpop.eup %3447 }
0x1f07   :  { %1459 = vrot.lane.b32.xlu1 %v3448_v34, %s3710_s10 }
0x1f79   :  { %v1460_v7 = vpop.permute.xlu1 %1459 }
0x1f7a   :  { %v1462_v35 = vmul.f32 %v1460_v7, %v1443_v25  ;;  %v1381_v7 = vpop.f32.mrf.mxu1 }
0x1f7c   :  { %1464 = vrot.lane.b32.xlu2 %v1462_v35, %s3711_s11  ;;  %v1382_v35 = vadd.f32 %v4075_v13, %v1381_v7 }
0x1fd6   :  { %v1465_v36 = vpop.permute.xlu2 %1464 }
0x1fd7   :  { %1467 = vst.msk [vmem:[#allocation3] sm:$0xff] %vm160_vm6, %v1465_v36  ;;  %3253 = vmatmul.msk.f32.vlgmr.msra.gmra.mxu0 %vm160_vm6, %v1465_v36 }
0x1fd8   :  { %1747 = vmatpush.msra.mxu0 %v4034_v2 }
0x1fda   :  { %1748 = vmatpush.msra.mxu0 %v4036_v61 }
0x1fdc   :  { %1749 = vmatpush.msra.mxu0 %v4040_v3 }
0x1fde   :  { %1750 = vmatpush.msra.mxu0 %v4045_v9 }
0x2054   :  { %v1488_v39 = vpop.f32.mrf.mxu0 }
0x2055   :  { %v1491_v40 = vadd.f32 %v1488_v39, %v1376_v38 }
0x2057   :  { %3449 = vtanh.f32 %v1491_v40  ;;  %v3254_v42 = vmul.f32 -1.442695, %v1491_v40 }
0x2059   :  { %3451 = vpow2.f32 %v3254_v42 }
0x205d   :  { %v3450_v41 = vpop.eup %3449 }
0x205e   :  { %1514 = vrot.lane.b32.xlu0 %v3450_v41, %s3710_s10 }
0x205f   :  { %v3452_v43 = vpop.eup %3451 }
0x2060   :  { %v1495_v44 = vadd.f32 1.0, %v3452_v43 }
0x2062   :  { %3453 = vrcp.f32 %v1495_v44  ;;  %v1507_v57 = vand.u32 2147483648, %v1495_v44  ;;  %vm1501_vm4 = vweird.f32 %v1495_v44  ;;  %v1505_v50 = vand.u32 2147483647, %v1495_v44 }
0x2064   :  { %v1508_v52 = vor.u32 1.1754944e-38, %v1507_v57  ;;  %vm1506_vm7 = vcmp.eq.f32.partialorder %v1505_v50, 8.507059e+37 }
0x2068   :  { %v3454_v45 = vpop.eup %3453 }
0x2069   :  { %v1497_v46 = vmul.f32 %v3454_v45, %v1495_v44  ;;  %vm1502_vm3 = vweird.f32 %v3454_v45 }
0x206a   :  { %vm1503_vm5 = vmor %vm1501_vm4, %vm1502_vm3 }
0x206b   :  { %v1498_v47 = vsub.f32 1.0, %v1497_v46 }
0x206d   :  { %v1499_v48 = vmul.f32 %v3454_v45, %v1498_v47 }
0x206f   :  { %v1500_v49 = vadd.f32 %v3454_v45, %v1499_v48 }
0x2071   :  { %v1504_v51 = vsel %vm1503_vm5, %v3454_v45, %v1500_v49 }
0x2072   :  { %v1509_v54 = vsel %vm1506_vm7, %v1508_v52, %v1504_v51 }
0x2073   :  { %v1512_v58 = vmul.f32 %v1509_v54, %v1456_v33 }
0x20d0   :  { %v1515_v53 = vpop.permute.xlu0 %1514 }
0x20d1   :  { %v1517_v55 = vmul.f32 %v1515_v53, %v1509_v54 }
0x20d3   :  { %1519 = vrot.lane.b32.xlu1 %v1517_v55, %s3711_s11 }
0x2145   :  { %v1520_v60 = vpop.permute.xlu1 %1519 }
0x2146   :  { %v1522_v62 = vadd.f32 %v1520_v60, %v1512_v58 }
0x2148   :  { %3455 = vtanh.f32 %v1522_v62 }
0x214e   :  { %v3456_v63 = vpop.eup %3455 }
0x214f   :  { %1525 = vrot.lane.b32.xlu2 %v3456_v63, %s3710_s10 }
0x21a9   :  { %v1526_v10 = vpop.permute.xlu2 %1525 }
0x21aa   :  { %v1528_v11 = vmul.f32 %v1526_v10, %v1509_v54  ;;  %v1384_v10 = vpop.f32.mrf.mxu1 }
0x21ac   :  { %1530 = vrot.lane.b32.xlu0 %v1528_v11, %s3711_s11  ;;  %v1385_v11 = vadd.f32 %v4075_v13, %v1384_v10 }
0x221e   :  { %v1531_v0 = vpop.permute.xlu0 %1530 }
0x221f   :  { %1533 = vst.msk [vmem:[#allocation3 + $0x8] sm:$0xff] %vm160_vm6, %v1531_v0  ;;  %3255 = vmatmul.msk.f32.vlgmr.msrb.gmra.mxu2 %vm160_vm6, %v1531_v0 }
0x2220   :  { %1813 = vmatpush.msrb.mxu2 %v4034_v2 }
0x2222   :  { %1814 = vmatpush.msrb.mxu2 %v4036_v61 }
0x2224   :  { %1815 = vmatpush.msrb.mxu2 %v4040_v3 }
0x2226   :  { %1816 = vmatpush.msrb.mxu2 %v4045_v9 }
0x22a2   :  { %v1554_v28 = vpop.f32.mrf.mxu2 }
0x22a3   :  { %v1557_v14 = vadd.f32 %v1554_v28, %v1379_v27 }
0x22a5   :  { %3457 = vtanh.f32 %v1557_v14  ;;  %v3256_v4 = vmul.f32 -1.442695, %v1557_v14 }
0x22a7   :  { %3459 = vpow2.f32 %v3256_v4 }
0x22ab   :  { %v3458_v29 = vpop.eup %3457 }
0x22ac   :  { %1580 = vrot.lane.b32.xlu1 %v3458_v29, %s3710_s10 }
0x22ad   :  { %v3460_v30 = vpop.eup %3459 }
0x22ae   :  { %v1561_v15 = vadd.f32 1.0, %v3460_v30 }
0x22b0   :  { %3461 = vrcp.f32 %v1561_v15  ;;  %v1573_v9 = vand.u32 2147483648, %v1561_v15  ;;  %vm1567_vm9 = vweird.f32 %v1561_v15  ;;  %v1571_v18 = vand.u32 2147483647, %v1561_v15 }
0x22b2   :  { %v1574_v20 = vor.u32 1.1754944e-38, %v1573_v9  ;;  %vm1572_vm11 = vcmp.eq.f32.partialorder %v1571_v18, 8.507059e+37 }
0x22b6   :  { %v3462_v2 = vpop.eup %3461 }
0x22b7   :  { %v1563_v61 = vmul.f32 %v3462_v2, %v1561_v15  ;;  %vm1568_vm8 = vweird.f32 %v3462_v2 }
0x22b8   :  { %vm1569_vm10 = vmor %vm1567_vm9, %vm1568_vm8 }
0x22b9   :  { %v1564_v16 = vsub.f32 1.0, %v1563_v61 }
0x22bb   :  { %v1565_v3 = vmul.f32 %v3462_v2, %v1564_v16 }
0x22bd   :  { %v1566_v17 = vadd.f32 %v3462_v2, %v1565_v3 }
0x22bf   :  { %v1570_v19 = vsel %vm1569_vm10, %v3462_v2, %v1566_v17 }
0x22c0   :  { %v1575_v22 = vsel %vm1572_vm11, %v1574_v20, %v1570_v19 }
0x22c1   :  { %v1578_v24 = vmul.f32 %v1575_v22, %v1522_v62 }
0x231e   :  { %v1581_v21 = vpop.permute.xlu1 %1580 }
0x231f   :  { %v1583_v23 = vmul.f32 %v1581_v21, %v1575_v22 }
0x2321   :  { %1585 = vrot.lane.b32.xlu2 %v1583_v23, %s3711_s11 }
0x237b   :  { %v1586_v25 = vpop.permute.xlu2 %1585 }
0x237c   :  { %v1588_v26 = vadd.f32 %v1586_v25, %v1578_v24 }
0x237e   :  { %3463 = vtanh.f32 %v1588_v26 }
0x2384   :  { %v3464_v31 = vpop.eup %3463 }
0x2385   :  { %1591 = vrot.lane.b32.xlu0 %v3464_v31, %s3710_s10  ;;  %v1942_v31 = vld [vmem:[#allocation4 + $0x58] sm:$0xff] }
0x23f7   :  { %v1592_v32 = vpop.permute.xlu0 %1591 }
0x23f8   :  { %v1594_v33 = vmul.f32 %v1592_v32, %v1575_v22  ;;  %v1941_v32 = vld [vmem:[#allocation4 + $0x50] sm:$0xff] }
0x23fa   :  { %1596 = vrot.lane.b32.xlu1 %v1594_v33, %s3711_s11  ;;  %v1940_v33 = vld [vmem:[#allocation4 + $0x48] sm:$0xff] }
0x246c   :  { %v1597_v34 = vpop.permute.xlu1 %1596 }
0x246d   :  { %1599 = vst.msk [vmem:[#allocation3 + $0x10] sm:$0xff] %vm160_vm6, %v1597_v34  ;;  %3257 = vmatmul.msk.f32.vlgmr.msrb.gmra.mxu0 %vm160_vm6, %v1597_v34  ;;  %v1939_v34 = vld [vmem:[#allocation4 + $0x40] sm:$0xff] }
0x246e   :  { %1989 = vmatpush.msrb.mxu0 %v1942_v31 }
0x2470   :  { %1990 = vmatpush.msrb.mxu0 %v1941_v32 }
0x2472   :  { %1991 = vmatpush.msrb.mxu0 %v1940_v33  ;;  %v4147_v33 = vld [vmem:[#allocation6 + $0x58] sm:$0xff] }
0x2473   :  { %2105 = vmatpush.msrb.mxu3 %v4147_v33 }
0x2474   :  { %1992 = vmatpush.msrb.mxu0 %v1939_v34  ;;  %v4149_v34 = vld [vmem:[#allocation6 + $0x50] sm:$0xff] }
0x2475   :  { %2106 = vmatpush.msrb.mxu3 %v4149_v34 }
0x24ea   :  { %v1620_v36 = vpop.f32.mrf.mxu0 }
0x24eb   :  { %v1623_v37 = vadd.f32 %v1620_v36, %v1382_v35  ;;  %v1930_v35 = vld [vmem:[#allocation3] sm:$0xff]  ;;  %v1931_v36 = vld [vmem:[#allocation3 + $0x8] sm:$0xff] }
0x24ed   :  { %3465 = vtanh.f32 %v1623_v37  ;;  %v3258_v39 = vmul.f32 -1.442695, %v1623_v37  ;;  %v1932_v37 = vld [vmem:[#allocation3 + $0x10] sm:$0xff] }
0x24ef   :  { %3467 = vpow2.f32 %v3258_v39 }
0x24f3   :  { %v3466_v38 = vpop.eup %3465 }
0x24f4   :  { %1646 = vrot.lane.b32.xlu2 %v3466_v38, %s3710_s10 }
0x24f5   :  { %v3468_v40 = vpop.eup %3467 }
0x24f6   :  { %v1627_v41 = vadd.f32 1.0, %v3468_v40  ;;  %v1387_v40 = vpop.f32.mrf.mxu1 }
0x24f8   :  { %3469 = vrcp.f32 %v1627_v41  ;;  %v1639_v47 = vand.u32 2147483648, %v1627_v41  ;;  %vm1633_vm1 = vweird.f32 %v1627_v41  ;;  %v1637_v48 = vand.u32 2147483647, %v1627_v41 }
0x24fa   :  { %v1640_v57 = vor.u32 1.1754944e-38, %v1639_v47  ;;  %vm1638_vm14 = vcmp.eq.f32.partialorder %v1637_v48, 8.507059e+37 }
0x24fe   :  { %v3470_v42 = vpop.eup %3469 }
0x24ff   :  { %v1629_v43 = vmul.f32 %v3470_v42, %v1627_v41  ;;  %vm1634_vm12 = vweird.f32 %v3470_v42  ;;  %v1388_v41 = vadd.f32 %v4075_v13, %v1387_v40 }
0x2500   :  { %vm1635_vm13 = vmor %vm1633_vm1, %vm1634_vm12 }
0x2501   :  { %v1630_v44 = vsub.f32 1.0, %v1629_v43 }
0x2503   :  { %v1631_v45 = vmul.f32 %v3470_v42, %v1630_v44 }
0x2505   :  { %v1632_v46 = vadd.f32 %v3470_v42, %v1631_v45 }
0x2507   :  { %v1636_v49 = vsel %vm1635_vm13, %v3470_v42, %v1632_v46 }
0x2508   :  { %v1641_v51 = vsel %vm1638_vm14, %v1640_v57, %v1636_v49 }
0x2509   :  { %v1644_v53 = vmul.f32 %v1641_v51, %v1588_v26 }
0x254e   :  { %v1647_v50 = vpop.permute.xlu2 %1646 }
0x254f   :  { %v1649_v52 = vmul.f32 %v1647_v50, %v1641_v51 }
0x2551   :  { %1651 = vrot.lane.b32.xlu0 %v1649_v52, %s3711_s11 }
0x25c3   :  { %v1652_v54 = vpop.permute.xlu0 %1651 }
0x25c4   :  { %v1654_v55 = vadd.f32 %v1652_v54, %v1644_v53 }
0x25c6   :  { %3471 = vtanh.f32 %v1654_v55 }
0x25cc   :  { %v3472_v58 = vpop.eup %3471 }
0x25cd   :  { %1657 = vrot.lane.b32.xlu1 %v3472_v58, %s3710_s10 }
0x263f   :  { %v1658_v60 = vpop.permute.xlu1 %1657 }
0x2640   :  { %v1660_v62 = vmul.f32 %v1658_v60, %v1641_v51 }
0x2642   :  { %1662 = vrot.lane.b32.xlu2 %v1660_v62, %s3711_s11 }
0x269c   :  { %v1663_v63 = vpop.permute.xlu2 %1662 }
0x269d   :  { %1665 = vst.msk [vmem:[#allocation3 + $0x18] sm:$0xff] %vm160_vm6, %v1663_v63  ;;  %3259 = vmatmul.msk.f32.vlgmr.msra.gmra.mxu2 %vm160_vm6, %v1663_v63 }
0x269e   :  { %2039 = vmatpush.msra.mxu2 %v4147_v33 }
0x26a0   :  { %2040 = vmatpush.msra.mxu2 %v4149_v34 }
0x26a4   :  { %v1933_v38 = vld [vmem:[#allocation3 + $0x18] sm:$0xff] }
0x2720   :  { %v1686_v0 = vpop.f32.mrf.mxu2 }
0x2721   :  { %v1689_v1 = vadd.f32 %v1686_v0, %v1385_v11 }
0x2723   :  { %3473 = vtanh.f32 %v1689_v1  ;;  %v3260_v28 = vmul.f32 -1.442695, %v1689_v1 }
0x2725   :  { %3475 = vpow2.f32 %v3260_v28 }
0x2729   :  { %v3474_v27 = vpop.eup %3473 }
0x272a   :  { %1712 = vrot.lane.b32.xlu0 %v3474_v27, %s3710_s10 }
0x272b   :  { %v3476_v14 = vpop.eup %3475 }
0x272c   :  { %v1693_v29 = vadd.f32 1.0, %v3476_v14 }
0x272e   :  { %3477 = vrcp.f32 %v1693_v29  ;;  %v1705_v16 = vand.u32 2147483648, %v1693_v29  ;;  %vm1699_vm0 = vweird.f32 %v1693_v29  ;;  %v1703_v3 = vand.u32 2147483647, %v1693_v29 }
0x2730   :  { %v1706_v9 = vor.u32 1.1754944e-38, %v1705_v16  ;;  %vm1704_vm3 = vcmp.eq.f32.partialorder %v1703_v3, 8.507059e+37 }
0x2734   :  { %v3478_v4 = vpop.eup %3477 }
0x2735   :  { %v1695_v30 = vmul.f32 %v3478_v4, %v1693_v29  ;;  %vm1700_vm15 = vweird.f32 %v3478_v4 }
0x2736   :  { %vm1701_vm2 = vmor %vm1699_vm0, %vm1700_vm15 }
0x2737   :  { %v1696_v15 = vsub.f32 1.0, %v1695_v30 }
0x2739   :  { %v1697_v2 = vmul.f32 %v3478_v4, %v1696_v15 }
0x273b   :  { %v1698_v61 = vadd.f32 %v3478_v4, %v1697_v2 }
0x273d   :  { %v1702_v17 = vsel %vm1701_vm2, %v3478_v4, %v1698_v61 }
0x273e   :  { %v1707_v19 = vsel %vm1704_vm3, %v1706_v9, %v1702_v17 }
0x273f   :  { %v1710_v21 = vmul.f32 %v1707_v19, %v1654_v55  ;;  %v3649_v55 = vld [vmem:[%s4443_s3] ss:$0 sm:$0xff] }
0x2740   :  { %v149_v58 = vadd.f32 %v3649_v55, %v3948_v5 }
0x2742   :  { %v646_v62 = vadd.f32 %v3975_v8, %v149_v58 }
0x2744   :  { %v3219_v1 = vmul.f32 -1.442695, %v646_v62 }
0x279c   :  { %v1713_v18 = vpop.permute.xlu0 %1712 }
0x279d   :  { %v1715_v20 = vmul.f32 %v1713_v18, %v1707_v19 }
0x279f   :  { %1717 = vrot.lane.b32.xlu1 %v1715_v20, %s3711_s11 }
0x2811   :  { %v1718_v22 = vpop.permute.xlu1 %1717 }
0x2812   :  { %v4116_v23 = vadd.f32 %v1718_v22, %v1710_v21 }
0x2814   :  { %3479 = vtanh.f32 %v4116_v23 }
0x281a   :  { %v3480_v24 = vpop.eup %3479 }
0x281b   :  { %1723 = vrot.lane.b32.xlu2 %v3480_v24, %s3710_s10 }
0x2875   :  { %v1724_v25 = vpop.permute.xlu2 %1723 }
0x2876   :  { %v1726_v26 = vmul.f32 %v1724_v25, %v1707_v19 }
0x2878   :  { %1728 = vrot.lane.b32.xlu0 %v1726_v26, %s3711_s11 }
0x28ea   :  { %v1729_v7 = vpop.permute.xlu0 %1728 }
0x28eb   :  { %1731 = vst.msk [vmem:[#allocation3 + $0x20] sm:$0xff] %vm160_vm6, %v1729_v7  ;;  %3261 = vmatmul.msk.f32.vlgmr.msra.gmra.mxu0 %vm160_vm6, %v1729_v7  ;;  %v4157_v7 = vld [vmem:[#allocation6 + $0x40] sm:$0xff] }
0x28f2   :  { %v1934_v39 = vld [vmem:[#allocation3 + $0x20] sm:$0xff] }
0x28f3   :  { %3268 = vmatmul.msk.f32.vlgmr.msrb.gmra.mxu0 %vm160_vm6, %v1930_v35 }
0x28fb   :  { %3269 = vmatmul.msk.f32.gmra.mxu0 %vm160_vm6, %v1931_v36 }
0x2903   :  { %3270 = vmatmul.msk.f32.gmra.mxu0 %vm160_vm6, %v1932_v37 }
0x290b   :  { %3271 = vmatmul.msk.f32.gmra.mxu0 %vm160_vm6, %v1933_v38 }
0x2913   :  { %3272 = vmatmul.msk.f32.gmra.mxu0 %vm160_vm6, %v1934_v39  ;;  %v1390_v39 = vpop.f32.mrf.mxu1 }
0x2914   :  { %v1391_v40 = vadd.f32 %v4075_v13, %v1390_v39 }
0x2968   :  { %v1752_v42 = vpop.f32.mrf.mxu0 }
0x2969   :  { %v1755_v43 = vadd.f32 %v1752_v42, %v1388_v41 }
0x296b   :  { %3481 = vtanh.f32 %v1755_v43  ;;  %v3262_v45 = vmul.f32 -1.442695, %v1755_v43  ;;  %v4181_v43 = vld [vmem:[%s4446_s6 + $0x2] ss:$0 sm:$0xff] }
0x296d   :  { %3483 = vpow2.f32 %v3262_v45 }
0x2971   :  { %v3482_v44 = vpop.eup %3481 }
0x2972   :  { %1778 = vrot.lane.b32.xlu1 %v3482_v44, %s3710_s10  ;;  %v1994_v44 = vpop.f32.mrf.mxu0 }
0x2973   :  { %v3484_v46 = vpop.eup %3483  ;;  %v1995_v45 = vadd.f32 %v4181_v43, %v1994_v44 }
0x2974   :  { %v1759_v47 = vadd.f32 1.0, %v3484_v46 }
0x2976   :  { %3485 = vrcp.f32 %v1759_v47  ;;  %v1771_v52 = vand.u32 2147483648, %v1759_v47  ;;  %vm1765_vm5 = vweird.f32 %v1759_v47  ;;  %v1769_v53 = vand.u32 2147483647, %v1759_v47 }
0x2977   :  { %3487 = vtanh.f32 %v646_v62 }
0x2978   :  { %v1772_v60 = vor.u32 1.1754944e-38, %v1771_v52  ;;  %vm1770_vm8 = vcmp.eq.f32.partialorder %v1769_v53, 8.507059e+37  ;;  %3489 = vpow2.f32 %v3219_v1 }
0x297c   :  { %v3486_v48 = vpop.eup %3485 }
0x297d   :  { %v1761_v49 = vmul.f32 %v3486_v48, %v1759_v47  ;;  %vm1766_vm4 = vweird.f32 %v3486_v48  ;;  %v3488_v0 = vpop.eup %3487 }
0x297e   :  { %vm1767_vm7 = vmor %vm1765_vm5, %vm1766_vm4  ;;  %v3490_v27 = vpop.eup %3489 }
0x297f   :  { %v1762_v57 = vsub.f32 1.0, %v1761_v49  ;;  %v650_v28 = vadd.f32 1.0, %v3490_v27 }
0x2981   :  { %v1763_v50 = vmul.f32 %v3486_v48, %v1762_v57  ;;  %3491 = vrcp.f32 %v650_v28  ;;  %v662_v61 = vand.u32 2147483648, %v650_v28  ;;  %vm656_vm10 = vweird.f32 %v650_v28 }
0x2982   :  { %v660_v16 = vand.u32 2147483647, %v650_v28 }
0x2983   :  { %v1764_v51 = vadd.f32 %v3486_v48, %v1763_v50  ;;  %v663_v17 = vor.u32 1.1754944e-38, %v662_v61 }
0x2984   :  { %vm661_vm12 = vcmp.eq.f32.partialorder %v660_v16, 8.507059e+37 }
0x2985   :  { %v1768_v54 = vsel %vm1767_vm7, %v3486_v48, %v1764_v51 }
0x2986   :  { %v1773_v10 = vsel %vm1770_vm8, %v1772_v60, %v1768_v54 }
0x2987   :  { %v3492_v14 = vpop.eup %3491  ;;  %v1776_v8 = vmul.f32 %v1773_v10, %v4116_v23 }
0x2988   :  { %v652_v5 = vmul.f32 %v3492_v14, %v650_v28  ;;  %vm657_vm9 = vweird.f32 %v3492_v14 }
0x2989   :  { %vm658_vm11 = vmor %vm656_vm10, %vm657_vm9 }
0x298a   :  { %v653_v29 = vsub.f32 1.0, %v652_v5 }
0x298c   :  { %v654_v4 = vmul.f32 %v3492_v14, %v653_v29 }
0x298e   :  { %v655_v2 = vadd.f32 %v3492_v14, %v654_v4 }
0x2990   :  { %v659_v3 = vsel %vm658_vm11, %v3492_v14, %v655_v2 }
0x2991   :  { %v664_v9 = vsel %vm661_vm12, %v663_v17, %v659_v3 }
0x2992   :  { %v667_v21 = vmul.f32 %v664_v9, %v3956_v56  ;;  %v4153_v56 = vld [vmem:[#allocation6 + $0x48] sm:$0xff] }
0x2993   :  { %2041 = vmatpush.msra.mxu2 %v4153_v56  ;;  %2107 = vmatpush.msrb.mxu3 %v4153_v56 }
0x2995   :  { %2042 = vmatpush.msra.mxu2 %v4157_v7  ;;  %2108 = vmatpush.msrb.mxu3 %v4157_v7 }
0x29e4   :  { %v1779_v63 = vpop.permute.xlu1 %1778 }
0x29e5   :  { %v1781_v11 = vmul.f32 %v1779_v63, %v1773_v10 }
0x29e7   :  { %1783 = vrot.lane.b32.xlu2 %v1781_v11, %s3711_s11 }
0x29ef   :  { %669 = vrot.lane.b32.xlu2 %v3488_v0, %s3710_s10 }
0x2a41   :  { %v1784_v30 = vpop.permute.xlu2 %1783 }
0x2a42   :  { %v4138_v15 = vadd.f32 %v1784_v30, %v1776_v8 }
0x2a44   :  { %3493 = vtanh.f32 %v4138_v15 }
0x2a49   :  { %v670_v18 = vpop.permute.xlu2 %669 }
0x2a4a   :  { %v3494_v19 = vpop.eup %3493  ;;  %v672_v20 = vmul.f32 %v670_v18, %v664_v9 }
0x2a4b   :  { %1789 = vrot.lane.b32.xlu0 %v3494_v19, %s3710_s10 }
0x2a4c   :  { %674 = vrot.lane.b32.xlu2 %v672_v20, %s3711_s11 }
0x2aa6   :  { %v675_v22 = vpop.permute.xlu2 %674 }
0x2aa7   :  { %v677_v23 = vadd.f32 %v675_v22, %v667_v21 }
0x2aa9   :  { %3495 = vtanh.f32 %v677_v23 }
0x2aaf   :  { %v3496_v24 = vpop.eup %3495 }
0x2ab0   :  { %680 = vrot.lane.b32.xlu2 %v3496_v24, %s3710_s10 }
0x2abd   :  { %v1790_v25 = vpop.permute.xlu0 %1789 }
0x2abe   :  { %v1792_v26 = vmul.f32 %v1790_v25, %v1773_v10 }
0x2ac0   :  { %1794 = vrot.lane.b32.xlu1 %v1792_v26, %s3711_s11 }
0x2b0a   :  { %v681_v31 = vpop.permute.xlu2 %680 }
0x2b0b   :  { %v683_v32 = vmul.f32 %v681_v31, %v664_v9 }
0x2b0d   :  { %685 = vrot.lane.b32.xlu2 %v683_v32, %s3711_s11 }
0x2b32   :  { %v1795_v35 = vpop.permute.xlu1 %1794 }
0x2b33   :  { %1797 = vst.msk [vmem:[#allocation3 + $0x28] sm:$0xff] %vm160_vm6, %v1795_v35  ;;  %3263 = vmatmul.msk.f32.vlgmr.msrb.gmra.mxu2 %vm160_vm6, %v1795_v35 }
0x2b34   :  { %2171 = vmatpush.msrb.mxu2 %v4147_v33 }
0x2b36   :  { %2172 = vmatpush.msrb.mxu2 %v4149_v34 }
0x2b38   :  { %2173 = vmatpush.msrb.mxu2 %v4153_v56 }
0x2b3a   :  { %v1935_v36 = vld [vmem:[#allocation3 + $0x28] sm:$0xff]  ;;  %2174 = vmatpush.msrb.mxu2 %v4157_v7 }
0x2b3b   :  { %3273 = vmatmul.msk.f32.gmra.mxu0 %vm160_vm6, %v1935_v36  ;;  %2043 = vmatmul.f32.vlgmr.msra.gmra.mxu2 %v3709_v6 }
0x2b3c   :  { %2303 = vmatpush.msra.mxu2 %v4147_v33 }
0x2b3e   :  { %2304 = vmatpush.msra.mxu2 %v4149_v34 }
0x2b40   :  { %2305 = vmatpush.msra.mxu2 %v4153_v56 }
0x2b42   :  { %2306 = vmatpush.msra.mxu2 %v4157_v7 }
0x2b67   :  { %v686_v37 = vpop.permute.xlu2 %685 }
0x2b68   :  { %688 = vst.msk [vmem:[#allocation3 + $0x38] sm:$0xff] %vm160_vm6, %v686_v37 }
0x2b6f   :  { %v696_v38 = vld [vmem:[#allocation3 + $0x38] sm:$0xff] }
0x2b70   :  { %3227 = vmatmul.msk.f32.gmra.mxu3 %vm160_vm6, %v696_v38 }
0x2bb6   :  { %v1818_v41 = vpop.f32.mrf.mxu2 }
0x2bb7   :  { %v1821_v42 = vadd.f32 %v1818_v41, %v1391_v40  ;;  %v1997_v40 = vpop.f32.mrf.mxu0 }
0x2bb8   :  { %v1998_v41 = vadd.f32 %v4181_v43, %v1997_v40 }
0x2bb9   :  { %3497 = vtanh.f32 %v1821_v42  ;;  %v3264_v13 = vmul.f32 -1.442695, %v1821_v42 }
0x2bbe   :  { %v2044_v46 = vpop.f32.mrf.mxu2 }
0x2bbf   :  { %v3498_v47 = vpop.eup %3497  ;;  %v2047_v48 = vadd.f32 %v2044_v46, %v1995_v45 }
0x2bc0   :  { %1844 = vrot.lane.b32.xlu0 %v3498_v47, %s3710_s10 }
0x2bc1   :  { %3499 = vtanh.f32 %v2047_v48  ;;  %v3276_v57 = vmul.f32 -1.442695, %v2047_v48 }
0x2bc2   :  { %3501 = vpow2.f32 %v3264_v13 }
0x2bc3   :  { %3503 = vpow2.f32 %v3276_v57 }
0x2bc7   :  { %v3500_v49 = vpop.eup %3499 }
0x2bc8   :  { %2070 = vrot.lane.b32.xlu1 %v3500_v49, %s3710_s10  ;;  %v3502_v50 = vpop.eup %3501 }
0x2bc9   :  { %v1825_v51 = vadd.f32 1.0, %v3502_v50  ;;  %v3504_v52 = vpop.eup %3503 }
0x2bca   :  { %v2051_v53 = vadd.f32 1.0, %v3504_v52 }
0x2bcb   :  { %3505 = vrcp.f32 %v1825_v51  ;;  %v1837_v0 = vand.u32 2147483648, %v1825_v51  ;;  %vm1831_vm13 = vweird.f32 %v1825_v51  ;;  %v1835_v1 = vand.u32 2147483647, %v1825_v51 }
0x2bcc   :  { %3507 = vrcp.f32 %v2051_v53  ;;  %v2063_v30 = vand.u32 2147483648, %v2051_v53  ;;  %vm2057_vm2 = vweird.f32 %v2051_v53  ;;  %v2061_v2 = vand.u32 2147483647, %v2051_v53 }
0x2bcd   :  { %v1838_v14 = vor.u32 1.1754944e-38, %v1837_v0  ;;  %vm1836_vm15 = vcmp.eq.f32.partialorder %v1835_v1, 8.507059e+37 }
0x2bce   :  { %v2064_v16 = vor.u32 1.1754944e-38, %v2063_v30  ;;  %vm2062_vm4 = vcmp.eq.f32.partialorder %v2061_v2, 8.507059e+37 }
0x2bd1   :  { %v3506_v54 = vpop.eup %3505 }
0x2bd2   :  { %v1827_v55 = vmul.f32 %v3506_v54, %v1825_v51  ;;  %v3508_v60 = vpop.eup %3507  ;;  %vm1832_vm1 = vweird.f32 %v3506_v54 }
0x2bd3   :  { %v2053_v63 = vmul.f32 %v3508_v60, %v2051_v53  ;;  %vm1833_vm14 = vmor %vm1831_vm13, %vm1832_vm1  ;;  %vm2058_vm0 = vweird.f32 %v3508_v60 }
0x2bd4   :  { %v1828_v58 = vsub.f32 1.0, %v1827_v55  ;;  %vm2059_vm3 = vmor %vm2057_vm2, %vm2058_vm0 }
0x2bd5   :  { %v2054_v11 = vsub.f32 1.0, %v2053_v63 }
0x2bd6   :  { %v1829_v62 = vmul.f32 %v3506_v54, %v1828_v58 }
0x2bd7   :  { %v2055_v28 = vmul.f32 %v3508_v60, %v2054_v11 }
0x2bd8   :  { %v1830_v10 = vadd.f32 %v3506_v54, %v1829_v62 }
0x2bd9   :  { %v2056_v8 = vadd.f32 %v3508_v60, %v2055_v28 }
0x2bda   :  { %v1834_v27 = vsel %vm1833_vm14, %v3506_v54, %v1830_v10 }
0x2bdb   :  { %v1839_v29 = vsel %vm1836_vm15, %v1838_v14, %v1834_v27  ;;  %v2060_v61 = vsel %vm2059_vm3, %v3508_v60, %v2056_v8  ;;  %v2000_v14 = vpop.f32.mrf.mxu0 }
0x2bdc   :  { %v2065_v17 = vsel %vm2062_vm4, %v2064_v16, %v2060_v61  ;;  %v1842_v18 = vmul.f32 %v1839_v29, %v4138_v15 }
0x2bdd   :  { %v2068_v21 = vmul.f32 0.0, %v2065_v17 }
0x2bf3   :  { %v4209_v38 = vpop.f32.mrf.mxu3 }
0x2c32   :  { %v1845_v5 = vpop.permute.xlu0 %1844 }
0x2c33   :  { %v1847_v4 = vmul.f32 %v1845_v5, %v1839_v29  ;;  %v2001_v5 = vadd.f32 %v4181_v43, %v2000_v14 }
0x2c35   :  { %1849 = vrot.lane.b32.xlu0 %v1847_v4, %s3711_s11 }
0x2c3a   :  { %v2071_v3 = vpop.permute.xlu1 %2070 }
0x2c3b   :  { %v2073_v9 = vmul.f32 %v2071_v3, %v2065_v17 }
0x2c3d   :  { %2075 = vrot.lane.b32.xlu1 %v2073_v9, %s3711_s11 }
0x2ca7   :  { %v1850_v19 = vpop.permute.xlu0 %1849 }
0x2ca8   :  { %v4189_v20 = vadd.f32 %v1850_v19, %v1842_v18 }
0x2caa   :  { %3509 = vtanh.f32 %v4189_v20 }
0x2caf   :  { %v2076_v22 = vpop.permute.xlu1 %2075 }
0x2cb0   :  { %v3510_v23 = vpop.eup %3509  ;;  %v2078_v24 = vadd.f32 %v2076_v22, %v2068_v21 }
0x2cb1   :  { %1855 = vrot.lane.b32.xlu0 %v3510_v23, %s3710_s10 }
0x2cb2   :  { %3511 = vtanh.f32 %v2078_v24 }
0x2cb8   :  { %v3512_v25 = vpop.eup %3511 }
0x2cb9   :  { %2081 = vrot.lane.b32.xlu1 %v3512_v25, %s3710_s10 }
0x2d23   :  { %v1856_v26 = vpop.permute.xlu0 %1855 }
0x2d24   :  { %v1858_v31 = vmul.f32 %v1856_v26, %v1839_v29 }
0x2d26   :  { %1860 = vrot.lane.b32.xlu0 %v1858_v31, %s3711_s11 }
0x2d2b   :  { %v2082_v15 = vpop.permute.xlu1 %2081 }
0x2d2c   :  { %v2084_v32 = vmul.f32 %v2082_v15, %v2065_v17 }
0x2d2e   :  { %2086 = vrot.lane.b32.xlu1 %v2084_v32, %s3711_s11 }
0x2d98   :  { %v1861_v35 = vpop.permute.xlu0 %1860 }
0x2d99   :  { %1863 = vst.msk [vmem:[#allocation3 + $0x30] sm:$0xff] %vm160_vm6, %v1861_v35  ;;  %3265 = vmatmul.msk.f32.vlgmr.msra.gmra.mxu3 %vm160_vm6, %v1861_v35 }
0x2d9a   :  { %2237 = vmatpush.msra.mxu3 %v4147_v33 }
0x2d9c   :  { %2238 = vmatpush.msra.mxu3 %v4149_v34 }
0x2d9e   :  { %2239 = vmatpush.msra.mxu3 %v4153_v56 }
0x2da0   :  { %v2087_v36 = vpop.permute.xlu1 %2086  ;;  %v1936_v37 = vld [vmem:[#allocation3 + $0x30] sm:$0xff]  ;;  %2240 = vmatpush.msra.mxu3 %v4157_v7 }
0x2da1   :  { %2089 = vst.msk [vmem:[#allocation3] sm:$0xff] %vm160_vm6, %v2087_v36  ;;  %3274 = vmatmul.msk.f32.gmra.mxu0 %vm160_vm6, %v1936_v37  ;;  %3277 = vmatmul.msk.f32.vlgmr.msrb.gmra.mxu3 %vm160_vm6, %v2087_v36 }
0x2da2   :  { %2369 = vmatpush.msrb.mxu3 %v4147_v33 }
0x2da4   :  { %2370 = vmatpush.msrb.mxu3 %v4149_v34 }
0x2da6   :  { %2371 = vmatpush.msrb.mxu3 %v4153_v56 }
0x2da8   :  { %2372 = vmatpush.msrb.mxu3 %v4157_v7 }
0x2e1c   :  { %v4211_v39 = vpop.f32.mrf.mxu3 }
0x2e24   :  { %v2110_v42 = vpop.f32.mrf.mxu3 }
0x2e25   :  { %v2113_v44 = vadd.f32 %v2110_v42, %v1998_v41  ;;  %v2003_v41 = vpop.f32.mrf.mxu0 }
0x2e26   :  { %v2004_v42 = vadd.f32 %v4181_v43, %v2003_v41 }
0x2e27   :  { %3513 = vtanh.f32 %v2113_v44  ;;  %v3278_v46 = vmul.f32 -1.442695, %v2113_v44 }
0x2e29   :  { %3515 = vpow2.f32 %v3278_v46 }
0x2e2d   :  { %v3514_v45 = vpop.eup %3513 }
0x2e2e   :  { %2136 = vrot.lane.b32.xlu2 %v3514_v45, %s3710_s10 }
0x2e2f   :  { %v3516_v47 = vpop.eup %3515 }
0x2e30   :  { %v2117_v48 = vadd.f32 1.0, %v3516_v47 }
0x2e32   :  { %3517 = vrcp.f32 %v2117_v48  ;;  %v2129_v52 = vand.u32 2147483648, %v2117_v48  ;;  %vm2123_vm7 = vweird.f32 %v2117_v48  ;;  %v2127_v53 = vand.u32 2147483647, %v2117_v48 }
0x2e34   :  { %v2130_v55 = vor.u32 1.1754944e-38, %v2129_v52  ;;  %vm2128_vm9 = vcmp.eq.f32.partialorder %v2127_v53, 8.507059e+37 }
0x2e38   :  { %v3518_v49 = vpop.eup %3517 }
0x2e39   :  { %v2119_v13 = vmul.f32 %v3518_v49, %v2117_v48  ;;  %vm2124_vm5 = vweird.f32 %v3518_v49 }
0x2e3a   :  { %vm2125_vm8 = vmor %vm2123_vm7, %vm2124_vm5 }
0x2e3b   :  { %v2120_v57 = vsub.f32 1.0, %v2119_v13 }
0x2e3d   :  { %v2121_v50 = vmul.f32 %v3518_v49, %v2120_v57 }
0x2e3f   :  { %v2122_v51 = vadd.f32 %v3518_v49, %v2121_v50 }
0x2e41   :  { %v2126_v54 = vsel %vm2125_vm8, %v3518_v49, %v2122_v51 }
0x2e42   :  { %v2131_v60 = vsel %vm2128_vm9, %v2130_v55, %v2126_v54 }
0x2e43   :  { %v2134_v63 = vmul.f32 %v2131_v60, %v2078_v24 }
0x2e88   :  { %v2137_v58 = vpop.permute.xlu2 %2136 }
0x2e89   :  { %v2139_v62 = vmul.f32 %v2137_v58, %v2131_v60 }
0x2e8b   :  { %2141 = vrot.lane.b32.xlu0 %v2139_v62, %s3711_s11 }
0x2efd   :  { %v2142_v10 = vpop.permute.xlu0 %2141 }
0x2efe   :  { %v2144_v11 = vadd.f32 %v2142_v10, %v2134_v63 }
0x2f00   :  { %3519 = vtanh.f32 %v2144_v11 }
0x2f06   :  { %v3520_v0 = vpop.eup %3519 }
0x2f07   :  { %2147 = vrot.lane.b32.xlu1 %v3520_v0, %s3710_s10 }
0x2f79   :  { %v2148_v1 = vpop.permute.xlu1 %2147 }
0x2f7a   :  { %v2150_v27 = vmul.f32 %v2148_v1, %v2131_v60  ;;  %v2006_v1 = vpop.f32.mrf.mxu0 }
0x2f7c   :  { %2152 = vrot.lane.b32.xlu2 %v2150_v27, %s3711_s11  ;;  %v2007_v27 = vadd.f32 %v4181_v43, %v2006_v1 }
0x2fd6   :  { %v2153_v28 = vpop.permute.xlu2 %2152 }
0x2fd7   :  { %2155 = vst.msk [vmem:[#allocation3 + $0x8] sm:$0xff] %vm160_vm6, %v2153_v28  ;;  %3279 = vmatmul.msk.f32.vlgmr.msrb.gmra.mxu2 %vm160_vm6, %v2153_v28 }
0x2fd8   :  { %2435 = vmatpush.msrb.mxu2 %v4147_v33 }
0x2fda   :  { %2436 = vmatpush.msrb.mxu2 %v4149_v34 }
0x2fdc   :  { %2437 = vmatpush.msrb.mxu2 %v4153_v56 }
0x2fde   :  { %2438 = vmatpush.msrb.mxu2 %v4157_v7 }
0x305a   :  { %v2176_v29 = vpop.f32.mrf.mxu2 }
0x305b   :  { %v2179_v4 = vadd.f32 %v2176_v29, %v2001_v5 }
0x305d   :  { %3521 = vtanh.f32 %v2179_v4  ;;  %v3280_v30 = vmul.f32 -1.442695, %v2179_v4 }
0x305f   :  { %3523 = vpow2.f32 %v3280_v30 }
0x3063   :  { %v3522_v8 = vpop.eup %3521 }
0x3064   :  { %2202 = vrot.lane.b32.xlu0 %v3522_v8, %s3710_s10 }
0x3065   :  { %v3524_v2 = vpop.eup %3523 }
0x3066   :  { %v2183_v61 = vadd.f32 1.0, %v3524_v2 }
0x3068   :  { %3525 = vrcp.f32 %v2183_v61  ;;  %v2195_v19 = vand.u32 2147483648, %v2183_v61  ;;  %vm2189_vm11 = vweird.f32 %v2183_v61  ;;  %v2193_v21 = vand.u32 2147483647, %v2183_v61 }
0x306a   :  { %v2196_v23 = vor.u32 1.1754944e-38, %v2195_v19  ;;  %vm2194_vm1 = vcmp.eq.f32.partialorder %v2193_v21, 8.507059e+37 }
0x306e   :  { %v3526_v16 = vpop.eup %3525 }
0x306f   :  { %v2185_v3 = vmul.f32 %v3526_v16, %v2183_v61  ;;  %vm2190_vm10 = vweird.f32 %v3526_v16 }
0x3070   :  { %vm2191_vm12 = vmor %vm2189_vm11, %vm2190_vm10 }
0x3071   :  { %v2186_v17 = vsub.f32 1.0, %v2185_v3 }
0x3073   :  { %v2187_v9 = vmul.f32 %v3526_v16, %v2186_v17 }
0x3075   :  { %v2188_v18 = vadd.f32 %v3526_v16, %v2187_v9 }
0x3077   :  { %v2192_v22 = vsel %vm2191_vm12, %v3526_v16, %v2188_v18  ;;  %v3650_v18 = vld [vmem:[%s4446_s6] ss:$0 sm:$0xff] }
0x3078   :  { %v2197_v25 = vsel %vm2194_vm1, %v2196_v23, %v2192_v22  ;;  %v772_v19 = vadd.f32 %v3650_v18, %v4209_v38  ;;  %v2561_v18 = vld [vmem:[#allocation4 + $0x60] sm:$0xff] }
0x3079   :  { %v2200_v31 = vmul.f32 %v2197_v25, %v2144_v11 }
0x307a   :  { %v1265_v23 = vadd.f32 %v4070_v12, %v772_v19 }
0x30d6   :  { %v2203_v24 = vpop.permute.xlu0 %2202 }
0x30d7   :  { %v2205_v26 = vmul.f32 %v2203_v24, %v2197_v25 }
0x30d9   :  { %2207 = vrot.lane.b32.xlu1 %v2205_v26, %s3711_s11 }
0x314b   :  { %v2208_v15 = vpop.permute.xlu1 %2207 }
0x314c   :  { %v2210_v32 = vadd.f32 %v2208_v15, %v2200_v31 }
0x314e   :  { %3527 = vtanh.f32 %v2210_v32 }
0x3154   :  { %v3528_v35 = vpop.eup %3527 }
0x3155   :  { %2213 = vrot.lane.b32.xlu2 %v3528_v35, %s3710_s10 }
0x31af   :  { %v2214_v36 = vpop.permute.xlu2 %2213 }
0x31b0   :  { %v2216_v37 = vmul.f32 %v2214_v36, %v2197_v25  ;;  %v3242_v36 = vmul.f32 -1.442695, %v1265_v23 }
0x31b2   :  { %2218 = vrot.lane.b32.xlu0 %v2216_v37, %s3711_s11 }
0x3224   :  { %v2219_v40 = vpop.permute.xlu0 %2218 }
0x3225   :  { %2221 = vst.msk [vmem:[#allocation3 + $0x10] sm:$0xff] %vm160_vm6, %v2219_v40  ;;  %3281 = vmatmul.msk.f32.vlgmr.msra.gmra.mxu3 %vm160_vm6, %v2219_v40 }
0x3226   :  { %2501 = vmatpush.msra.mxu3 %v4147_v33 }
0x3228   :  { %2502 = vmatpush.msra.mxu3 %v4149_v34 }
0x322a   :  { %2503 = vmatpush.msra.mxu3 %v4153_v56 }
0x322c   :  { %2504 = vmatpush.msra.mxu3 %v4157_v7 }
0x32a8   :  { %v2242_v44 = vpop.f32.mrf.mxu3 }
0x32a9   :  { %v2245_v45 = vadd.f32 %v2242_v44, %v2004_v42 }
0x32ab   :  { %3529 = vtanh.f32 %v2245_v45  ;;  %v3282_v47 = vmul.f32 -1.442695, %v2245_v45 }
0x32ad   :  { %3531 = vpow2.f32 %v3282_v47 }
0x32b1   :  { %v3530_v46 = vpop.eup %3529 }
0x32b2   :  { %2268 = vrot.lane.b32.xlu1 %v3530_v46, %s3710_s10 }
0x32b3   :  { %v3532_v48 = vpop.eup %3531 }
0x32b4   :  { %v2249_v49 = vadd.f32 1.0, %v3532_v48 }
0x32b6   :  { %3533 = vrcp.f32 %v2249_v49  ;;  %v2261_v7 = vand.u32 2147483648, %v2249_v49  ;;  %vm2255_vm14 = vweird.f32 %v2249_v49  ;;  %v2259_v50 = vand.u32 2147483647, %v2249_v49 }
0x32b8   :  { %v2262_v52 = vor.u32 1.1754944e-38, %v2261_v7  ;;  %vm2260_vm0 = vcmp.eq.f32.partialorder %v2259_v50, 8.507059e+37  ;;  %v2009_v50 = vpop.f32.mrf.mxu0 }
0x32bc   :  { %v3534_v33 = vpop.eup %3533 }
0x32bd   :  { %v2251_v34 = vmul.f32 %v3534_v33, %v2249_v49  ;;  %vm2256_vm13 = vweird.f32 %v3534_v33 }
0x32be   :  { %vm2257_vm15 = vmor %vm2255_vm14, %vm2256_vm13 }
0x32bf   :  { %v2252_v13 = vsub.f32 1.0, %v2251_v34 }
0x32c1   :  { %v2253_v56 = vmul.f32 %v3534_v33, %v2252_v13 }
0x32c3   :  { %v2254_v57 = vadd.f32 %v3534_v33, %v2253_v56 }
0x32c5   :  { %v2258_v51 = vsel %vm2257_vm15, %v3534_v33, %v2254_v57 }
0x32c6   :  { %v2263_v54 = vsel %vm2260_vm0, %v2262_v52, %v2258_v51  ;;  %v2010_v51 = vadd.f32 %v4181_v43, %v2009_v50 }
0x32c7   :  { %v2266_v58 = vmul.f32 %v2263_v54, %v2210_v32 }
0x3324   :  { %v2269_v53 = vpop.permute.xlu1 %2268 }
0x3325   :  { %v2271_v55 = vmul.f32 %v2269_v53, %v2263_v54 }
0x3327   :  { %2273 = vrot.lane.b32.xlu2 %v2271_v55, %s3711_s11 }
0x3381   :  { %v2274_v60 = vpop.permute.xlu2 %2273 }
0x3382   :  { %v2276_v62 = vadd.f32 %v2274_v60, %v2266_v58 }
0x3384   :  { %3535 = vtanh.f32 %v2276_v62 }
0x338a   :  { %v3536_v63 = vpop.eup %3535 }
0x338b   :  { %2279 = vrot.lane.b32.xlu0 %v3536_v63, %s3710_s10 }
0x33fd   :  { %v2280_v10 = vpop.permute.xlu0 %2279 }
0x33fe   :  { %v2282_v11 = vmul.f32 %v2280_v10, %v2263_v54 }
0x3400   :  { %2284 = vrot.lane.b32.xlu1 %v2282_v11, %s3711_s11 }
0x3472   :  { %v2285_v0 = vpop.permute.xlu1 %2284 }
0x3473   :  { %2287 = vst.msk [vmem:[#allocation3 + $0x18] sm:$0xff] %vm160_vm6, %v2285_v0  ;;  %3283 = vmatmul.msk.f32.vlgmr.msra.gmra.mxu2 %vm160_vm6, %v2285_v0 }
0x34f6   :  { %v2308_v28 = vpop.f32.mrf.mxu2 }
0x34f7   :  { %v2311_v14 = vadd.f32 %v2308_v28, %v2007_v27 }
0x34f9   :  { %3537 = vtanh.f32 %v2311_v14  ;;  %v3284_v29 = vmul.f32 -1.442695, %v2311_v14 }
0x34fb   :  { %3539 = vpow2.f32 %v3284_v29 }
0x34ff   :  { %v3538_v5 = vpop.eup %3537 }
0x3500   :  { %2334 = vrot.lane.b32.xlu2 %v3538_v5, %s3710_s10 }
0x3501   :  { %v3540_v4 = vpop.eup %3539 }
0x3502   :  { %v2315_v8 = vadd.f32 1.0, %v3540_v4 }
0x3504   :  { %3541 = vrcp.f32 %v2315_v8  ;;  %v2327_v17 = vand.u32 2147483648, %v2315_v8  ;;  %vm2321_vm3 = vweird.f32 %v2315_v8  ;;  %v2325_v9 = vand.u32 2147483647, %v2315_v8 }
0x3505   :  { %3543 = vtanh.f32 %v1265_v23 }
0x3506   :  { %v2328_v22 = vor.u32 1.1754944e-38, %v2327_v17  ;;  %vm2326_vm5 = vcmp.eq.f32.partialorder %v2325_v9, 8.507059e+37  ;;  %v2563_v17 = vld [vmem:[#allocation4 + $0x70] sm:$0xff]  ;;  %v2562_v9 = vld [vmem:[#allocation4 + $0x68] sm:$0xff] }
0x350a   :  { %v3542_v30 = vpop.eup %3541 }
0x350b   :  { %v2317_v2 = vmul.f32 %v3542_v30, %v2315_v8  ;;  %vm2322_vm2 = vweird.f32 %v3542_v30  ;;  %v3544_v31 = vpop.eup %3543 }
0x350c   :  { %vm2323_vm4 = vmor %vm2321_vm3, %vm2322_vm2 }
0x350d   :  { %v2318_v61 = vsub.f32 1.0, %v2317_v2 }
0x350f   :  { %v2319_v16 = vmul.f32 %v3542_v30, %v2318_v61 }
0x3511   :  { %v2320_v3 = vadd.f32 %v3542_v30, %v2319_v16 }
0x3513   :  { %v2324_v21 = vsel %vm2323_vm4, %v3542_v30, %v2320_v3  ;;  %v2564_v3 = vld [vmem:[#allocation4 + $0x78] sm:$0xff] }
0x3514   :  { %v2329_v25 = vsel %vm2326_vm5, %v2328_v22, %v2324_v21  ;;  %2611 = vmatpush.msrb.mxu1 %v2564_v3 }
0x3515   :  { %v2332_v15 = vmul.f32 %v2329_v25, %v2276_v62 }
0x3516   :  { %2612 = vmatpush.msrb.mxu1 %v2563_v17 }
0x3518   :  { %2613 = vmatpush.msrb.mxu1 %v2562_v9 }
0x351a   :  { %2614 = vmatpush.msrb.mxu1 %v2561_v18 }
0x355a   :  { %v2335_v24 = vpop.permute.xlu2 %2334 }
0x355b   :  { %v2337_v26 = vmul.f32 %v2335_v24, %v2329_v25 }
0x355d   :  { %2339 = vrot.lane.b32.xlu0 %v2337_v26, %s3711_s11  ;;  %v2552_v26 = vld [vmem:[#allocation3] sm:$0xff] }
0x3565   :  { %1288 = vrot.lane.b32.xlu0 %v3544_v31, %s3710_s10  ;;  %v2553_v31 = vld [vmem:[#allocation3 + $0x8] sm:$0xff] }
0x35cf   :  { %v2340_v32 = vpop.permute.xlu0 %2339 }
0x35d0   :  { %v4251_v35 = vadd.f32 %v2340_v32, %v2332_v15  ;;  %v2554_v15 = vld [vmem:[#allocation3 + $0x10] sm:$0xff]  ;;  %v2555_v32 = vld [vmem:[#allocation3 + $0x18] sm:$0xff] }
0x35d2   :  { %3545 = vtanh.f32 %v4251_v35 }
0x35d3   :  { %3547 = vpow2.f32 %v3242_v36 }
0x35d7   :  { %v1289_v13 = vpop.permute.xlu0 %1288 }
0x35d8   :  { %v3546_v38 = vpop.eup %3545 }
0x35d9   :  { %2345 = vrot.lane.b32.xlu1 %v3546_v38, %s3710_s10  ;;  %v3548_v12 = vpop.eup %3547 }
0x35da   :  { %v1269_v37 = vadd.f32 1.0, %v3548_v12  ;;  %v4278_v12 = vld [vmem:[#allocation6 + $0x78] sm:$0xff] }
0x35db   :  { %2661 = vmatpush.msra.mxu2 %v4278_v12 }
0x35dc   :  { %3549 = vrcp.f32 %v1269_v37  ;;  %v1281_v48 = vand.u32 2147483648, %v1269_v37  ;;  %vm1275_vm8 = vweird.f32 %v1269_v37  ;;  %v1279_v49 = vand.u32 2147483647, %v1269_v37 }
0x35de   :  { %v1282_v34 = vor.u32 1.1754944e-38, %v1281_v48  ;;  %vm1280_vm10 = vcmp.eq.f32.partialorder %v1279_v49, 8.507059e+37 }
0x35e2   :  { %v3550_v40 = vpop.eup %3549 }
0x35e3   :  { %v1271_v41 = vmul.f32 %v3550_v40, %v1269_v37  ;;  %vm1276_vm7 = vweird.f32 %v3550_v40  ;;  %v4280_v37 = vld [vmem:[#allocation6 + $0x70] sm:$0xff] }
0x35e4   :  { %vm1277_vm9 = vmor %vm1275_vm8, %vm1276_vm7  ;;  %2662 = vmatpush.msra.mxu2 %v4280_v37 }
0x35e5   :  { %v1272_v42 = vsub.f32 1.0, %v1271_v41  ;;  %v4288_v41 = vld [vmem:[#allocation6 + $0x60] sm:$0xff] }
0x35e7   :  { %v1273_v44 = vmul.f32 %v3550_v40, %v1272_v42 }
0x35e9   :  { %v1274_v46 = vadd.f32 %v3550_v40, %v1273_v44 }
0x35eb   :  { %v1278_v33 = vsel %vm1277_vm9, %v3550_v40, %v1274_v46  ;;  %v4284_v40 = vld [vmem:[#allocation6 + $0x68] sm:$0xff]  ;;  %v2012_v46 = vpop.f32.mrf.mxu0 }
0x35ec   :  { %v1283_v56 = vsel %vm1280_vm10, %v1282_v34, %v1278_v33  ;;  %2663 = vmatpush.msra.mxu2 %v4284_v40  ;;  %v4312_v33 = vld [vmem:[%s4446_s6 + $0x3] ss:$0 sm:$0xff] }
0x35ed   :  { %v1291_v57 = vmul.f32 %v1289_v13, %v1283_v56  ;;  %v1286_v55 = vmul.f32 %v1283_v56, %v4029_v59 }
0x35ee   :  { %2664 = vmatpush.msra.mxu2 %v4288_v41 }
0x364b   :  { %v2346_v45 = vpop.permute.xlu1 %2345 }
0x364c   :  { %v2348_v47 = vmul.f32 %v2346_v45, %v2329_v25 }
0x364e   :  { %2350 = vrot.lane.b32.xlu2 %v2348_v47, %s3711_s11  ;;  %v2013_v47 = vadd.f32 %v4181_v43, %v2012_v46 }
0x3656   :  { %1293 = vrot.lane.b32.xlu2 %v1291_v57, %s3711_s11 }
0x36a8   :  { %v2351_v7 = vpop.permute.xlu2 %2350 }
0x36a9   :  { %2353 = vst.msk [vmem:[#allocation3 + $0x20] sm:$0xff] %vm160_vm6, %v2351_v7  ;;  %3285 = vmatmul.msk.f32.vlgmr.msrb.gmra.mxu3 %vm160_vm6, %v2351_v7 }
0x36aa   :  { %2725 = vmatpush.msrb.mxu3 %v4278_v12 }
0x36ac   :  { %2726 = vmatpush.msrb.mxu3 %v4280_v37 }
0x36ae   :  { %2727 = vmatpush.msrb.mxu3 %v4284_v40 }
0x36b0   :  { %v1294_v54 = vpop.permute.xlu2 %1293  ;;  %2728 = vmatpush.msrb.mxu3 %v4288_v41 }
0x36b1   :  { %v1296_v58 = vadd.f32 %v1294_v54, %v1286_v55 }
0x372c   :  { %v2374_v52 = vpop.f32.mrf.mxu3 }
0x372d   :  { %v2377_v53 = vadd.f32 %v2374_v52, %v2010_v51 }
0x372f   :  { %3551 = vtanh.f32 %v2377_v53  ;;  %v3286_v63 = vmul.f32 -1.442695, %v2377_v53 }
0x3730   :  { %3553 = vtanh.f32 %v1296_v58 }
0x3731   :  { %3555 = vpow2.f32 %v3286_v63 }
0x3735   :  { %v3552_v60 = vpop.eup %3551 }
0x3736   :  { %2400 = vrot.lane.b32.xlu1 %v3552_v60, %s3710_s10  ;;  %v3554_v62 = vpop.eup %3553 }
0x3737   :  { %v3556_v10 = vpop.eup %3555 }
0x3738   :  { %v2381_v11 = vadd.f32 1.0, %v3556_v10 }
0x373a   :  { %3557 = vrcp.f32 %v2381_v11  ;;  %v2393_v59 = vand.u32 2147483648, %v2381_v11  ;;  %vm2387_vm12 = vweird.f32 %v2381_v11  ;;  %v2391_v5 = vand.u32 2147483647, %v2381_v11 }
0x373c   :  { %v2394_v4 = vor.u32 1.1754944e-38, %v2393_v59  ;;  %vm2392_vm13 = vcmp.eq.f32.partialorder %v2391_v5, 8.507059e+37 }
0x373e   :  { %1299 = vrot.lane.b32.xlu1 %v3554_v62, %s3710_s10 }
0x3740   :  { %v3558_v0 = vpop.eup %3557 }
0x3741   :  { %v2383_v1 = vmul.f32 %v3558_v0, %v2381_v11  ;;  %vm2388_vm11 = vweird.f32 %v3558_v0 }
0x3742   :  { %vm2389_vm1 = vmor %vm2387_vm12, %vm2388_vm11 }
0x3743   :  { %v2384_v27 = vsub.f32 1.0, %v2383_v1 }
0x3745   :  { %v2385_v28 = vmul.f32 %v3558_v0, %v2384_v27 }
0x3747   :  { %v2386_v14 = vadd.f32 %v3558_v0, %v2385_v28 }
0x3749   :  { %v2390_v29 = vsel %vm2389_vm1, %v3558_v0, %v2386_v14 }
0x374a   :  { %v2395_v30 = vsel %vm2392_vm13, %v2394_v4, %v2390_v29 }
0x374b   :  { %v2398_v19 = vmul.f32 %v2395_v30, %v4251_v35  ;;  %v2556_v35 = vld [vmem:[#allocation3 + $0x20] sm:$0xff] }
0x37a8   :  { %v2401_v8 = vpop.permute.xlu1 %2400 }
0x37a9   :  { %v2403_v2 = vmul.f32 %v2401_v8, %v2395_v30 }
0x37ab   :  { %2405 = vrot.lane.b32.xlu0 %v2403_v2, %s3711_s11 }
0x37b0   :  { %v1300_v61 = vpop.permute.xlu1 %1299 }
0x37b1   :  { %v1302_v16 = vmul.f32 %v1300_v61, %v1283_v56 }
0x37b3   :  { %1304 = vrot.lane.b32.xlu0 %v1302_v16, %s3711_s11 }
0x381d   :  { %v2406_v21 = vpop.permute.xlu0 %2405 }
0x381e   :  { %v4266_v22 = vadd.f32 %v2406_v21, %v2398_v19 }
0x3820   :  { %3559 = vtanh.f32 %v4266_v22 }
0x3825   :  { %v1305_v23 = vpop.permute.xlu0 %1304 }
0x3826   :  { %v3560_v24 = vpop.eup %3559  ;;  %1307 = vst.msk [vmem:[#allocation3 + $0x38] sm:$0xff] %vm160_vm6, %v1305_v23 }
0x3827   :  { %2411 = vrot.lane.b32.xlu2 %v3560_v24, %s3710_s10 }
0x382d   :  { %v1315_v25 = vld [vmem:[#allocation3 + $0x38] sm:$0xff] }
0x382e   :  { %3251 = vmatmul.msk.f32.gmra.mxu1 %vm160_vm6, %v1315_v25 }
0x3836   :  { %3292 = vmatmul.msk.f32.vlgmr.msrb.gmra.mxu1 %vm160_vm6, %v2552_v26 }
0x383e   :  { %3293 = vmatmul.msk.f32.gmra.mxu1 %vm160_vm6, %v2553_v31 }
0x3846   :  { %3294 = vmatmul.msk.f32.gmra.mxu1 %vm160_vm6, %v2554_v15 }
0x384e   :  { %3295 = vmatmul.msk.f32.gmra.mxu1 %vm160_vm6, %v2555_v32 }
0x3856   :  { %3296 = vmatmul.msk.f32.gmra.mxu1 %vm160_vm6, %v2556_v35 }
0x3881   :  { %v2412_v38 = vpop.permute.xlu2 %2411 }
0x3882   :  { %v2414_v36 = vmul.f32 %v2412_v38, %v2395_v30 }
0x3884   :  { %2416 = vrot.lane.b32.xlu1 %v2414_v36, %s3711_s11 }
0x38ab   :  { %v4306_v45 = vpop.f32.mrf.mxu1 }
0x38f6   :  { %v2417_v42 = vpop.permute.xlu1 %2416 }
0x38f7   :  { %2419 = vst.msk [vmem:[#allocation3 + $0x28] sm:$0xff] %vm160_vm6, %v2417_v42  ;;  %3287 = vmatmul.msk.f32.vlgmr.msrb.gmra.mxu2 %vm160_vm6, %v2417_v42 }
0x38f8   :  { %2789 = vmatpush.msrb.mxu2 %v4278_v12 }
0x38fa   :  { %2790 = vmatpush.msrb.mxu2 %v4280_v37 }
0x38fc   :  { %2791 = vmatpush.msrb.mxu2 %v4284_v40 }
0x38fe   :  { %v2557_v44 = vld [vmem:[#allocation3 + $0x28] sm:$0xff]  ;;  %2792 = vmatpush.msrb.mxu2 %v4288_v41 }
0x38ff   :  { %3297 = vmatmul.msk.f32.gmra.mxu1 %vm160_vm6, %v2557_v44  ;;  %2665 = vmatmul.f32.vlgmr.msra.gmra.mxu2 %v3709_v6  ;;  %v2616_v6 = vpop.f32.mrf.mxu1 }
0x3900   :  { %2917 = vmatpush.msra.mxu2 %v4278_v12  ;;  %v2617_v34 = vadd.f32 %v4312_v33, %v2616_v6 }
0x3902   :  { %2918 = vmatpush.msra.mxu2 %v4280_v37 }
0x3904   :  { %2919 = vmatpush.msra.mxu2 %v4284_v40 }
0x3906   :  { %2920 = vmatpush.msra.mxu2 %v4288_v41 }
0x3907   :  { %v2619_v46 = vpop.f32.mrf.mxu1 }
0x397a   :  { %v2440_v48 = vpop.f32.mrf.mxu2 }
0x397b   :  { %v2443_v49 = vadd.f32 %v2440_v48, %v2013_v47  ;;  %v2620_v47 = vadd.f32 %v4312_v33, %v2619_v46 }
0x397d   :  { %3561 = vtanh.f32 %v2443_v49  ;;  %v3288_v43 = vmul.f32 -1.442695, %v2443_v49 }
0x3982   :  { %v2666_v13 = vpop.f32.mrf.mxu2 }
0x3983   :  { %v3562_v56 = vpop.eup %3561  ;;  %v2669_v57 = vadd.f32 %v2666_v13, %v2617_v34 }
0x3984   :  { %2466 = vrot.lane.b32.xlu2 %v3562_v56, %s3710_s10 }
0x3985   :  { %3563 = vtanh.f32 %v2669_v57  ;;  %v3300_v55 = vmul.f32 -1.442695, %v2669_v57 }
0x3986   :  { %3565 = vpow2.f32 %v3288_v43 }
0x398b   :  { %v3564_v7 = vpop.eup %3563 }
0x398c   :  { %2692 = vrot.lane.b32.xlu0 %v3564_v7, %s3710_s10  ;;  %v3566_v50 = vpop.eup %3565 }
0x398d   :  { %v2447_v51 = vadd.f32 1.0, %v3566_v50 }
0x398f   :  { %3567 = vrcp.f32 %v2447_v51  ;;  %v2459_v62 = vand.u32 2147483648, %v2447_v51  ;;  %vm2453_vm15 = vweird.f32 %v2447_v51  ;;  %v2457_v63 = vand.u32 2147483647, %v2447_v51 }
0x3990   :  { %3569 = vpow2.f32 %v3300_v55 }
0x3991   :  { %v2460_v0 = vor.u32 1.1754944e-38, %v2459_v62  ;;  %vm2458_vm2 = vcmp.eq.f32.partialorder %v2457_v63, 8.507059e+37 }
0x3995   :  { %v3568_v52 = vpop.eup %3567 }
0x3996   :  { %v2449_v53 = vmul.f32 %v3568_v52, %v2447_v51  ;;  %vm2454_vm14 = vweird.f32 %v3568_v52  ;;  %v3570_v10 = vpop.eup %3569 }
0x3997   :  { %vm2455_vm0 = vmor %vm2453_vm15, %vm2454_vm14  ;;  %v2673_v1 = vadd.f32 1.0, %v3570_v10 }
0x3998   :  { %v2450_v54 = vsub.f32 1.0, %v2449_v53 }
0x3999   :  { %3571 = vrcp.f32 %v2673_v1  ;;  %v2685_v30 = vand.u32 2147483648, %v2673_v1  ;;  %vm2679_vm4 = vweird.f32 %v2673_v1  ;;  %v2683_v2 = vand.u32 2147483647, %v2673_v1 }
0x399a   :  { %v2451_v58 = vmul.f32 %v3568_v52, %v2450_v54 }
0x399b   :  { %v2686_v16 = vor.u32 1.1754944e-38, %v2685_v30  ;;  %vm2684_vm7 = vcmp.eq.f32.partialorder %v2683_v2, 8.507059e+37 }
0x399c   :  { %v2452_v60 = vadd.f32 %v3568_v52, %v2451_v58 }
0x399e   :  { %v2456_v11 = vsel %vm2455_vm0, %v3568_v52, %v2452_v60 }
0x399f   :  { %v2461_v28 = vsel %vm2458_vm2, %v2460_v0, %v2456_v11  ;;  %v3572_v59 = vpop.eup %3571 }
0x39a0   :  { %v2675_v5 = vmul.f32 %v3572_v59, %v2673_v1  ;;  %vm2680_vm3 = vweird.f32 %v3572_v59  ;;  %v2464_v18 = vmul.f32 %v2461_v28, %v4266_v22 }
0x39a1   :  { %vm2681_vm5 = vmor %vm2679_vm4, %vm2680_vm3 }
0x39a2   :  { %v2676_v29 = vsub.f32 1.0, %v2675_v5 }
0x39a4   :  { %v2677_v4 = vmul.f32 %v3572_v59, %v2676_v29 }
0x39a6   :  { %v2678_v8 = vadd.f32 %v3572_v59, %v2677_v4 }
0x39a8   :  { %v2682_v61 = vsel %vm2681_vm5, %v3572_v59, %v2678_v8 }
0x39a9   :  { %v2687_v17 = vsel %vm2684_vm7, %v2686_v16, %v2682_v61 }
0x39aa   :  { %v2690_v23 = vmul.f32 0.0, %v2687_v17 }
0x39de   :  { %v2467_v27 = vpop.permute.xlu2 %2466 }
0x39df   :  { %v2469_v14 = vmul.f32 %v2467_v27, %v2461_v28 }
0x39e1   :  { %2471 = vrot.lane.b32.xlu1 %v2469_v14, %s3711_s11  ;;  %v2622_v14 = vpop.f32.mrf.mxu1 }
0x39e2   :  { %v2623_v59 = vadd.f32 %v4312_v33, %v2622_v14 }
0x39e9   :  { %v2625_v46 = vpop.f32.mrf.mxu1 }
0x39fe   :  { %v2693_v3 = vpop.permute.xlu0 %2692 }
0x39ff   :  { %v2695_v9 = vmul.f32 %v2693_v3, %v2687_v17 }
0x3a01   :  { %2697 = vrot.lane.b32.xlu2 %v2695_v9, %s3711_s11 }
0x3a53   :  { %v2472_v19 = vpop.permute.xlu1 %2471 }
0x3a54   :  { %v4320_v21 = vadd.f32 %v2472_v19, %v2464_v18 }
0x3a56   :  { %3573 = vtanh.f32 %v4320_v21 }
0x3a5b   :  { %v2698_v24 = vpop.permute.xlu2 %2697 }
0x3a5c   :  { %v3574_v25 = vpop.eup %3573  ;;  %v2700_v26 = vadd.f32 %v2698_v24, %v2690_v23 }
0x3a5d   :  { %2477 = vrot.lane.b32.xlu0 %v3574_v25, %s3710_s10 }
0x3a5e   :  { %3575 = vtanh.f32 %v2700_v26 }
0x3a64   :  { %v3576_v31 = vpop.eup %3575 }
0x3a65   :  { %2703 = vrot.lane.b32.xlu1 %v3576_v31, %s3710_s10 }
0x3acf   :  { %v2478_v15 = vpop.permute.xlu0 %2477 }
0x3ad0   :  { %v2480_v32 = vmul.f32 %v2478_v15, %v2461_v28 }
0x3ad2   :  { %2482 = vrot.lane.b32.xlu2 %v2480_v32, %s3711_s11 }
0x3ad7   :  { %v2704_v22 = vpop.permute.xlu1 %2703 }
0x3ad8   :  { %v2706_v35 = vmul.f32 %v2704_v22, %v2687_v17 }
0x3ada   :  { %2709 = vrot.lane.b32.xlu0 %v2706_v35, %s3711_s11 }
0x3b2c   :  { %v2483_v38 = vpop.permute.xlu2 %2482 }
0x3b2d   :  { %2485 = vst.msk [vmem:[#allocation3 + $0x30] sm:$0xff] %vm160_vm6, %v2483_v38  ;;  %3289 = vmatmul.msk.f32.vlgmr.msra.gmra.mxu3 %vm160_vm6, %v2483_v38 }
0x3b2e   :  { %2853 = vmatpush.msra.mxu3 %v4278_v12 }
0x3b30   :  { %2854 = vmatpush.msra.mxu3 %v4280_v37 }
0x3b32   :  { %2855 = vmatpush.msra.mxu3 %v4284_v40 }
0x3b34   :  { %v2558_v36 = vld [vmem:[#allocation3 + $0x30] sm:$0xff]  ;;  %2856 = vmatpush.msra.mxu3 %v4288_v41 }
0x3b35   :  { %3298 = vmatmul.msk.f32.gmra.mxu1 %vm160_vm6, %v2558_v36 }
0x3b4c   :  { %v2710_v42 = vpop.permute.xlu0 %2709 }
0x3b4d   :  { %3301 = vmatmul.msk.f32.vlgmr.msrb.gmra.mxu3 %vm160_vm6, %v2710_v42 }
0x3b4e   :  { %2981 = vmatpush.msrb.mxu3 %v4278_v12 }
0x3b50   :  { %2982 = vmatpush.msrb.mxu3 %v4280_v37 }
0x3b52   :  { %2983 = vmatpush.msrb.mxu3 %v4284_v40 }
0x3b54   :  { %2984 = vmatpush.msrb.mxu3 %v4288_v41 }
0x3bb0   :  { %v4339_v44 = vpop.f32.mrf.mxu3 }
0x3bd0   :  { %v2730_v48 = vpop.f32.mrf.mxu3 }
0x3bd1   :  { %v2733_v49 = vadd.f32 %v2730_v48, %v2620_v47  ;;  %v2626_v47 = vadd.f32 %v4312_v33, %v2625_v46 }
0x3bd3   :  { %3577 = vtanh.f32 %v2733_v49  ;;  %v3302_v34 = vmul.f32 -1.442695, %v2733_v49 }
0x3bd5   :  { %3579 = vpow2.f32 %v3302_v34 }
0x3bd9   :  { %v3578_v6 = vpop.eup %3577 }
0x3bda   :  { %2756 = vrot.lane.b32.xlu1 %v3578_v6, %s3710_s10 }
0x3bdb   :  { %v3580_v13 = vpop.eup %3579 }
0x3bdc   :  { %v2737_v56 = vadd.f32 1.0, %v3580_v13 }
0x3bde   :  { %3581 = vrcp.f32 %v2737_v56  ;;  %v2749_v52 = vand.u32 2147483648, %v2737_v56  ;;  %vm2743_vm9 = vweird.f32 %v2737_v56  ;;  %v2747_v53 = vand.u32 2147483647, %v2737_v56 }
0x3be0   :  { %v2750_v55 = vor.u32 1.1754944e-38, %v2749_v52  ;;  %vm2748_vm11 = vcmp.eq.f32.partialorder %v2747_v53, 8.507059e+37 }
0x3be4   :  { %v3582_v57 = vpop.eup %3581 }
0x3be5   :  { %v2739_v7 = vmul.f32 %v3582_v57, %v2737_v56  ;;  %vm2744_vm8 = vweird.f32 %v3582_v57 }
0x3be6   :  { %vm2745_vm10 = vmor %vm2743_vm9, %vm2744_vm8 }
0x3be7   :  { %v2740_v43 = vsub.f32 1.0, %v2739_v7 }
0x3be9   :  { %v2741_v50 = vmul.f32 %v3582_v57, %v2740_v43 }
0x3beb   :  { %v2742_v51 = vadd.f32 %v3582_v57, %v2741_v50 }
0x3bed   :  { %v2746_v54 = vsel %vm2745_vm10, %v3582_v57, %v2742_v51 }
0x3bee   :  { %v2751_v60 = vsel %vm2748_vm11, %v2750_v55, %v2746_v54 }
0x3bef   :  { %v2754_v63 = vmul.f32 %v2751_v60, %v2700_v26 }
0x3c4c   :  { %v2757_v58 = vpop.permute.xlu1 %2756 }
0x3c4d   :  { %v2759_v62 = vmul.f32 %v2757_v58, %v2751_v60 }
0x3c4f   :  { %2761 = vrot.lane.b32.xlu2 %v2759_v62, %s3711_s11 }
0x3ca9   :  { %v2762_v10 = vpop.permute.xlu2 %2761 }
0x3caa   :  { %v2764_v11 = vadd.f32 %v2762_v10, %v2754_v63 }
0x3cac   :  { %3583 = vtanh.f32 %v2764_v11 }
0x3cb2   :  { %v3584_v0 = vpop.eup %3583 }
0x3cb3   :  { %2767 = vrot.lane.b32.xlu0 %v3584_v0, %s3710_s10  ;;  %v2628_v0 = vpop.f32.mrf.mxu1 }
0x3d25   :  { %v2768_v1 = vpop.permute.xlu0 %2767 }
0x3d26   :  { %v2770_v27 = vmul.f32 %v2768_v1, %v2751_v60  ;;  %v2629_v1 = vadd.f32 %v4312_v33, %v2628_v0 }
0x3d28   :  { %2773 = vrot.lane.b32.xlu1 %v2770_v27, %s3711_s11 }
0x3d9a   :  { %v2774_v28 = vpop.permute.xlu1 %2773 }
0x3d9b   :  { %3303 = vmatmul.msk.f32.vlgmr.msrb.gmra.mxu2 %vm160_vm6, %v2774_v28 }
0x3d9c   :  { %3045 = vmatpush.msrb.mxu2 %v4278_v12 }
0x3d9e   :  { %3046 = vmatpush.msrb.mxu2 %v4280_v37 }
0x3da0   :  { %3047 = vmatpush.msrb.mxu2 %v4284_v40 }
0x3da2   :  { %3048 = vmatpush.msrb.mxu2 %v4288_v41 }
0x3e1e   :  { %v2794_v5 = vpop.f32.mrf.mxu2 }
0x3e1f   :  { %v2797_v29 = vadd.f32 %v2794_v5, %v2623_v59 }
0x3e21   :  { %3585 = vtanh.f32 %v2797_v29  ;;  %v3304_v8 = vmul.f32 -1.442695, %v2797_v29 }
0x3e23   :  { %3587 = vpow2.f32 %v3304_v8 }
0x3e27   :  { %v3586_v4 = vpop.eup %3585 }
0x3e28   :  { %2820 = vrot.lane.b32.xlu2 %v3586_v4, %s3710_s10 }
0x3e29   :  { %v3588_v30 = vpop.eup %3587 }
0x3e2a   :  { %v2801_v2 = vadd.f32 1.0, %v3588_v30 }
0x3e2c   :  { %3589 = vrcp.f32 %v2801_v2  ;;  %v2813_v18 = vand.u32 2147483648, %v2801_v2  ;;  %vm2807_vm1 = vweird.f32 %v2801_v2  ;;  %v2811_v19 = vand.u32 2147483647, %v2801_v2 }
0x3e2e   :  { %v2814_v24 = vor.u32 1.1754944e-38, %v2813_v18  ;;  %vm2812_vm14 = vcmp.eq.f32.partialorder %v2811_v19, 8.507059e+37 }
0x3e32   :  { %v3590_v61 = vpop.eup %3589 }
0x3e33   :  { %v2803_v16 = vmul.f32 %v3590_v61, %v2801_v2  ;;  %vm2808_vm12 = vweird.f32 %v3590_v61 }
0x3e34   :  { %vm2809_vm13 = vmor %vm2807_vm1, %vm2808_vm12 }
0x3e35   :  { %v2804_v3 = vsub.f32 1.0, %v2803_v16 }
0x3e37   :  { %v2805_v17 = vmul.f32 %v3590_v61, %v2804_v3 }
0x3e39   :  { %v2806_v9 = vadd.f32 %v3590_v61, %v2805_v17  ;;  %v3651_v17 = vld [vmem:[%s4446_s6 + $0x1] ss:$0 sm:$0xff] }
0x3e3b   :  { %v2810_v23 = vsel %vm2809_vm13, %v3590_v61, %v2806_v9  ;;  %v1394_v9 = vadd.f32 %v3651_v17, %v4306_v45 }
0x3e3c   :  { %v2815_v26 = vsel %vm2812_vm14, %v2814_v24, %v2810_v23 }
0x3e3d   :  { %v2818_v15 = vmul.f32 %v2815_v26, %v2764_v11  ;;  %v1887_v23 = vadd.f32 %v4211_v39, %v1394_v9 }
0x3e82   :  { %v2821_v25 = vpop.permute.xlu2 %2820 }
0x3e83   :  { %v2823_v31 = vmul.f32 %v2821_v25, %v2815_v26 }
0x3e85   :  { %2825 = vrot.lane.b32.xlu0 %v2823_v31, %s3711_s11 }
0x3ef7   :  { %v2826_v32 = vpop.permute.xlu0 %2825 }
0x3ef8   :  { %v2828_v22 = vadd.f32 %v2826_v32, %v2818_v15 }
0x3efa   :  { %3591 = vtanh.f32 %v2828_v22 }
0x3f00   :  { %v3592_v35 = vpop.eup %3591 }
0x3f01   :  { %2831 = vrot.lane.b32.xlu1 %v3592_v35, %s3710_s10  ;;  %v3266_v35 = vmul.f32 -1.442695, %v1887_v23 }
0x3f73   :  { %v2832_v38 = vpop.permute.xlu1 %2831 }
0x3f74   :  { %v2834_v36 = vmul.f32 %v2832_v38, %v2815_v26 }
0x3f76   :  { %2837 = vrot.lane.b32.xlu2 %v2834_v36, %s3711_s11 }
0x3fd0   :  { %v2838_v42 = vpop.permute.xlu2 %2837 }
0x3fd1   :  { %3305 = vmatmul.msk.f32.vlgmr.msra.gmra.mxu3 %vm160_vm6, %v2838_v42 }
0x3fd2   :  { %3109 = vmatpush.msra.mxu3 %v4278_v12 }
0x3fd4   :  { %3110 = vmatpush.msra.mxu3 %v4280_v37 }
0x3fd6   :  { %3111 = vmatpush.msra.mxu3 %v4284_v40 }
0x3fd8   :  { %3112 = vmatpush.msra.mxu3 %v4288_v41 }
0x4054   :  { %v2858_v48 = vpop.f32.mrf.mxu3 }
0x4055   :  { %v2861_v49 = vadd.f32 %v2858_v48, %v2626_v47 }
0x4057   :  { %3593 = vtanh.f32 %v2861_v49  ;;  %v3306_v34 = vmul.f32 -1.442695, %v2861_v49 }
0x4059   :  { %3595 = vpow2.f32 %v3306_v34 }
0x405d   :  { %v3594_v6 = vpop.eup %3593 }
0x405e   :  { %2884 = vrot.lane.b32.xlu0 %v3594_v6, %s3710_s10 }
0x405f   :  { %v3596_v13 = vpop.eup %3595 }
0x4060   :  { %v2865_v56 = vadd.f32 1.0, %v3596_v13 }
0x4062   :  { %3597 = vrcp.f32 %v2865_v56  ;;  %v2877_v41 = vand.u32 2147483648, %v2865_v56  ;;  %vm2871_vm0 = vweird.f32 %v2865_v56  ;;  %v2875_v43 = vand.u32 2147483647, %v2865_v56 }
0x4064   :  { %v2878_v51 = vor.u32 1.1754944e-38, %v2877_v41  ;;  %vm2876_vm3 = vcmp.eq.f32.partialorder %v2875_v43, 8.507059e+37  ;;  %v2631_v41 = vpop.f32.mrf.mxu1 }
0x4065   :  { %v2632_v43 = vadd.f32 %v4312_v33, %v2631_v41 }
0x4068   :  { %v3598_v12 = vpop.eup %3597 }
0x4069   :  { %v2867_v37 = vmul.f32 %v3598_v12, %v2865_v56  ;;  %vm2872_vm15 = vweird.f32 %v3598_v12 }
0x406a   :  { %vm2873_vm2 = vmor %vm2871_vm0, %vm2872_vm15 }
0x406b   :  { %v2868_v57 = vsub.f32 1.0, %v2867_v37 }
0x406d   :  { %v2869_v40 = vmul.f32 %v3598_v12, %v2868_v57 }
0x406f   :  { %v2870_v7 = vadd.f32 %v3598_v12, %v2869_v40 }
0x4071   :  { %v2874_v50 = vsel %vm2873_vm2, %v3598_v12, %v2870_v7 }
0x4072   :  { %v2879_v53 = vsel %vm2876_vm3, %v2878_v51, %v2874_v50 }
0x4073   :  { %v2882_v55 = vmul.f32 %v2879_v53, %v2828_v22 }
0x40d0   :  { %v2885_v52 = vpop.permute.xlu0 %2884 }
0x40d1   :  { %v2887_v54 = vmul.f32 %v2885_v52, %v2879_v53 }
0x40d3   :  { %2889 = vrot.lane.b32.xlu1 %v2887_v54, %s3711_s11 }
0x4145   :  { %v2890_v58 = vpop.permute.xlu1 %2889 }
0x4146   :  { %v2892_v60 = vadd.f32 %v2890_v58, %v2882_v55 }
0x4148   :  { %3599 = vtanh.f32 %v2892_v60 }
0x414e   :  { %v3600_v62 = vpop.eup %3599 }
0x414f   :  { %2895 = vrot.lane.b32.xlu2 %v3600_v62, %s3710_s10 }
0x41a9   :  { %v2896_v63 = vpop.permute.xlu2 %2895 }
0x41aa   :  { %v2898_v10 = vmul.f32 %v2896_v63, %v2879_v53 }
0x41ac   :  { %2901 = vrot.lane.b32.xlu0 %v2898_v10, %s3711_s11 }
0x421e   :  { %v2902_v11 = vpop.permute.xlu0 %2901 }
0x421f   :  { %3307 = vmatmul.msk.f32.vlgmr.msra.gmra.mxu2 %vm160_vm6, %v2902_v11 }
0x42a2   :  { %v2922_v27 = vpop.f32.mrf.mxu2 }
0x42a3   :  { %v2925_v28 = vadd.f32 %v2922_v27, %v2629_v1 }
0x42a5   :  { %3601 = vtanh.f32 %v2925_v28  ;;  %v3308_v59 = vmul.f32 -1.442695, %v2925_v28 }
0x42a7   :  { %3603 = vpow2.f32 %v3308_v59 }
0x42ab   :  { %v3602_v14 = vpop.eup %3601 }
0x42ac   :  { %2948 = vrot.lane.b32.xlu1 %v3602_v14, %s3710_s10 }
0x42ad   :  { %v3604_v5 = vpop.eup %3603 }
0x42ae   :  { %v2929_v29 = vadd.f32 1.0, %v3604_v5 }
0x42b0   :  { %3605 = vrcp.f32 %v2929_v29  ;;  %v2941_v16 = vand.u32 2147483648, %v2929_v29  ;;  %vm2935_vm5 = vweird.f32 %v2929_v29  ;;  %v2939_v3 = vand.u32 2147483647, %v2929_v29 }
0x42b1   :  { %3607 = vtanh.f32 %v1887_v23 }
0x42b2   :  { %v2942_v19 = vor.u32 1.1754944e-38, %v2941_v16  ;;  %vm2940_vm8 = vcmp.eq.f32.partialorder %v2939_v3, 8.507059e+37 }
0x42b6   :  { %v3606_v4 = vpop.eup %3605 }
0x42b7   :  { %v2931_v8 = vmul.f32 %v3606_v4, %v2929_v29  ;;  %vm2936_vm4 = vweird.f32 %v3606_v4  ;;  %v3608_v31 = vpop.eup %3607 }
0x42b8   :  { %vm2937_vm7 = vmor %vm2935_vm5, %vm2936_vm4 }
0x42b9   :  { %v2932_v30 = vsub.f32 1.0, %v2931_v8 }
0x42bb   :  { %v2933_v2 = vmul.f32 %v3606_v4, %v2932_v30 }
0x42bd   :  { %v2934_v61 = vadd.f32 %v3606_v4, %v2933_v2 }
0x42bf   :  { %v2938_v18 = vsel %vm2937_vm7, %v3606_v4, %v2934_v61 }
0x42c0   :  { %v2943_v25 = vsel %vm2940_vm8, %v2942_v19, %v2938_v18 }
0x42c1   :  { %v2946_v15 = vmul.f32 %v2943_v25, %v2892_v60 }
0x431e   :  { %v2949_v24 = vpop.permute.xlu1 %2948 }
0x431f   :  { %v2951_v26 = vmul.f32 %v2949_v24, %v2943_v25  ;;  %v3652_v24 = vld [vmem:[%s4446_s6 + $0x2] ss:$0 sm:$0xff] }
0x4321   :  { %2953 = vrot.lane.b32.xlu2 %v2951_v26, %s3711_s11 }
0x4329   :  { %1910 = vrot.lane.b32.xlu2 %v3608_v31, %s3710_s10 }
0x437b   :  { %v2954_v32 = vpop.permute.xlu2 %2953 }
0x437c   :  { %v4376_v22 = vadd.f32 %v2954_v32, %v2946_v15 }
0x437e   :  { %3609 = vtanh.f32 %v4376_v22 }
0x437f   :  { %3611 = vpow2.f32 %v3266_v35 }
0x4383   :  { %v1911_v37 = vpop.permute.xlu2 %1910 }
0x4384   :  { %v3610_v45 = vpop.eup %3609 }
0x4385   :  { %2959 = vrot.lane.b32.xlu0 %v3610_v45, %s3710_s10  ;;  %v3612_v39 = vpop.eup %3611 }
0x4386   :  { %v1891_v38 = vadd.f32 1.0, %v3612_v39 }
0x4388   :  { %3613 = vrcp.f32 %v1891_v38  ;;  %v1903_v34 = vand.u32 2147483648, %v1891_v38  ;;  %vm1897_vm10 = vweird.f32 %v1891_v38  ;;  %v1901_v13 = vand.u32 2147483647, %v1891_v38 }
0x438a   :  { %v1904_v12 = vor.u32 1.1754944e-38, %v1903_v34  ;;  %vm1902_vm12 = vcmp.eq.f32.partialorder %v1901_v13, 8.507059e+37  ;;  %v2634_v13 = vpop.f32.mrf.mxu1 }
0x438e   :  { %v3614_v36 = vpop.eup %3613 }
0x438f   :  { %v1893_v42 = vmul.f32 %v3614_v36, %v1891_v38  ;;  %vm1898_vm9 = vweird.f32 %v3614_v36 }
0x4390   :  { %vm1899_vm11 = vmor %vm1897_vm10, %vm1898_vm9 }
0x4391   :  { %v1894_v46 = vsub.f32 1.0, %v1893_v42 }
0x4393   :  { %v1895_v47 = vmul.f32 %v3614_v36, %v1894_v46 }
0x4395   :  { %v1896_v49 = vadd.f32 %v3614_v36, %v1895_v47 }
0x4397   :  { %v1900_v56 = vsel %vm1899_vm11, %v3614_v36, %v1896_v49 }
0x4398   :  { %v1905_v57 = vsel %vm1902_vm12, %v1904_v12, %v1900_v56  ;;  %v2635_v56 = vadd.f32 %v4312_v33, %v2634_v13 }
0x4399   :  { %v1913_v40 = vmul.f32 %v1911_v37, %v1905_v57  ;;  %v1908_v53 = vmul.f32 %v1905_v57, %v4189_v20 }
0x43f7   :  { %v2960_v48 = vpop.permute.xlu0 %2959 }
0x43f8   :  { %v2962_v6 = vmul.f32 %v2960_v48, %v2943_v25 }
0x43fa   :  { %2965 = vrot.lane.b32.xlu1 %v2962_v6, %s3711_s11 }
0x4402   :  { %1915 = vrot.lane.b32.xlu1 %v1913_v40, %s3711_s11 }
0x446c   :  { %v2966_v7 = vpop.permute.xlu1 %2965 }
0x446d   :  { %3309 = vmatmul.msk.f32.vlgmr.msrb.gmra.mxu3 %vm160_vm6, %v2966_v7 }
0x4474   :  { %v1916_v52 = vpop.permute.xlu1 %1915 }
0x4475   :  { %v1918_v54 = vadd.f32 %v1916_v52, %v1908_v53 }
0x44f0   :  { %v2986_v50 = vpop.f32.mrf.mxu3 }
0x44f1   :  { %v2989_v51 = vadd.f32 %v2986_v50, %v2632_v43 }
0x44f3   :  { %3615 = vtanh.f32 %v2989_v51  ;;  %v3310_v60 = vmul.f32 -1.442695, %v2989_v51 }
0x44f4   :  { %3617 = vtanh.f32 %v1918_v54 }
0x44f5   :  { %3619 = vpow2.f32 %v3310_v60 }
0x44f9   :  { %v3616_v55 = vpop.eup %3615 }
0x44fa   :  { %3012 = vrot.lane.b32.xlu0 %v3616_v55, %s3710_s10  ;;  %v3618_v58 = vpop.eup %3617 }
0x44fb   :  { %v3620_v62 = vpop.eup %3619 }
0x44fc   :  { %v2993_v63 = vadd.f32 1.0, %v3620_v62 }
0x44fe   :  { %3621 = vrcp.f32 %v2993_v63  ;;  %v3005_v20 = vand.u32 2147483648, %v2993_v63  ;;  %vm2999_vm13 = vweird.f32 %v2993_v63  ;;  %v3003_v28 = vand.u32 2147483647, %v2993_v63 }
0x4500   :  { %v3006_v59 = vor.u32 1.1754944e-38, %v3005_v20  ;;  %vm3004_vm15 = vcmp.eq.f32.partialorder %v3003_v28, 8.507059e+37 }
0x4502   :  { %1921 = vrot.lane.b32.xlu0 %v3618_v58, %s3710_s10 }
0x4504   :  { %v3622_v10 = vpop.eup %3621 }
0x4505   :  { %v2995_v11 = vmul.f32 %v3622_v10, %v2993_v63  ;;  %vm3000_vm1 = vweird.f32 %v3622_v10 }
0x4506   :  { %vm3001_vm14 = vmor %vm2999_vm13, %vm3000_vm1  ;;  %vm3188_vm13 = vcmask 23552  }
0x4507   :  { %v2996_v0 = vsub.f32 1.0, %v2995_v11 }
0x4509   :  { %v2997_v1 = vmul.f32 %v3622_v10, %v2996_v0 }
0x450b   :  { %v2998_v27 = vadd.f32 %v3622_v10, %v2997_v1 }
0x450d   :  { %v3002_v14 = vsel %vm3001_vm14, %v3622_v10, %v2998_v27 }
0x450e   :  { %v3007_v29 = vsel %vm3004_vm15, %v3006_v59, %v3002_v14 }
0x450f   :  { %v3010_v2 = vmul.f32 %v3007_v29, %v4376_v22 }
0x456c   :  { %v3013_v5 = vpop.permute.xlu0 %3012 }
0x456d   :  { %v3015_v4 = vmul.f32 %v3013_v5, %v3007_v29 }
0x456f   :  { %3017 = vrot.lane.b32.xlu2 %v3015_v4, %s3711_s11 }
0x4574   :  { %v1922_v8 = vpop.permute.xlu0 %1921 }
0x4575   :  { %v1924_v30 = vmul.f32 %v1922_v8, %v1905_v57 }
0x4577   :  { %1926 = vrot.lane.b32.xlu2 %v1924_v30, %s3711_s11 }
0x45c9   :  { %v3018_v61 = vpop.permute.xlu2 %3017 }
0x45ca   :  { %v4390_v16 = vadd.f32 %v3018_v61, %v3010_v2 }
0x45cc   :  { %3623 = vtanh.f32 %v4390_v16 }
0x45d1   :  { %v1927_v3 = vpop.permute.xlu2 %1926 }
0x45d2   :  { %v3624_v17 = vpop.eup %3623  ;;  %1929 = vst.msk [vmem:[#allocation3 + $0x38] sm:$0xff] %vm160_vm6, %v1927_v3 }
0x45d3   :  { %3023 = vrot.lane.b32.xlu1 %v3624_v17, %s3710_s10 }
0x45d9   :  { %v1937_v9 = vld [vmem:[#allocation3 + $0x38] sm:$0xff] }
0x45da   :  { %3275 = vmatmul.msk.f32.gmra.mxu0 %vm160_vm6, %v1937_v9 }
0x4645   :  { %v3024_v18 = vpop.permute.xlu1 %3023 }
0x4646   :  { %v3026_v19 = vmul.f32 %v3024_v18, %v3007_v29 }
0x4648   :  { %3029 = vrot.lane.b32.xlu0 %v3026_v19, %s3711_s11 }
0x4657   :  { %v2015_v23 = vpop.f32.mrf.mxu0 }
0x4658   :  { %v2016_v25 = vadd.f32 %v3652_v24, %v2015_v23 }
0x465a   :  { %v2509_v26 = vadd.f32 %v4339_v44, %v2016_v25 }
0x465c   :  { %3625 = vtanh.f32 %v2509_v26  ;;  %v3290_v15 = vmul.f32 -1.442695, %v2509_v26 }
0x465e   :  { %3627 = vpow2.f32 %v3290_v15 }
0x4662   :  { %v3626_v31 = vpop.eup %3625 }
0x4663   :  { %2532 = vrot.lane.b32.xlu1 %v3626_v31, %s3710_s10 }
0x4664   :  { %v3628_v32 = vpop.eup %3627 }
0x4665   :  { %v2513_v22 = vadd.f32 1.0, %v3628_v32 }
0x4667   :  { %3629 = vrcp.f32 %v2513_v22  ;;  %v2525_v46 = vand.u32 2147483648, %v2513_v22  ;;  %vm2519_vm2 = vweird.f32 %v2513_v22  ;;  %v2523_v44 = vand.u32 2147483647, %v2513_v22 }
0x4669   :  { %v2526_v48 = vor.u32 1.1754944e-38, %v2525_v46  ;;  %vm2524_vm4 = vcmp.eq.f32.partialorder %v2523_v44, 8.507059e+37 }
0x466d   :  { %v3630_v35 = vpop.eup %3629 }
0x466e   :  { %v2515_v39 = vmul.f32 %v3630_v35, %v2513_v22  ;;  %vm2520_vm0 = vweird.f32 %v3630_v35 }
0x466f   :  { %vm2521_vm3 = vmor %vm2519_vm2, %vm2520_vm0 }
0x4670   :  { %v2516_v38 = vsub.f32 1.0, %v2515_v39 }
0x4672   :  { %v2517_v36 = vmul.f32 %v3630_v35, %v2516_v38 }
0x4674   :  { %v2518_v42 = vadd.f32 %v3630_v35, %v2517_v36 }
0x4676   :  { %v2522_v47 = vsel %vm2521_vm3, %v3630_v35, %v2518_v42 }
0x4677   :  { %v2527_v49 = vsel %vm2524_vm4, %v2526_v48, %v2522_v47  ;;  %v3158_v47 = vld [vmem:[%s4447_s7 + $0x18] sm:$0xff]  ;;  %v3157_v48 = vld [vmem:[%s4447_s7 + $0x10] sm:$0xff] }
0x4678   :  { %v2530_v40 = vmul.f32 %v2527_v49, %v4320_v21  ;;  %3180 = vmatpush.msra.mxu0 %v3158_v47 }
0x467a   :  { %3181 = vmatpush.msra.mxu0 %v3157_v48 }
0x46ba   :  { %v3030_v45 = vpop.permute.xlu0 %3029 }
0x46bb   :  { %3311 = vmatmul.msk.f32.vlgmr.msrb.gmra.mxu2 %vm160_vm6, %v3030_v45 }
0x46d5   :  { %v2533_v6 = vpop.permute.xlu1 %2532 }
0x46d6   :  { %v2535_v34 = vmul.f32 %v2533_v6, %v2527_v49  ;;  %v3155_v6 = vld [vmem:[%s4447_s7] sm:$0xff] }
0x46d8   :  { %2537 = vrot.lane.b32.xlu0 %v2535_v34, %s3711_s11 }
0x473e   :  { %v3050_v12 = vpop.f32.mrf.mxu2 }
0x473f   :  { %v3053_v37 = vadd.f32 %v3050_v12, %v2635_v56  ;;  %v3328_v12 = vld [vmem:[%s4448_s8] ss:$0 sm:$0xff] }
0x4741   :  { %3631 = vtanh.f32 %v3053_v37  ;;  %v3312_v50 = vmul.f32 -1.442695, %v3053_v37 }
0x4747   :  { %v3632_v57 = vpop.eup %3631 }
0x4748   :  { %3076 = vrot.lane.b32.xlu2 %v3632_v57, %s3710_s10 }
0x474a   :  { %v2538_v7 = vpop.permute.xlu0 %2537 }
0x474b   :  { %v2540_v41 = vadd.f32 %v2538_v7, %v2530_v40 }
0x474d   :  { %3633 = vtanh.f32 %v2540_v41 }
0x474e   :  { %3635 = vpow2.f32 %v3312_v50 }
0x4753   :  { %v3634_v43 = vpop.eup %3633 }
0x4754   :  { %2543 = vrot.lane.b32.xlu2 %v3634_v43, %s3710_s10  ;;  %v3636_v51 = vpop.eup %3635 }
0x4755   :  { %v3057_v52 = vadd.f32 1.0, %v3636_v51 }
0x4757   :  { %3637 = vrcp.f32 %v3057_v52  ;;  %v3069_v62 = vand.u32 2147483648, %v3057_v52  ;;  %vm3063_vm7 = vweird.f32 %v3057_v52  ;;  %v3067_v21 = vand.u32 2147483647, %v3057_v52 }
0x4759   :  { %v3070_v10 = vor.u32 1.1754944e-38, %v3069_v62  ;;  %vm3068_vm9 = vcmp.eq.f32.partialorder %v3067_v21, 8.507059e+37 }
0x475d   :  { %v3638_v53 = vpop.eup %3637 }
0x475e   :  { %v3059_v54 = vmul.f32 %v3638_v53, %v3057_v52  ;;  %vm3064_vm5 = vweird.f32 %v3638_v53 }
0x475f   :  { %vm3065_vm8 = vmor %vm3063_vm7, %vm3064_vm5 }
0x4760   :  { %v3060_v55 = vsub.f32 1.0, %v3059_v54 }
0x4762   :  { %v3061_v58 = vmul.f32 %v3638_v53, %v3060_v55 }
0x4764   :  { %v3062_v60 = vadd.f32 %v3638_v53, %v3061_v58 }
0x4766   :  { %v3066_v63 = vsel %vm3065_vm8, %v3638_v53, %v3062_v60 }
0x4767   :  { %v3071_v0 = vsel %vm3068_vm9, %v3070_v10, %v3066_v63 }
0x4768   :  { %v3074_v28 = vmul.f32 %v3071_v0, %v4390_v16 }
0x47a2   :  { %v3077_v11 = vpop.permute.xlu2 %3076 }
0x47a3   :  { %v3079_v1 = vmul.f32 %v3077_v11, %v3071_v0 }
0x47a5   :  { %3081 = vrot.lane.b32.xlu1 %v3079_v1, %s3711_s11 }
0x47ae   :  { %v2544_v27 = vpop.permute.xlu2 %2543 }
0x47af   :  { %v2546_v20 = vmul.f32 %v2544_v27, %v2527_v49  ;;  %v3156_v49 = vld [vmem:[%s4447_s7 + $0x8] sm:$0xff] }
0x47b0   :  { %3182 = vmatpush.msra.mxu0 %v3156_v49 }
0x47b1   :  { %2548 = vrot.lane.b32.xlu1 %v2546_v20, %s3711_s11 }
0x47b2   :  { %3183 = vmatpush.msra.mxu0 %v3155_v6 }
0x4817   :  { %v3082_v14 = vpop.permute.xlu1 %3081 }
0x4818   :  { %v3084_v59 = vadd.f32 %v3082_v14, %v3074_v28 }
0x481a   :  { %3639 = vtanh.f32 %v3084_v59 }
0x4820   :  { %v3640_v5 = vpop.eup %3639 }
0x4821   :  { %3087 = vrot.lane.b32.xlu0 %v3640_v5, %s3710_s10 }
0x4823   :  { %v2549_v29 = vpop.permute.xlu1 %2548 }
0x4824   :  { %2551 = vst.msk [vmem:[#allocation3 + $0x38] sm:$0xff] %vm160_vm6, %v2549_v29 }
0x482b   :  { %v2559_v4 = vld [vmem:[#allocation3 + $0x38] sm:$0xff] }
0x482c   :  { %3299 = vmatmul.msk.f32.gmra.mxu1 %vm160_vm6, %v2559_v4 }
0x4893   :  { %v3088_v8 = vpop.permute.xlu0 %3087 }
0x4894   :  { %v3090_v30 = vmul.f32 %v3088_v8, %v3071_v0 }
0x4896   :  { %3093 = vrot.lane.b32.xlu2 %v3090_v30, %s3711_s11 }
0x48a9   :  { %v2637_v61 = vpop.f32.mrf.mxu1 }
0x48aa   :  { %v2638_v16 = vadd.f32 %v4312_v33, %v2637_v61 }
0x48f0   :  { %v3094_v2 = vpop.permute.xlu2 %3093 }
0x48f1   :  { %3313 = vmatmul.msk.f32.vlgmr.msra.gmra.mxu3 %vm160_vm6, %v3094_v2 }
0x4974   :  { %v3114_v3 = vpop.f32.mrf.mxu3 }
0x4975   :  { %v3117_v17 = vadd.f32 %v3114_v3, %v2638_v16 }
0x4977   :  { %3641 = vtanh.f32 %v3117_v17  ;;  %v3314_v18 = vmul.f32 -1.442695, %v3117_v17 }
0x4979   :  { %3643 = vpow2.f32 %v3314_v18 }
0x497d   :  { %v3642_v9 = vpop.eup %3641 }
0x497e   :  { %3140 = vrot.lane.b32.xlu0 %v3642_v9, %s3710_s10 }
0x497f   :  { %v3644_v19 = vpop.eup %3643 }
0x4980   :  { %v3121_v23 = vadd.f32 1.0, %v3644_v19 }
0x4982   :  { %3645 = vrcp.f32 %v3121_v23  ;;  %v3133_v32 = vand.u32 2147483648, %v3121_v23  ;;  %vm3127_vm11 = vweird.f32 %v3121_v23  ;;  %v3131_v33 = vand.u32 2147483647, %v3121_v23 }
0x4984   :  { %v3134_v45 = vor.u32 1.1754944e-38, %v3133_v32  ;;  %vm3132_vm1 = vcmp.eq.f32.partialorder %v3131_v33, 8.507059e+37 }
0x4988   :  { %v3646_v24 = vpop.eup %3645 }
0x4989   :  { %v3123_v25 = vmul.f32 %v3646_v24, %v3121_v23  ;;  %vm3128_vm10 = vweird.f32 %v3646_v24 }
0x498a   :  { %vm3129_vm12 = vmor %vm3127_vm11, %vm3128_vm10 }
0x498b   :  { %v3124_v26 = vsub.f32 1.0, %v3123_v25 }
0x498d   :  { %v3125_v31 = vmul.f32 %v3646_v24, %v3124_v26 }
0x498f   :  { %v3126_v15 = vadd.f32 %v3646_v24, %v3125_v31 }
0x4991   :  { %v3130_v22 = vsel %vm3129_vm12, %v3646_v24, %v3126_v15 }
0x4992   :  { %v3135_v39 = vsel %vm3132_vm1, %v3134_v45, %v3130_v22 }
0x4993   :  { %v3138_v36 = vmul.f32 %v3135_v39, %v3084_v59 }
0x49f0   :  { %v3141_v35 = vpop.permute.xlu0 %3140 }
0x49f1   :  { %v3143_v38 = vmul.f32 %v3141_v35, %v3135_v39 }
0x49f3   :  { %3145 = vrot.lane.b32.xlu1 %v3143_v38, %s3711_s11 }
0x4a65   :  { %v3146_v42 = vpop.permute.xlu1 %3145 }
0x4a66   :  { %v3148_v46 = vadd.f32 %v3146_v42, %v3138_v36 }
0x4a68   :  { %3647 = vtanh.f32 %v3148_v46 }
0x4a6e   :  { %v3648_v44 = vpop.eup %3647 }
0x4a6f   :  { %3151 = vrot.lane.b32.xlu2 %v3648_v44, %s3710_s10 }
0x4ac9   :  { %v3152_v34 = vpop.permute.xlu2 %3151 }
0x4aca   :  { %v3154_v13 = vmul.f32 %v3152_v34, %v3135_v39 }
0x4acc   :  { %3164 = vrot.lane.b32.xlu0 %v3154_v13, %s3711_s11 }
0x4b3e   :  { %v3165_v56 = vpop.permute.xlu0 %3164 }
0x4b3f   :  { %3315 = vmatmul.msk.f32.vlgmr.msra.gmra.mxu0 %vm160_vm6, %v3165_v56 }
0x4bbc   :  { %v3185_v37 = vpop.f32.mrf.mxu0 }
0x4bbd   :  { %v3186_v57 = vadd.f32 %v3328_v12, %v3185_v37 }
0x4bbf   :  { %3189 = vst.msk [vmem:[%s4449_s9] sm:$0xff] %vm3188_vm13, %v3186_v57 }
0x4bc0   :  { %3194 = vsyncpa [#allocation5], 1 }
0x4bc1   :  { %3195 = vsyncpa [#allocation7], 1 }

</bundles_post_ra>
